<compile_context>
chip_gen: v5e
topology: v5e:2x2
jax: 0.10.0
libtpu: 0.0.40
codegen_flags: <defaults>
</compile_context>

<pallas_src>
import math
import jax
import jax.numpy as jnp
from jax.experimental import pallas as pl
from jax.experimental.pallas import tpu as pltpu


# ---------------------------------------------------------------------------
# Kernel
# ---------------------------------------------------------------------------
def _make_kernel(t_tile: int, B: int, H: int, Hd: int, Dout: int,
                 num_steps: int, eps: float = 1e-5):
    G = 4 * H               # LSTM gate width (i, f, g, o)
    TB = t_tile * B

    def kernel(x_ref, h0_ref, c0_ref,
               w_in_ref, b_in_ref, w_hh_ref,
               w_h2h_ref, b_h2h_ref,
               w_c2om_ref, b_c2om_ref, ln_g_ref, ln_b_ref,
               out_ref, h_out_ref, c_out_ref,
               xg_scr, h_all_scr, hid1_scr):

        # Recurrent state lives directly in the (constant-index-map, VMEM
        # resident) output refs and is carried across grid steps.
        @pl.when(pl.program_id(0) == 0)
        def _():
            h_out_ref[...] = h0_ref[...]
            c_out_ref[...] = c0_ref[...]

        # ---- input-only precompute, batched over the whole T tile ----------
        # One wide matmul produces both the (pre-scaled) LSTM x-gates and
        # fc1(x); both results go straight to VMEM scratch so nothing large
        # stays live in vregs across the serial recurrence below.
        xf = x_ref[...]                                     # (TB, Din)
        proj = jnp.dot(xf, w_in_ref[...],
                       preferred_element_type=jnp.float32) + b_in_ref[...]
        xg_scr[...] = proj[:, :G]                           # scaled x-gates (+bias)
        hid0 = jnp.maximum(proj[:, G:], 0.0)                # relu(fc1(x))
        hid1_scr[...] = jnp.maximum(
            jnp.dot(hid0, w_h2h_ref[...],
                    preferred_element_type=jnp.float32) + b_h2h_ref[...],
            0.0) + hid0                                     # (TB, Hd)

        # ---- hoisted recurrence constants -----------------------------------
        w_hh = w_hh_ref[...]                                # (H, 4H), columns pre-scaled
        lane = jax.lax.broadcasted_iota(jnp.int32, (B, G), 1)
        is_g_gate = (lane >= 2 * H) & (lane < 3 * H)
        # sigmoid(z) = 0.5*tanh(0.5*z) + 0.5; the 0.5 pre-scale is folded into
        # the weights (wrapper), leaving one tanh + one per-lane affine here.
        post_mul = jnp.where(is_g_gate, jnp.float32(1.0), jnp.float32(0.5))
        post_add = jnp.where(is_g_gate, jnp.float32(0.0), jnp.float32(0.5))

        # ---- sequential LSTM-cell recurrence --------------------------------
        def step(t, carry):
            h, c = carry
            row = pl.multiple_of(t * B, B)
            xg = xg_scr[pl.ds(row, B), :]                   # (B, 4H)
            for _ in range(num_steps):                      # static, usually 1
                z = xg + jnp.dot(h, w_hh, preferred_element_type=jnp.float32)
                a = jnp.tanh(z) * post_mul + post_add       # one dense EUP pass
                i_g = a[:, 0 * H:1 * H]
                f_g = a[:, 1 * H:2 * H]
                g_g = a[:, 2 * H:3 * H]
                o_g = a[:, 3 * H:4 * H]
                c = f_g * c + i_g * g_g
                h = o_g * jnp.tanh(c)
            h_all_scr[pl.ds(row, B), :] = h                 # one dense store / step
            return h, c

        unroll = True if t_tile <= 32 else 8
        h_fin, c_fin = jax.lax.fori_loop(
            0, t_tile, step, (h_out_ref[...], c_out_ref[...]), unroll=unroll)
        h_out_ref[...] = h_fin
        c_out_ref[...] = c_fin

        # ---- batched output map + fused LayerNorm contraction ---------------
        # out[b,o] = rsqrt(var+eps) * sum_k (om-mean)*gamma*h1 + sum_k beta*h1
        h_all = h_all_scr[...]                              # (TB, H)
        hid1 = hid1_scr[...]                                # (TB, Hd)
        gamma = ln_g_ref[...]                               # (1, Hd)
        beta = ln_b_ref[...]                                # (1, Hd)
        gh1 = hid1 * gamma                                  # (TB, Hd)
        bh1 = jnp.sum(hid1 * beta, axis=-1, keepdims=True)  # (TB, 1)

        om = jnp.dot(h_all, w_c2om_ref[...],
                     preferred_element_type=jnp.float32) + b_c2om_ref[...]
        om3 = om.reshape(TB, Dout, Hd)
        mean = jnp.mean(om3, axis=-1, keepdims=True)        # (TB, Dout, 1)
        d = om3 - mean                                      # centered (two-pass)
        var = jnp.mean(d * d, axis=-1)                      # (TB, Dout), >= 0
        inv = jax.lax.rsqrt(var + eps)                      # EUP, ~free
        contr = jnp.sum(d * gh1[:, None, :], axis=-1)       # (TB, Dout)
        out_ref[...] = (inv * contr + bh1).astype(out_ref.dtype)

    return kernel


# ---------------------------------------------------------------------------
# Wrapper
# ---------------------------------------------------------------------------
def _pick_t_tile(T, B, Din, G, H, Hd, Dout, budget_bytes=16 << 20):
    """Largest divisor of T whose working set fits a conservative VMEM budget
    (safe for v7x's smaller VMEM; v5e/v6e have more headroom)."""
    f = 4  # f32 bytes
    def vmem_cost(tt):
        tb = tt * B
        io = 2 * tb * Din * f + 2 * tb * Dout * f          # double-buffered x / out tiles
        scr = tb * (G + H + Hd) * f                        # xg + h_all + hid1 scratch
        return io + scr
    for tt in sorted((d for d in range(1, T + 1) if T % d == 0), reverse=True):
        if tt <= 128 and vmem_cost(tt) <= budget_bytes:
            return tt
    return 1


def outputmap_lstm_forward(x, h0, c0, params, *, num_steps=1, t_tile=None):
    T, B, Din = x.shape
    H = h0.shape[-1]                        # context_size
    Hd = params["w_i2h"].shape[1]           # hidden_size
    Dout = params["w_c2om"].shape[1] // Hd  # output_size
    G = 4 * H
    f32 = jnp.float32

    if t_tile is None:
        t_tile = _pick_t_tile(T, B, Din, G, H, Hd, Dout)
    assert T % t_tile == 0, "T must be divisible by t_tile"
    n_tiles = T // t_tile

    # sigmoid(z) = 0.5*tanh(0.5 z) + 0.5: pre-scale the i/f/o gate columns of
    # the LSTM weights/biases by 0.5 so the kernel's serial path needs only one
    # tanh per step (g-gate columns keep scale 1.0).
    gate_idx = jnp.arange(G)
    gate_scale = jnp.where((gate_idx >= 2 * H) & (gate_idx < 3 * H),
                           1.0, 0.5).astype(f32)[None, :]          # (1, 4H)
    w_ih_s = params["w_ih"] * gate_scale
    w_hh_s = params["w_hh"] * gate_scale
    b_g_s = (params["b_ih"] + params["b_hh"]) * gate_scale

    # Fuse the two input-consuming projections (LSTM input gates + fc1) into a
    # single (Din, 4H + Hd) matmul.
    w_in = jnp.concatenate([w_ih_s, params["w_i2h"]], axis=1)
    b_in = jnp.concatenate([b_g_s, params["b_i2h"]], axis=1)

    kernel = _make_kernel(t_tile, B, H, Hd, Dout, int(num_steps))

    const = lambda shape: pl.BlockSpec(shape, lambda i: (0,) * len(shape))

    grid_spec = pltpu.PrefetchScalarGridSpec(
        num_scalar_prefetch=0,
        grid=(n_tiles,),
        in_specs=[
            pl.BlockSpec((t_tile * B, Din), lambda i: (i, 0)),   # x, flattened (T*B, Din)
            const((B, H)), const((B, H)),                        # h0, c0
            const((Din, G + Hd)), const((1, G + Hd)),            # fused input weights
            const((H, G)),                                       # LSTM W_hh (pre-scaled)
            const((Hd, Hd)), const((1, Hd)),                     # hidden2hidden
            const((H, Dout * Hd)), const((1, Dout * Hd)),        # context2output_map
            const((1, Hd)), const((1, Hd)),                      # LayerNorm gamma / beta
        ],
        out_specs=[
            pl.BlockSpec((t_tile * B, Dout), lambda i: (i, 0)),  # outputs, flattened
            const((B, H)), const((B, H)),                        # final h, c
        ],
        scratch_shapes=[
            pltpu.VMEM((t_tile * B, G), f32),                    # per-t scaled LSTM x-gates
            pltpu.VMEM((t_tile * B, H), f32),                    # per-t context h_t
            pltpu.VMEM((t_tile * B, Hd), f32),                   # hid1 (off serial live set)
        ],
    )

    outs, h_f, c_f = pl.pallas_call(
        kernel,
        out_shape=(jax.ShapeDtypeStruct((T * B, Dout), f32),
                   jax.ShapeDtypeStruct((B, H), f32),
                   jax.ShapeDtypeStruct((B, H), f32)),
        grid_spec=grid_spec,
        compiler_params=pltpu.CompilerParams(
            # T carries the recurrence via the constant-index h/c output refs:
            # it must stay sequential ("arbitrary"), never "parallel".
            dimension_semantics=("arbitrary",),
            vmem_limit_bytes=32 * 1024 * 1024),
    )(x.reshape(T * B, Din), h0, c0,
      w_in, b_in, w_hh_s,
      params["w_h2h"], params["b_h2h"],
      params["w_c2om"], params["b_c2om"],
      params["ln_g"], params["ln_b"])

    return outs.reshape(T, B, Dout), h_f, c_f


# ---------------------------------------------------------------------------
# Parameter init (deterministic, PyTorch-like uniform bounds)
# ---------------------------------------------------------------------------
def init_params(key, input_size, context_size, hidden_size, output_size):
    H, Hd, Dout = context_size, hidden_size, output_size

    def uniform(k, shape, bound):
        return jax.random.uniform(k, shape, jnp.float32, -bound, bound)

    ks = jax.random.split(key, 12)
    p = {}
    lstm_b = 1.0 / math.sqrt(H)
    # LSTM weights stored pre-transposed: (in_features, 4H), gate order i,f,g,o
    p["w_ih"] = uniform(ks[0], (input_size, 4 * H), lstm_b)
    p["w_hh"] = uniform(ks[1], (H, 4 * H), lstm_b)
    p["b_ih"] = uniform(ks[2], (1, 4 * H), lstm_b)
    p["b_hh"] = uniform(ks[3], (1, 4 * H), lstm_b)
    fc1_b = 1.0 / math.sqrt(input_size)
    p["w_i2h"] = uniform(ks[4], (input_size, Hd), fc1_b)     # BasicResidualNN.fc1
    p["b_i2h"] = uniform(ks[5], (1, Hd), fc1_b)
    h2h_b = 1.0 / math.sqrt(Hd)
    p["w_h2h"] = uniform(ks[6], (Hd, Hd), h2h_b)
    p["b_h2h"] = uniform(ks[7], (1, Hd), h2h_b)
    c2om_b = 1.0 / math.sqrt(H)
    p["w_c2om"] = uniform(ks[8], (H, Dout * Hd), c2om_b)
    p["b_c2om"] = uniform(ks[9], (1, Dout * Hd), c2om_b)
    # LayerNorm affine params (PyTorch default ones/zeros; perturb so the
    # fused-LN algebra is actually exercised by the correctness check).
    p["ln_g"] = 1.0 + 0.1 * jax.random.normal(ks[10], (1, Hd), jnp.float32)
    p["ln_b"] = 0.1 * jax.random.normal(ks[11], (1, Hd), jnp.float32)
    # BasicResidualNN.fc2 is defined in __init__ but never used in forward — omitted.
    return p


# ---------------------------------------------------------------------------
# Pure-JAX reference (faithful port of the PyTorch forward; unscaled weights,
# textbook sigmoid — also validates the tanh-based gate trick in the kernel)
# ---------------------------------------------------------------------------
def reference_forward(x, h0, c0, p, *, num_steps=1, eps=1e-5):
    T, B, _ = x.shape
    H = h0.shape[-1]
    Hd = p["w_i2h"].shape[1]
    Dout = p["w_c2om"].shape[1] // Hd
    b_g = p["b_ih"] + p["b_hh"]

    def sigmoid(z):
        return 1.0 / (1.0 + jnp.exp(-z))

    with jax.default_matmul_precision("highest"):
        h, c = h0, c0
        outs = []
        for t in range(T):
            xt = x[t]
            out = None
            for _ in range(num_steps):
                # nn.LSTM cell (1 layer, seq len 1), gate order i, f, g, o
                gates = xt @ p["w_ih"] + b_g + h @ p["w_hh"]
                i_g = sigmoid(gates[:, 0 * H:1 * H])
                f_g = sigmoid(gates[:, 1 * H:2 * H])
                g_g = jnp.tanh(gates[:, 2 * H:3 * H])
                o_g = sigmoid(gates[:, 3 * H:4 * H])
                c = f_g * c + i_g * g_g
                h = o_g * jnp.tanh(c)
                # context2output_map -> (B, Dout, Hd), affine LayerNorm over Hd
                om = (h @ p["w_c2om"] + p["b_c2om"]).reshape(B, Dout, Hd)
                mean = jnp.mean(om, axis=-1, keepdims=True)
                var = jnp.mean((om - mean) ** 2, axis=-1, keepdims=True)
                om = (om - mean) / jnp.sqrt(var + eps) * p["ln_g"] + p["ln_b"]
                # input2hidden (only fc1) / hidden2hidden + residual
                h0_ = jnp.maximum(xt @ p["w_i2h"] + p["b_i2h"], 0.0)
                h1_ = jnp.maximum(h0_ @ p["w_h2h"] + p["b_h2h"], 0.0) + h0_
                out = jnp.sum(om * h1_[:, None, :], axis=-1)
            outs.append(out)
    return jnp.stack(outs, axis=0), h, c


# ---------------------------------------------------------------------------
if __name__ == "__main__":
    # B = 8 keeps every per-timestep scratch access a dense, sublane-aligned
    # (8, lanes) load/store inside the serial recurrence.
    T, B = 8, 8
    input_size, context_size, hidden_size, output_size = 16, 32, 32, 8

    key = jax.random.PRNGKey(0)
    k_x, k_p = jax.random.split(key)
    x = jax.random.normal(k_x, (T, B, input_size), dtype=jnp.float32)
    h0 = jnp.zeros((B, context_size), dtype=jnp.float32)   # init_hidden
    c0 = jnp.zeros((B, context_size), dtype=jnp.float32)
    params = init_params(k_p, input_size, context_size, hidden_size, output_size)

    # Whole sequence in one grid step, num_steps = 1.
    outs, h_f, c_f = outputmap_lstm_forward(x, h0, c0, params, num_steps=1)
    outs = jax.block_until_ready(outs)
    h_f = jax.block_until_ready(h_f)
    c_f = jax.block_until_ready(c_f)

    ref_outs, ref_h, ref_c = reference_forward(x, h0, c0, params, num_steps=1)
    assert outs.shape == (T, B, output_size)
    assert h_f.shape == (B, context_size) and c_f.shape == (B, context_size)
    assert jnp.allclose(outs, ref_outs, rtol=1e-3, atol=1e-3), "output mismatch"
    assert jnp.allclose(h_f, ref_h, rtol=1e-3, atol=1e-3), "h mismatch"
    assert jnp.allclose(c_f, ref_c, rtol=1e-3, atol=1e-3), "c mismatch"

    # Also exercise the multi-tile grid (state carried across grid steps via the
    # constant-index output refs) and num_steps > 1.
    outs2, h_f2, c_f2 = outputmap_lstm_forward(x, h0, c0, params,
                                               num_steps=2, t_tile=4)
    outs2 = jax.block_until_ready(outs2)
    ref_outs2, ref_h2, ref_c2 = reference_forward(x, h0, c0, params, num_steps=2)
    assert jnp.allclose(outs2, ref_outs2, rtol=1e-3, atol=1e-3), "output mismatch (ns=2)"
    assert jnp.allclose(h_f2, ref_h2, rtol=1e-3, atol=1e-3), "h mismatch (ns=2)"
    assert jnp.allclose(c_f2, ref_c2, rtol=1e-3, atol=1e-3), "c mismatch (ns=2)"

    print("KERNEL_OK")
</pallas_src>

<mosaic_0001>
module attributes {stable_mosaic.version = 11 : i64} {
  func.func @kernel(%arg0: i32, %arg1: memref<64x16xf32, #tpu.memory_space<vmem>>, %arg2: memref<8x32xf32, #tpu.memory_space<vmem>>, %arg3: memref<8x32xf32, #tpu.memory_space<vmem>>, %arg4: memref<16x160xf32, #tpu.memory_space<vmem>>, %arg5: memref<1x160xf32, #tpu.memory_space<vmem>>, %arg6: memref<32x128xf32, #tpu.memory_space<vmem>>, %arg7: memref<32x32xf32, #tpu.memory_space<vmem>>, %arg8: memref<1x32xf32, #tpu.memory_space<vmem>>, %arg9: memref<32x256xf32, #tpu.memory_space<vmem>>, %arg10: memref<1x256xf32, #tpu.memory_space<vmem>>, %arg11: memref<1x32xf32, #tpu.memory_space<vmem>>, %arg12: memref<1x32xf32, #tpu.memory_space<vmem>>, %arg13: memref<64x8xf32, #tpu.memory_space<vmem>>, %arg14: memref<8x32xf32, #tpu.memory_space<vmem>>, %arg15: memref<8x32xf32, #tpu.memory_space<vmem>>, %arg16: memref<64x128xf32, #tpu.memory_space<vmem>>, %arg17: memref<64x32xf32, #tpu.memory_space<vmem>>, %arg18: memref<64x32xf32, #tpu.memory_space<vmem>>) attributes {dimension_semantics = [#tpu.dimension_semantics<arbitrary>], iteration_bounds = array<i64: 1>, scalar_prefetch = 0 : i64, scratch_operands = 3 : i64, tpu.core_type = #tpu.core_type<tc>, window_params = [{transform_indices = @transform_0, window_bounds = array<i64: 64, 16>}, {pipeline_mode = #tpu.pipeline_mode<synchronous>, transform_indices = @transform_1, window_bounds = array<i64: 8, 32>}, {pipeline_mode = #tpu.pipeline_mode<synchronous>, transform_indices = @transform_2, window_bounds = array<i64: 8, 32>}, {pipeline_mode = #tpu.pipeline_mode<synchronous>, transform_indices = @transform_3, window_bounds = array<i64: 16, 160>}, {pipeline_mode = #tpu.pipeline_mode<synchronous>, transform_indices = @transform_4, window_bounds = array<i64: 1, 160>}, {pipeline_mode = #tpu.pipeline_mode<synchronous>, transform_indices = @transform_5, window_bounds = array<i64: 32, 128>}, {pipeline_mode = #tpu.pipeline_mode<synchronous>, transform_indices = @transform_6, window_bounds = array<i64: 32, 32>}, {pipeline_mode = #tpu.pipeline_mode<synchronous>, transform_indices = @transform_7, window_bounds = array<i64: 1, 32>}, {pipeline_mode = #tpu.pipeline_mode<synchronous>, transform_indices = @transform_8, window_bounds = array<i64: 32, 256>}, {pipeline_mode = #tpu.pipeline_mode<synchronous>, transform_indices = @transform_9, window_bounds = array<i64: 1, 256>}, {pipeline_mode = #tpu.pipeline_mode<synchronous>, transform_indices = @transform_10, window_bounds = array<i64: 1, 32>}, {pipeline_mode = #tpu.pipeline_mode<synchronous>, transform_indices = @transform_11, window_bounds = array<i64: 1, 32>}, {transform_indices = @transform_12, window_bounds = array<i64: 64, 8>}, {pipeline_mode = #tpu.pipeline_mode<synchronous>, transform_indices = @transform_13, window_bounds = array<i64: 8, 32>}, {pipeline_mode = #tpu.pipeline_mode<synchronous>, transform_indices = @transform_14, window_bounds = array<i64: 8, 32>}]} {
    %c0_i32 = arith.constant 0 : i32
    %0 = arith.cmpi eq, %arg0, %c0_i32 : i32
    %1 = arith.extui %0 : i1 to i32
    %c0_i32_0 = arith.constant 0 : i32
    %2 = arith.cmpi ne, %1, %c0_i32_0 : i32
    scf.if %2 {
      %c0_86 = arith.constant 0 : index
      %c0_87 = arith.constant 0 : index
      %237 = vector.load %arg2[%c0_86, %c0_87] : memref<8x32xf32, #tpu.memory_space<vmem>>, vector<8x32xf32>
      %c0_88 = arith.constant 0 : index
      %c0_89 = arith.constant 0 : index
      %238 = vector.load %arg14[%c0_88, %c0_89] : memref<8x32xf32, #tpu.memory_space<vmem>>, vector<8x32xf32>
      tpu.vector_store %arg14[%c0_88, %c0_89], %237 {strides = array<i32>} : memref<8x32xf32, #tpu.memory_space<vmem>>, vector<8x32xf32>,
      %c0_90 = arith.constant 0 : index
      %c0_91 = arith.constant 0 : index
      %239 = vector.load %arg3[%c0_90, %c0_91] : memref<8x32xf32, #tpu.memory_space<vmem>>, vector<8x32xf32>
      %c0_92 = arith.constant 0 : index
      %c0_93 = arith.constant 0 : index
      %240 = vector.load %arg15[%c0_92, %c0_93] : memref<8x32xf32, #tpu.memory_space<vmem>>, vector<8x32xf32>
      tpu.vector_store %arg15[%c0_92, %c0_93], %239 {strides = array<i32>} : memref<8x32xf32, #tpu.memory_space<vmem>>, vector<8x32xf32>,
    } else {
    }
    %c0 = arith.constant 0 : index
    %c0_1 = arith.constant 0 : index
    %3 = vector.load %arg1[%c0, %c0_1] : memref<64x16xf32, #tpu.memory_space<vmem>>, vector<64x16xf32>
    %c0_2 = arith.constant 0 : index
    %c0_3 = arith.constant 0 : index
    %4 = vector.load %arg4[%c0_2, %c0_3] : memref<16x160xf32, #tpu.memory_space<vmem>>, vector<16x160xf32>
    %cst = arith.constant dense<0.000000e+00> : vector<64x160xf32>
    %5 = tpu.matmul %3, %4, %cst {dimension_numbers = #tpu.dot_dimension_numbers<[1], [0], [0], [1], [0, 0, 1, 1], [], []>} : vector<64x16xf32>, vector<16x160xf32>, vector<64x160xf32> -> vector<64x160xf32>
    %c0_4 = arith.constant 0 : index
    %c0_5 = arith.constant 0 : index
    %6 = vector.load %arg5[%c0_4, %c0_5] : memref<1x160xf32, #tpu.memory_space<vmem>>, vector<1x160xf32>
    %7 = vector.broadcast %6 : vector<1x160xf32> to vector<64x160xf32>
    %8 = arith.addf %5, %7 : vector<64x160xf32>
    %9 = vector.extract_strided_slice %8 {offsets = [0, 0], sizes = [64, 128], strides = [1, 1]} : vector<64x160xf32> to vector<64x128xf32>
    %c0_6 = arith.constant 0 : index
    %c0_7 = arith.constant 0 : index
    %10 = vector.load %arg16[%c0_6, %c0_7] : memref<64x128xf32, #tpu.memory_space<vmem>>, vector<64x128xf32>
    tpu.vector_store %arg16[%c0_6, %c0_7], %9 {strides = array<i32>} : memref<64x128xf32, #tpu.memory_space<vmem>>, vector<64x128xf32>,
    %11 = vector.extract_strided_slice %8 {offsets = [0, 128], sizes = [64, 32], strides = [1, 1]} : vector<64x160xf32> to vector<64x32xf32>
    %cst_8 = arith.constant 0.000000e+00 : f32
    %12 = vector.broadcast %cst_8 : f32 to vector<64x32xf32>
    %13 = arith.maximumf %11, %12 : vector<64x32xf32>
    %c0_9 = arith.constant 0 : index
    %c0_10 = arith.constant 0 : index
    %14 = vector.load %arg7[%c0_9, %c0_10] : memref<32x32xf32, #tpu.memory_space<vmem>>, vector<32x32xf32>
    %cst_11 = arith.constant dense<0.000000e+00> : vector<64x32xf32>
    %15 = tpu.matmul %13, %14, %cst_11 {dimension_numbers = #tpu.dot_dimension_numbers<[1], [0], [0], [1], [0, 0, 1, 1], [], []>} : vector<64x32xf32>, vector<32x32xf32>, vector<64x32xf32> -> vector<64x32xf32>
    %c0_12 = arith.constant 0 : index
    %c0_13 = arith.constant 0 : index
    %16 = vector.load %arg8[%c0_12, %c0_13] : memref<1x32xf32, #tpu.memory_space<vmem>>, vector<1x32xf32>
    %17 = vector.broadcast %16 : vector<1x32xf32> to vector<64x32xf32>
    %18 = arith.addf %15, %17 : vector<64x32xf32>
    %cst_14 = arith.constant 0.000000e+00 : f32
    %19 = vector.broadcast %cst_14 : f32 to vector<64x32xf32>
    %20 = arith.maximumf %18, %19 : vector<64x32xf32>
    %21 = arith.addf %20, %13 : vector<64x32xf32>
    %c0_15 = arith.constant 0 : index
    %c0_16 = arith.constant 0 : index
    %22 = vector.load %arg18[%c0_15, %c0_16] : memref<64x32xf32, #tpu.memory_space<vmem>>, vector<64x32xf32>
    tpu.vector_store %arg18[%c0_15, %c0_16], %21 {strides = array<i32>} : memref<64x32xf32, #tpu.memory_space<vmem>>, vector<64x32xf32>,
    %c0_17 = arith.constant 0 : index
    %c0_18 = arith.constant 0 : index
    %23 = vector.load %arg6[%c0_17, %c0_18] : memref<32x128xf32, #tpu.memory_space<vmem>>, vector<32x128xf32>
    %24 = tpu.iota {dimensions = array<i32: 1>} : vector<8x128xi32>
    %c64_i32 = arith.constant 64 : i32
    %25 = vector.broadcast %c64_i32 : i32 to vector<8x128xi32>
    %26 = arith.cmpi sge, %24, %25 : vector<8x128xi32>
    %c96_i32 = arith.constant 96 : i32
    %27 = vector.broadcast %c96_i32 : i32 to vector<8x128xi32>
    %28 = arith.cmpi slt, %24, %27 : vector<8x128xi32>
    %29 = arith.andi %26, %28 : vector<8x128xi1>
    %cst_19 = arith.constant 1.000000e+00 : f32
    %cst_20 = arith.constant 5.000000e-01 : f32
    %30 = vector.broadcast %cst_19 : f32 to vector<8x128xf32>
    %31 = vector.broadcast %cst_20 : f32 to vector<8x128xf32>
    %32 = arith.select %29, %30, %31 : vector<8x128xi1>, vector<8x128xf32>
    %cst_21 = arith.constant 0.000000e+00 : f32
    %cst_22 = arith.constant 5.000000e-01 : f32
    %33 = vector.broadcast %cst_21 : f32 to vector<8x128xf32>
    %34 = vector.broadcast %cst_22 : f32 to vector<8x128xf32>
    %35 = arith.select %29, %33, %34 : vector<8x128xi1>, vector<8x128xf32>
    %c0_23 = arith.constant 0 : index
    %c0_24 = arith.constant 0 : index
    %36 = vector.load %arg14[%c0_23, %c0_24] : memref<8x32xf32, #tpu.memory_space<vmem>>, vector<8x32xf32>
    %c0_25 = arith.constant 0 : index
    %c0_26 = arith.constant 0 : index
    %37 = vector.load %arg15[%c0_25, %c0_26] : memref<8x32xf32, #tpu.memory_space<vmem>>, vector<8x32xf32>
    %c0_i32_27 = arith.constant 0 : i32
    %c8_i32 = arith.constant 8 : i32
    %38 = arith.muli %c0_i32_27, %c8_i32 : i32
    %39 = tpu.assume_multiple %38, 8 : i32
    %40 = arith.index_cast %39 : i32 to index
    %c0_28 = arith.constant 0 : index
    %41 = vector.load %arg16[%40, %c0_28] : memref<64x128xf32, #tpu.memory_space<vmem>>, vector<8x128xf32>
    %cst_29 = arith.constant dense<0.000000e+00> : vector<8x128xf32>
    %42 = tpu.matmul %36, %23, %cst_29 {dimension_numbers = #tpu.dot_dimension_numbers<[1], [0], [0], [1], [0, 0, 1, 1], [], []>} : vector<8x32xf32>, vector<32x128xf32>, vector<8x128xf32> -> vector<8x128xf32>
    %43 = arith.addf %41, %42 : vector<8x128xf32>
    %44 = math.tanh %43 : vector<8x128xf32>
    %45 = arith.mulf %44, %32 : vector<8x128xf32>
    %46 = arith.addf %45, %35 : vector<8x128xf32>
    %47 = vector.extract_strided_slice %46 {offsets = [0, 0], sizes = [8, 32], strides = [1, 1]} : vector<8x128xf32> to vector<8x32xf32>
    %48 = vector.extract_strided_slice %46 {offsets = [0, 32], sizes = [8, 32], strides = [1, 1]} : vector<8x128xf32> to vector<8x32xf32>
    %49 = vector.extract_strided_slice %46 {offsets = [0, 64], sizes = [8, 32], strides = [1, 1]} : vector<8x128xf32> to vector<8x32xf32>
    %50 = vector.extract_strided_slice %46 {offsets = [0, 96], sizes = [8, 32], strides = [1, 1]} : vector<8x128xf32> to vector<8x32xf32>
    %51 = arith.mulf %48, %37 : vector<8x32xf32>
    %52 = arith.mulf %47, %49 : vector<8x32xf32>
    %53 = arith.addf %51, %52 : vector<8x32xf32>
    %54 = math.tanh %53 : vector<8x32xf32>
    %55 = arith.mulf %50, %54 : vector<8x32xf32>
    %56 = arith.index_cast %39 : i32 to index
    %c0_30 = arith.constant 0 : index
    %57 = vector.load %arg17[%56, %c0_30] : memref<64x32xf32, #tpu.memory_space<vmem>>, vector<8x32xf32>
    tpu.vector_store %arg17[%56, %c0_30], %55 {strides = array<i32>} : memref<64x32xf32, #tpu.memory_space<vmem>>, vector<8x32xf32>,
    %c1_i32 = arith.constant 1 : i32
    %c8_i32_31 = arith.constant 8 : i32
    %58 = arith.muli %c1_i32, %c8_i32_31 : i32
    %59 = tpu.assume_multiple %58, 8 : i32
    %60 = arith.index_cast %59 : i32 to index
    %c0_32 = arith.constant 0 : index
    %61 = vector.load %arg16[%60, %c0_32] : memref<64x128xf32, #tpu.memory_space<vmem>>, vector<8x128xf32>
    %cst_33 = arith.constant dense<0.000000e+00> : vector<8x128xf32>
    %62 = tpu.matmul %55, %23, %cst_33 {dimension_numbers = #tpu.dot_dimension_numbers<[1], [0], [0], [1], [0, 0, 1, 1], [], []>} : vector<8x32xf32>, vector<32x128xf32>, vector<8x128xf32> -> vector<8x128xf32>
    %63 = arith.addf %61, %62 : vector<8x128xf32>
    %64 = math.tanh %63 : vector<8x128xf32>
    %65 = arith.mulf %64, %32 : vector<8x128xf32>
    %66 = arith.addf %65, %35 : vector<8x128xf32>
    %67 = vector.extract_strided_slice %66 {offsets = [0, 0], sizes = [8, 32], strides = [1, 1]} : vector<8x128xf32> to vector<8x32xf32>
    %68 = vector.extract_strided_slice %66 {offsets = [0, 32], sizes = [8, 32], strides = [1, 1]} : vector<8x128xf32> to vector<8x32xf32>
    %69 = vector.extract_strided_slice %66 {offsets = [0, 64], sizes = [8, 32], strides = [1, 1]} : vector<8x128xf32> to vector<8x32xf32>
    %70 = vector.extract_strided_slice %66 {offsets = [0, 96], sizes = [8, 32], strides = [1, 1]} : vector<8x128xf32> to vector<8x32xf32>
    %71 = arith.mulf %68, %53 : vector<8x32xf32>
    %72 = arith.mulf %67, %69 : vector<8x32xf32>
    %73 = arith.addf %71, %72 : vector<8x32xf32>
    %74 = math.tanh %73 : vector<8x32xf32>
    %75 = arith.mulf %70, %74 : vector<8x32xf32>
    %76 = arith.index_cast %59 : i32 to index
    %c0_34 = arith.constant 0 : index
    %77 = vector.load %arg17[%76, %c0_34] : memref<64x32xf32, #tpu.memory_space<vmem>>, vector<8x32xf32>
    tpu.vector_store %arg17[%76, %c0_34], %75 {strides = array<i32>} : memref<64x32xf32, #tpu.memory_space<vmem>>, vector<8x32xf32>,
    %c2_i32 = arith.constant 2 : i32
    %c8_i32_35 = arith.constant 8 : i32
    %78 = arith.muli %c2_i32, %c8_i32_35 : i32
    %79 = tpu.assume_multiple %78, 8 : i32
    %80 = arith.index_cast %79 : i32 to index
    %c0_36 = arith.constant 0 : index
    %81 = vector.load %arg16[%80, %c0_36] : memref<64x128xf32, #tpu.memory_space<vmem>>, vector<8x128xf32>
    %cst_37 = arith.constant dense<0.000000e+00> : vector<8x128xf32>
    %82 = tpu.matmul %75, %23, %cst_37 {dimension_numbers = #tpu.dot_dimension_numbers<[1], [0], [0], [1], [0, 0, 1, 1], [], []>} : vector<8x32xf32>, vector<32x128xf32>, vector<8x128xf32> -> vector<8x128xf32>
    %83 = arith.addf %81, %82 : vector<8x128xf32>
    %84 = math.tanh %83 : vector<8x128xf32>
    %85 = arith.mulf %84, %32 : vector<8x128xf32>
    %86 = arith.addf %85, %35 : vector<8x128xf32>
    %87 = vector.extract_strided_slice %86 {offsets = [0, 0], sizes = [8, 32], strides = [1, 1]} : vector<8x128xf32> to vector<8x32xf32>
    %88 = vector.extract_strided_slice %86 {offsets = [0, 32], sizes = [8, 32], strides = [1, 1]} : vector<8x128xf32> to vector<8x32xf32>
    %89 = vector.extract_strided_slice %86 {offsets = [0, 64], sizes = [8, 32], strides = [1, 1]} : vector<8x128xf32> to vector<8x32xf32>
    %90 = vector.extract_strided_slice %86 {offsets = [0, 96], sizes = [8, 32], strides = [1, 1]} : vector<8x128xf32> to vector<8x32xf32>
    %91 = arith.mulf %88, %73 : vector<8x32xf32>
    %92 = arith.mulf %87, %89 : vector<8x32xf32>
    %93 = arith.addf %91, %92 : vector<8x32xf32>
    %94 = math.tanh %93 : vector<8x32xf32>
    %95 = arith.mulf %90, %94 : vector<8x32xf32>
    %96 = arith.index_cast %79 : i32 to index
    %c0_38 = arith.constant 0 : index
    %97 = vector.load %arg17[%96, %c0_38] : memref<64x32xf32, #tpu.memory_space<vmem>>, vector<8x32xf32>
    tpu.vector_store %arg17[%96, %c0_38], %95 {strides = array<i32>} : memref<64x32xf32, #tpu.memory_space<vmem>>, vector<8x32xf32>,
    %c3_i32 = arith.constant 3 : i32
    %c8_i32_39 = arith.constant 8 : i32
    %98 = arith.muli %c3_i32, %c8_i32_39 : i32
    %99 = tpu.assume_multiple %98, 8 : i32
    %100 = arith.index_cast %99 : i32 to index
    %c0_40 = arith.constant 0 : index
    %101 = vector.load %arg16[%100, %c0_40] : memref<64x128xf32, #tpu.memory_space<vmem>>, vector<8x128xf32>
    %cst_41 = arith.constant dense<0.000000e+00> : vector<8x128xf32>
    %102 = tpu.matmul %95, %23, %cst_41 {dimension_numbers = #tpu.dot_dimension_numbers<[1], [0], [0], [1], [0, 0, 1, 1], [], []>} : vector<8x32xf32>, vector<32x128xf32>, vector<8x128xf32> -> vector<8x128xf32>
    %103 = arith.addf %101, %102 : vector<8x128xf32>
    %104 = math.tanh %103 : vector<8x128xf32>
    %105 = arith.mulf %104, %32 : vector<8x128xf32>
    %106 = arith.addf %105, %35 : vector<8x128xf32>
    %107 = vector.extract_strided_slice %106 {offsets = [0, 0], sizes = [8, 32], strides = [1, 1]} : vector<8x128xf32> to vector<8x32xf32>
    %108 = vector.extract_strided_slice %106 {offsets = [0, 32], sizes = [8, 32], strides = [1, 1]} : vector<8x128xf32> to vector<8x32xf32>
    %109 = vector.extract_strided_slice %106 {offsets = [0, 64], sizes = [8, 32], strides = [1, 1]} : vector<8x128xf32> to vector<8x32xf32>
    %110 = vector.extract_strided_slice %106 {offsets = [0, 96], sizes = [8, 32], strides = [1, 1]} : vector<8x128xf32> to vector<8x32xf32>
    %111 = arith.mulf %108, %93 : vector<8x32xf32>
    %112 = arith.mulf %107, %109 : vector<8x32xf32>
    %113 = arith.addf %111, %112 : vector<8x32xf32>
    %114 = math.tanh %113 : vector<8x32xf32>
    %115 = arith.mulf %110, %114 : vector<8x32xf32>
    %116 = arith.index_cast %99 : i32 to index
    %c0_42 = arith.constant 0 : index
    %117 = vector.load %arg17[%116, %c0_42] : memref<64x32xf32, #tpu.memory_space<vmem>>, vector<8x32xf32>
    tpu.vector_store %arg17[%116, %c0_42], %115 {strides = array<i32>} : memref<64x32xf32, #tpu.memory_space<vmem>>, vector<8x32xf32>,
    %c4_i32 = arith.constant 4 : i32
    %c8_i32_43 = arith.constant 8 : i32
    %118 = arith.muli %c4_i32, %c8_i32_43 : i32
    %119 = tpu.assume_multiple %118, 8 : i32
    %120 = arith.index_cast %119 : i32 to index
    %c0_44 = arith.constant 0 : index
    %121 = vector.load %arg16[%120, %c0_44] : memref<64x128xf32, #tpu.memory_space<vmem>>, vector<8x128xf32>
    %cst_45 = arith.constant dense<0.000000e+00> : vector<8x128xf32>
    %122 = tpu.matmul %115, %23, %cst_45 {dimension_numbers = #tpu.dot_dimension_numbers<[1], [0], [0], [1], [0, 0, 1, 1], [], []>} : vector<8x32xf32>, vector<32x128xf32>, vector<8x128xf32> -> vector<8x128xf32>
    %123 = arith.addf %121, %122 : vector<8x128xf32>
    %124 = math.tanh %123 : vector<8x128xf32>
    %125 = arith.mulf %124, %32 : vector<8x128xf32>
    %126 = arith.addf %125, %35 : vector<8x128xf32>
    %127 = vector.extract_strided_slice %126 {offsets = [0, 0], sizes = [8, 32], strides = [1, 1]} : vector<8x128xf32> to vector<8x32xf32>
    %128 = vector.extract_strided_slice %126 {offsets = [0, 32], sizes = [8, 32], strides = [1, 1]} : vector<8x128xf32> to vector<8x32xf32>
    %129 = vector.extract_strided_slice %126 {offsets = [0, 64], sizes = [8, 32], strides = [1, 1]} : vector<8x128xf32> to vector<8x32xf32>
    %130 = vector.extract_strided_slice %126 {offsets = [0, 96], sizes = [8, 32], strides = [1, 1]} : vector<8x128xf32> to vector<8x32xf32>
    %131 = arith.mulf %128, %113 : vector<8x32xf32>
    %132 = arith.mulf %127, %129 : vector<8x32xf32>
    %133 = arith.addf %131, %132 : vector<8x32xf32>
    %134 = math.tanh %133 : vector<8x32xf32>
    %135 = arith.mulf %130, %134 : vector<8x32xf32>
    %136 = arith.index_cast %119 : i32 to index
    %c0_46 = arith.constant 0 : index
    %137 = vector.load %arg17[%136, %c0_46] : memref<64x32xf32, #tpu.memory_space<vmem>>, vector<8x32xf32>
    tpu.vector_store %arg17[%136, %c0_46], %135 {strides = array<i32>} : memref<64x32xf32, #tpu.memory_space<vmem>>, vector<8x32xf32>,
    %c5_i32 = arith.constant 5 : i32
    %c8_i32_47 = arith.constant 8 : i32
    %138 = arith.muli %c5_i32, %c8_i32_47 : i32
    %139 = tpu.assume_multiple %138, 8 : i32
    %140 = arith.index_cast %139 : i32 to index
    %c0_48 = arith.constant 0 : index
    %141 = vector.load %arg16[%140, %c0_48] : memref<64x128xf32, #tpu.memory_space<vmem>>, vector<8x128xf32>
    %cst_49 = arith.constant dense<0.000000e+00> : vector<8x128xf32>
    %142 = tpu.matmul %135, %23, %cst_49 {dimension_numbers = #tpu.dot_dimension_numbers<[1], [0], [0], [1], [0, 0, 1, 1], [], []>} : vector<8x32xf32>, vector<32x128xf32>, vector<8x128xf32> -> vector<8x128xf32>
    %143 = arith.addf %141, %142 : vector<8x128xf32>
    %144 = math.tanh %143 : vector<8x128xf32>
    %145 = arith.mulf %144, %32 : vector<8x128xf32>
    %146 = arith.addf %145, %35 : vector<8x128xf32>
    %147 = vector.extract_strided_slice %146 {offsets = [0, 0], sizes = [8, 32], strides = [1, 1]} : vector<8x128xf32> to vector<8x32xf32>
    %148 = vector.extract_strided_slice %146 {offsets = [0, 32], sizes = [8, 32], strides = [1, 1]} : vector<8x128xf32> to vector<8x32xf32>
    %149 = vector.extract_strided_slice %146 {offsets = [0, 64], sizes = [8, 32], strides = [1, 1]} : vector<8x128xf32> to vector<8x32xf32>
    %150 = vector.extract_strided_slice %146 {offsets = [0, 96], sizes = [8, 32], strides = [1, 1]} : vector<8x128xf32> to vector<8x32xf32>
    %151 = arith.mulf %148, %133 : vector<8x32xf32>
    %152 = arith.mulf %147, %149 : vector<8x32xf32>
    %153 = arith.addf %151, %152 : vector<8x32xf32>
    %154 = math.tanh %153 : vector<8x32xf32>
    %155 = arith.mulf %150, %154 : vector<8x32xf32>
    %156 = arith.index_cast %139 : i32 to index
    %c0_50 = arith.constant 0 : index
    %157 = vector.load %arg17[%156, %c0_50] : memref<64x32xf32, #tpu.memory_space<vmem>>, vector<8x32xf32>
    tpu.vector_store %arg17[%156, %c0_50], %155 {strides = array<i32>} : memref<64x32xf32, #tpu.memory_space<vmem>>, vector<8x32xf32>,
    %c6_i32 = arith.constant 6 : i32
    %c8_i32_51 = arith.constant 8 : i32
    %158 = arith.muli %c6_i32, %c8_i32_51 : i32
    %159 = tpu.assume_multiple %158, 8 : i32
    %160 = arith.index_cast %159 : i32 to index
    %c0_52 = arith.constant 0 : index
    %161 = vector.load %arg16[%160, %c0_52] : memref<64x128xf32, #tpu.memory_space<vmem>>, vector<8x128xf32>
    %cst_53 = arith.constant dense<0.000000e+00> : vector<8x128xf32>
    %162 = tpu.matmul %155, %23, %cst_53 {dimension_numbers = #tpu.dot_dimension_numbers<[1], [0], [0], [1], [0, 0, 1, 1], [], []>} : vector<8x32xf32>, vector<32x128xf32>, vector<8x128xf32> -> vector<8x128xf32>
    %163 = arith.addf %161, %162 : vector<8x128xf32>
    %164 = math.tanh %163 : vector<8x128xf32>
    %165 = arith.mulf %164, %32 : vector<8x128xf32>
    %166 = arith.addf %165, %35 : vector<8x128xf32>
    %167 = vector.extract_strided_slice %166 {offsets = [0, 0], sizes = [8, 32], strides = [1, 1]} : vector<8x128xf32> to vector<8x32xf32>
    %168 = vector.extract_strided_slice %166 {offsets = [0, 32], sizes = [8, 32], strides = [1, 1]} : vector<8x128xf32> to vector<8x32xf32>
    %169 = vector.extract_strided_slice %166 {offsets = [0, 64], sizes = [8, 32], strides = [1, 1]} : vector<8x128xf32> to vector<8x32xf32>
    %170 = vector.extract_strided_slice %166 {offsets = [0, 96], sizes = [8, 32], strides = [1, 1]} : vector<8x128xf32> to vector<8x32xf32>
    %171 = arith.mulf %168, %153 : vector<8x32xf32>
    %172 = arith.mulf %167, %169 : vector<8x32xf32>
    %173 = arith.addf %171, %172 : vector<8x32xf32>
    %174 = math.tanh %173 : vector<8x32xf32>
    %175 = arith.mulf %170, %174 : vector<8x32xf32>
    %176 = arith.index_cast %159 : i32 to index
    %c0_54 = arith.constant 0 : index
    %177 = vector.load %arg17[%176, %c0_54] : memref<64x32xf32, #tpu.memory_space<vmem>>, vector<8x32xf32>
    tpu.vector_store %arg17[%176, %c0_54], %175 {strides = array<i32>} : memref<64x32xf32, #tpu.memory_space<vmem>>, vector<8x32xf32>,
    %c7_i32 = arith.constant 7 : i32
    %c8_i32_55 = arith.constant 8 : i32
    %178 = arith.muli %c7_i32, %c8_i32_55 : i32
    %179 = tpu.assume_multiple %178, 8 : i32
    %180 = arith.index_cast %179 : i32 to index
    %c0_56 = arith.constant 0 : index
    %181 = vector.load %arg16[%180, %c0_56] : memref<64x128xf32, #tpu.memory_space<vmem>>, vector<8x128xf32>
    %cst_57 = arith.constant dense<0.000000e+00> : vector<8x128xf32>
    %182 = tpu.matmul %175, %23, %cst_57 {dimension_numbers = #tpu.dot_dimension_numbers<[1], [0], [0], [1], [0, 0, 1, 1], [], []>} : vector<8x32xf32>, vector<32x128xf32>, vector<8x128xf32> -> vector<8x128xf32>
    %183 = arith.addf %181, %182 : vector<8x128xf32>
    %184 = math.tanh %183 : vector<8x128xf32>
    %185 = arith.mulf %184, %32 : vector<8x128xf32>
    %186 = arith.addf %185, %35 : vector<8x128xf32>
    %187 = vector.extract_strided_slice %186 {offsets = [0, 0], sizes = [8, 32], strides = [1, 1]} : vector<8x128xf32> to vector<8x32xf32>
    %188 = vector.extract_strided_slice %186 {offsets = [0, 32], sizes = [8, 32], strides = [1, 1]} : vector<8x128xf32> to vector<8x32xf32>
    %189 = vector.extract_strided_slice %186 {offsets = [0, 64], sizes = [8, 32], strides = [1, 1]} : vector<8x128xf32> to vector<8x32xf32>
    %190 = vector.extract_strided_slice %186 {offsets = [0, 96], sizes = [8, 32], strides = [1, 1]} : vector<8x128xf32> to vector<8x32xf32>
    %191 = arith.mulf %188, %173 : vector<8x32xf32>
    %192 = arith.mulf %187, %189 : vector<8x32xf32>
    %193 = arith.addf %191, %192 : vector<8x32xf32>
    %194 = math.tanh %193 : vector<8x32xf32>
    %195 = arith.mulf %190, %194 : vector<8x32xf32>
    %196 = arith.index_cast %179 : i32 to index
    %c0_58 = arith.constant 0 : index
    %197 = vector.load %arg17[%196, %c0_58] : memref<64x32xf32, #tpu.memory_space<vmem>>, vector<8x32xf32>
    tpu.vector_store %arg17[%196, %c0_58], %195 {strides = array<i32>} : memref<64x32xf32, #tpu.memory_space<vmem>>, vector<8x32xf32>,
    %c8_i32_59 = arith.constant 8 : i32
    %c0_60 = arith.constant 0 : index
    %c0_61 = arith.constant 0 : index
    %198 = vector.load %arg14[%c0_60, %c0_61] : memref<8x32xf32, #tpu.memory_space<vmem>>, vector<8x32xf32>
    tpu.vector_store %arg14[%c0_60, %c0_61], %195 {strides = array<i32>} : memref<8x32xf32, #tpu.memory_space<vmem>>, vector<8x32xf32>,
    %c0_62 = arith.constant 0 : index
    %c0_63 = arith.constant 0 : index
    %199 = vector.load %arg15[%c0_62, %c0_63] : memref<8x32xf32, #tpu.memory_space<vmem>>, vector<8x32xf32>
    tpu.vector_store %arg15[%c0_62, %c0_63], %193 {strides = array<i32>} : memref<8x32xf32, #tpu.memory_space<vmem>>, vector<8x32xf32>,
    %c0_64 = arith.constant 0 : index
    %c0_65 = arith.constant 0 : index
    %200 = vector.load %arg17[%c0_64, %c0_65] : memref<64x32xf32, #tpu.memory_space<vmem>>, vector<64x32xf32>
    %c0_66 = arith.constant 0 : index
    %c0_67 = arith.constant 0 : index
    %201 = vector.load %arg18[%c0_66, %c0_67] : memref<64x32xf32, #tpu.memory_space<vmem>>, vector<64x32xf32>
    %c0_68 = arith.constant 0 : index
    %c0_69 = arith.constant 0 : index
    %202 = vector.load %arg11[%c0_68, %c0_69] : memref<1x32xf32, #tpu.memory_space<vmem>>, vector<1x32xf32>
    %c0_70 = arith.constant 0 : index
    %c0_71 = arith.constant 0 : index
    %203 = vector.load %arg12[%c0_70, %c0_71] : memref<1x32xf32, #tpu.memory_space<vmem>>, vector<1x32xf32>
    %204 = vector.broadcast %202 : vector<1x32xf32> to vector<64x32xf32>
    %205 = arith.mulf %201, %204 : vector<64x32xf32>
    %206 = vector.broadcast %203 : vector<1x32xf32> to vector<64x32xf32>
    %207 = arith.mulf %201, %206 : vector<64x32xf32>
    %cst_72 = arith.constant dense<0.000000e+00> : vector<64xf32>
    %208 = vector.multi_reduction <add>, %207, %cst_72 [1] : vector<64x32xf32> to vector<64xf32>
    %209 = vector.shape_cast %208 : vector<64xf32> to vector<64x1xf32>
    %c0_73 = arith.constant 0 : index
    %c0_74 = arith.constant 0 : index
    %210 = vector.load %arg9[%c0_73, %c0_74] : memref<32x256xf32, #tpu.memory_space<vmem>>, vector<32x256xf32>
    %cst_75 = arith.constant dense<0.000000e+00> : vector<64x256xf32>
    %211 = tpu.matmul %200, %210, %cst_75 {dimension_numbers = #tpu.dot_dimension_numbers<[1], [0], [0], [1], [0, 0, 1, 1], [], []>} : vector<64x32xf32>, vector<32x256xf32>, vector<64x256xf32> -> vector<64x256xf32>
    %c0_76 = arith.constant 0 : index
    %c0_77 = arith.constant 0 : index
    %212 = vector.load %arg10[%c0_76, %c0_77] : memref<1x256xf32, #tpu.memory_space<vmem>>, vector<1x256xf32>
    %213 = vector.broadcast %212 : vector<1x256xf32> to vector<64x256xf32>
    %214 = arith.addf %211, %213 : vector<64x256xf32>
    %215 = vector.shape_cast %214 : vector<64x256xf32> to vector<64x8x32xf32>
    %cst_78 = arith.constant dense<0.000000e+00> : vector<64x8xf32>
    %216 = vector.multi_reduction <add>, %215, %cst_78 [2] : vector<64x8x32xf32> to vector<64x8xf32>
    %217 = vector.shape_cast %216 : vector<64x8xf32> to vector<64x8x1xf32>
    %cst_79 = arith.constant 3.200000e+01 : f32
    %218 = vector.broadcast %cst_79 : f32 to vector<64x8x1xf32>
    %219 = arith.divf %217, %218 : vector<64x8x1xf32>
    %220 = vector.broadcast %219 : vector<64x8x1xf32> to vector<64x8x32xf32>
    %221 = arith.subf %215, %220 : vector<64x8x32xf32>
    %222 = arith.mulf %221, %221 : vector<64x8x32xf32>
    %cst_80 = arith.constant dense<0.000000e+00> : vector<64x8xf32>
    %223 = vector.multi_reduction <add>, %222, %cst_80 [2] : vector<64x8x32xf32> to vector<64x8xf32>
    %cst_81 = arith.constant 3.200000e+01 : f32
    %224 = vector.broadcast %cst_81 : f32 to vector<64x8xf32>
    %225 = arith.divf %223, %224 : vector<64x8xf32>
    %cst_82 = arith.constant 9.99999974E-6 : f32
    %226 = vector.broadcast %cst_82 : f32 to vector<64x8xf32>
    %227 = arith.addf %225, %226 : vector<64x8xf32>
    %228 = math.rsqrt %227 : vector<64x8xf32>
    %229 = vector.shape_cast %205 : vector<64x32xf32> to vector<64x1x32xf32>
    %230 = vector.broadcast %229 : vector<64x1x32xf32> to vector<64x8x32xf32>
    %231 = arith.mulf %221, %230 : vector<64x8x32xf32>
    %cst_83 = arith.constant dense<0.000000e+00> : vector<64x8xf32>
    %232 = vector.multi_reduction <add>, %231, %cst_83 [2] : vector<64x8x32xf32> to vector<64x8xf32>
    %233 = arith.mulf %228, %232 : vector<64x8xf32>
    %234 = vector.broadcast %209 : vector<64x1xf32> to vector<64x8xf32>
    %235 = arith.addf %233, %234 : vector<64x8xf32>
    %c0_84 = arith.constant 0 : index
    %c0_85 = arith.constant 0 : index
    %236 = vector.load %arg13[%c0_84, %c0_85] : memref<64x8xf32, #tpu.memory_space<vmem>>, vector<64x8xf32>
    tpu.vector_store %arg13[%c0_84, %c0_85], %235 {strides = array<i32>} : memref<64x8xf32, #tpu.memory_space<vmem>>, vector<64x8xf32>,
    return
  }
  func.func @transform_0(%arg0: i32) -> (i32, i32) {
    %c0_i32 = arith.constant 0 : i32
    %c0_i32_0 = arith.constant 0 : i32
    return %arg0, %c0_i32 : i32, i32
  }
  func.func @transform_1(%arg0: i32) -> (i32, i32) {
    %c0_i32 = arith.constant 0 : i32
    %c0_i32_0 = arith.constant 0 : i32
    %c0_i32_1 = arith.constant 0 : i32
    return %c0_i32, %c0_i32_0 : i32, i32
  }
  func.func @transform_2(%arg0: i32) -> (i32, i32) {
    %c0_i32 = arith.constant 0 : i32
    %c0_i32_0 = arith.constant 0 : i32
    %c0_i32_1 = arith.constant 0 : i32
    return %c0_i32, %c0_i32_0 : i32, i32
  }
  func.func @transform_3(%arg0: i32) -> (i32, i32) {
    %c0_i32 = arith.constant 0 : i32
    %c0_i32_0 = arith.constant 0 : i32
    %c0_i32_1 = arith.constant 0 : i32
    return %c0_i32, %c0_i32_0 : i32, i32
  }
  func.func @transform_4(%arg0: i32) -> (i32, i32) {
    %c0_i32 = arith.constant 0 : i32
    %c0_i32_0 = arith.constant 0 : i32
    %c0_i32_1 = arith.constant 0 : i32
    return %c0_i32, %c0_i32_0 : i32, i32
  }
  func.func @transform_5(%arg0: i32) -> (i32, i32) {
    %c0_i32 = arith.constant 0 : i32
    %c0_i32_0 = arith.constant 0 : i32
    %c0_i32_1 = arith.constant 0 : i32
    return %c0_i32, %c0_i32_0 : i32, i32
  }
  func.func @transform_6(%arg0: i32) -> (i32, i32) {
    %c0_i32 = arith.constant 0 : i32
    %c0_i32_0 = arith.constant 0 : i32
    %c0_i32_1 = arith.constant 0 : i32
    return %c0_i32, %c0_i32_0 : i32, i32
  }
  func.func @transform_7(%arg0: i32) -> (i32, i32) {
    %c0_i32 = arith.constant 0 : i32
    %c0_i32_0 = arith.constant 0 : i32
    %c0_i32_1 = arith.constant 0 : i32
    return %c0_i32, %c0_i32_0 : i32, i32
  }
  func.func @transform_8(%arg0: i32) -> (i32, i32) {
    %c0_i32 = arith.constant 0 : i32
    %c0_i32_0 = arith.constant 0 : i32
    %c0_i32_1 = arith.constant 0 : i32
    return %c0_i32, %c0_i32_0 : i32, i32
  }
  func.func @transform_9(%arg0: i32) -> (i32, i32) {
    %c0_i32 = arith.constant 0 : i32
    %c0_i32_0 = arith.constant 0 : i32
    %c0_i32_1 = arith.constant 0 : i32
    return %c0_i32, %c0_i32_0 : i32, i32
  }
  func.func @transform_10(%arg0: i32) -> (i32, i32) {
    %c0_i32 = arith.constant 0 : i32
    %c0_i32_0 = arith.constant 0 : i32
    %c0_i32_1 = arith.constant 0 : i32
    return %c0_i32, %c0_i32_0 : i32, i32
  }
  func.func @transform_11(%arg0: i32) -> (i32, i32) {
    %c0_i32 = arith.constant 0 : i32
    %c0_i32_0 = arith.constant 0 : i32
    %c0_i32_1 = arith.constant 0 : i32
    return %c0_i32, %c0_i32_0 : i32, i32
  }
  func.func @transform_12(%arg0: i32) -> (i32, i32) {
    %c0_i32 = arith.constant 0 : i32
    %c0_i32_0 = arith.constant 0 : i32
    return %arg0, %c0_i32 : i32, i32
  }
  func.func @transform_13(%arg0: i32) -> (i32, i32) {
    %c0_i32 = arith.constant 0 : i32
    %c0_i32_0 = arith.constant 0 : i32
    %c0_i32_1 = arith.constant 0 : i32
    return %c0_i32, %c0_i32_0 : i32, i32
  }
  func.func @transform_14(%arg0: i32) -> (i32, i32) {
    %c0_i32 = arith.constant 0 : i32
    %c0_i32_0 = arith.constant 0 : i32
    %c0_i32_1 = arith.constant 0 : i32
    return %c0_i32, %c0_i32_0 : i32, i32
  }
}

</mosaic_0001>

<bundles_post_ra>
// kernel: tpu_custom_call.1
= control target key start
LH: loop header
LB: loop body
LE: loop exit
PB: predicated region body
PF: predicated region fallthrough
CT: control target
= control target key end

     0   :  { %20 = vsyncpa [#allocation6], 0  ;;  %s8811_s0 = inlined_call_operand.vmem [shape: f32[64,16], index: 0, kind: input, shape index: {}]   ;;  %s8812_s1 = inlined_call_operand.vmem [shape: f32[8,32], index: 1, kind: input, shape index: {}]   ;;  %s8813_s2 = inlined_call_operand.vmem [shape: f32[8,32], index: 2, kind: input, shape index: {}]   ;;  %s8814_s3 = inlined_call_operand.hbm [shape: f32[16,160], index: 3, kind: input, shape index: {}]   ;;  %s8815_s4 = inlined_call_operand.vmem [shape: f32[1,160], index: 4, kind: input, shape index: {}]   ;;  %s8816_s5 = inlined_call_operand.hbm [shape: f32[32,128], index: 5, kind: input, shape index: {}]   ;;  %s8817_s6 = inlined_call_operand.hbm [shape: f32[32,32], index: 6, kind: input, shape index: {}]   ;;  %s8818_s7 = inlined_call_operand.vmem [shape: f32[1,32], index: 7, kind: input, shape index: {}]   ;;  %s8819_s8 = inlined_call_operand.vmem [shape: f32[32,256], index: 8, kind: input, shape index: {}]   ;;  %s8820_s9 = inlined_call_operand.vmem [shape: f32[1,256], index: 9, kind: input, shape index: {}]   ;;  %s8821_s10 = inlined_call_operand.vmem [shape: f32[1,32], index: 10, kind: input, shape index: {}]   ;;  %s8822_s11 = inlined_call_operand.vmem [shape: f32[1,32], index: 11, kind: input, shape index: {}]   ;;  %s8823_s12 = inlined_call_operand.vmem [shape: f32[64,8], index: 12, kind: output, shape index: {0}]   ;;  %s8824_s13 = inlined_call_operand.hbm [shape: f32[8,32], index: 13, kind: output, shape index: {1}]   ;;  %s8825_s14 = inlined_call_operand.hbm [shape: f32[8,32], index: 14, kind: output, shape index: {2}]  }
   0x1   :  { %21 = vsyncpa [#allocation9], 0 }
   0x2   :  { %22 = vsyncpa [#allocation7], 0  ;;  %s49_s15 = sshll.u32 %s8816_s5, 4  ;;  %s50_s15 = int_to_ptr.hbm [resolvable:$true] %s49_s15 }
   0x3   :  { %23 = vsyncpa [#allocation13], 0  ;;  %s4887_s16 = smov [#allocation8]   ;;  %s34_s20 = sshll.u32 %s8814_s3, 4  ;;  %s35_s20 = int_to_ptr.hbm [resolvable:$true] %s34_s20 }
   0x4   :  { %s51_s17 = sshll.u32 %s4887_s16, 4  ;;  %s4888_s21 = smov 128   ;;  %s52_s17 = int_to_ptr.vmem [resolvable:$true] %s51_s17 }
   0x5   :  { %s4889_s22 = smov 8   ;;  %s4890_s23 = smov [#allocation5]  }
   0x6   :  { %57 = dma.hbm_to_vmem [thread:$0]  %s50_s15, 512, %s52_s17, [#allocation9], %s4888_s21, %s4888_s21, %s4889_s22  }
   0x7   :  { %s36_s24 = sshll.u32 %s4890_s23, 4  ;;  %s4891_s25 = smov 256   ;;  %s37_s24 = int_to_ptr.vmem [resolvable:$true] %s36_s24 }
   0x8   :  { %s4892_s26 = smov 16   ;;  %s62_s28 = sshll.u32 %s8817_s6, 4  ;;  %s63_s28 = int_to_ptr.hbm [resolvable:$true] %s62_s28 }
   0x9   :  { %42 = dma.hbm_to_vmem [thread:$0]  %s35_s20, 512, %s37_s24, [#allocation6], %s4891_s25, %s4891_s25, %s4892_s26  }
   0xa   :  { %s4893_s29 = smov [#allocation10]  }
   0xb   :  { %s64_s30 = sshll.u32 %s4893_s29, 4  ;;  %s65_s30 = int_to_ptr.vmem [resolvable:$true] %s64_s30 }
   0xc   :  { %70 = dma.hbm_to_vmem [thread:$0]  %s63_s28, 512, %s65_s30, [#allocation9], %s4888_s21, %s4888_s21, %s4889_s22  }
   0xd   :  { %4879 = dma.done.wait [#allocation6], 512  }
   0xe   :  { %4880 = vsyncadd [#allocation6], 4294966784 }
   0xf   :  { %4881 = dma.done.wait [#allocation9], 1024  }
  0x10   :  { %4882 = vsyncadd [#allocation9], 4294966272  ;;  %v113_v0 = vld [vmem:[#allocation5 + $0x18] sm:$0xff]  ;;  %v111_v1 = vld [vmem:[#allocation5 + $0x8] sm:$0xff]  ;;  %vm120_vm0 = vcmask 130048   ;;  %vm8865_vm1 = vcmask 261120   ;;  %v345_v43 = vlaneseq }
  0x11   :  { %200 = vmatpush.msra.mxu1 %v113_v0  ;;  %4563 = vmatpush.msra.mxu3 %v113_v0  ;;  %v102_v2 = vld [vmem:[%s8811_s0] sm:$0xff]  ;;  %v4994_v4 = vld [vmem:[#allocation8 + $0x18] sm:$0xff]  ;;  %v4998_v5 = vld [vmem:[#allocation8 + $0x10] sm:$0xff]  ;;  %v4894_v52 = vmov 0.5   ;;  %s4896_s3 = smov 32   ;;  %vm8862_vm5 = vcmask 1047556  }
  0x12   :  { %v106_v3 = vld [vmem:[%s8811_s0 + $0x20] sm:$0xff]  ;;  %v112_v7 = vld [vmem:[#allocation5 + $0x10] sm:$0xff]  ;;  %v5005_v9 = vld [vmem:[#allocation8 + $0x8] sm:$0xff]  ;;  %v5079_v47 = vand.u32 127, %v345_v43  ;;  %s4484_s28 = sshll.u32 %s8824_s13, 4  ;;  %s4495_s30 = sshll.u32 %s8825_s14, 4  ;;  %s4485_s28 = int_to_ptr.hbm [resolvable:$true] %s4484_s28  ;;  %s4496_s30 = int_to_ptr.hbm [resolvable:$true] %s4495_s30 }
  0x13   :  { %201 = vmatpush.msra.mxu1 %v111_v1  ;;  %4564 = vmatpush.msra.mxu3 %v111_v1  ;;  %v97_v6 = vld [vmem:[%s8812_s1] sm:$0xff]  ;;  %v246_v11 = vld [vmem:[#allocation10 + $0x18] sm:$0xff]  ;;  %v103_v12 = vld [vmem:[%s8811_s0 + $0x8] sm:$0xff] }
  0x14   :  { %4521 = vmatmul.msk.f32.vlgmr.msra.gmra.mxu1 %vm120_vm0, %v102_v2  ;;  %4525 = vmatmul.msk.f32.vlgmr.msra.gmra.mxu3 %vm120_vm0, %v106_v3  ;;  %99 = vst.msk [vmem:[#allocation11] sm:$0xff] %vm8865_vm1, %v97_v6  ;;  %v110_v8 = vld [vmem:[#allocation5] sm:$0xff]  ;;  %v107_v13 = vld [vmem:[%s8811_s0 + $0x28] sm:$0xff]  ;;  %v104_v14 = vld [vmem:[%s8811_s0 + $0x10] sm:$0xff]  ;;  %vm347_vm2 = vcmp.ge.s32.totalorder %v5079_v47, 64  ;;  %vm348_vm3 = vcmp.lt.s32.totalorder %v5079_v47, 96 }
  0x15   :  { %370 = vmatpush.msrb.mxu3 %v4994_v4  ;;  %159 = vmatpush.msra.mxu0 %v112_v7  ;;  %v5008_v10 = vld [vmem:[#allocation8] sm:$0xff]  ;;  %v108_v15 = vld [vmem:[%s8811_s0 + $0x30] sm:$0xff]  ;;  %v105_v16 = vld [vmem:[%s8811_s0 + $0x18] sm:$0xff]  ;;  %8867 = vst [vmem:[#allocation19_spill] sm:$0xff] %v5079_v47 }
  0x16   :  { %4561 = vmatpush.msra.mxu2 %v112_v7  ;;  %v109_v17 = vld [vmem:[%s8811_s0 + $0x38] sm:$0xff]  ;;  %v245_v19 = vld [vmem:[#allocation10 + $0x10] sm:$0xff]  ;;  %v244_v20 = vld [vmem:[#allocation10 + $0x8] sm:$0xff] }
  0x17   :  { %371 = vmatpush.msrb.mxu3 %v4998_v5  ;;  %160 = vmatpush.msra.mxu0 %v110_v8  ;;  %v243_v21 = vld [vmem:[#allocation10] sm:$0xff]  ;;  %vm349_vm4 = vmand %vm347_vm2, %vm348_vm3 }
  0x18   :  { %4562 = vmatpush.msra.mxu2 %v110_v8  ;;  %4513 = vmatmul.msk.f32.vlgmr.msra.gmra.mxu0 %vm120_vm0, %v102_v2  ;;  %v114_v22 = vld [vmem:[%s8815_s4] sm:$0x3]  ;;  %v5084_v53 = vsel %vm349_vm4, 1.0, %v4894_v52  ;;  %v5087_v56 = vsel %vm349_vm4, 0.0, %v4894_v52  ;;  %v842_v52 = vld [vmem:[%s8819_s8 + $0x38] sm:$0xff]  ;;  %s4897_s4 = smov 96  }
  0x19   :  { %372 = vmatpush.msrb.mxu3 %v5005_v9  ;;  %4517 = vmatmul.msk.f32.vlgmr.msra.gmra.mxu2 %vm120_vm0, %v106_v3  ;;  %v117_v23 = vperm.slane %v114_v22, 1  ;;  %v100_v35 = vld [vmem:[%s8813_s2] sm:$0xff]  ;;  %v5075_v42 = vperm.slane %v114_v22, 0  ;;  %8868 = vst [vmem:[#allocation20_spill] sm:$0xff] %v5084_v53  ;;  %s4895_s2 = smov 64  }
  0x1a   :  { %288 = vmatpush.msrb.mxu2 %v246_v11  ;;  %101 = vst.msk [vmem:[#allocation12] sm:$0xff] %vm8865_vm1, %v100_v35  ;;  %v4585_v3 = vld [vmem:[%s8818_s7] ss:$0 sm:$0xff]  ;;  %926 = vmatpush.msrb.mxu1 %v842_v52 }
  0x1b   :  { %373 = vmatpush.msrb.mxu3 %v5008_v10  ;;  %v352_v18 = vld [vmem:[#allocation11] sm:$0xff]  ;;  %8866 = vst [vmem:[#allocation18_spill] sm:$0xff] %v5075_v42 }
  0x1c   :  { %4522 = vmatmul.msk.f32.gmra.mxu1 %vm120_vm0, %v103_v12  ;;  %4526 = vmatmul.msk.f32.gmra.mxu3 %vm120_vm0, %v107_v13  ;;  %8869 = vst [vmem:[#allocation21_spill] sm:$0xff] %v5087_v56 }
  0x1d   :  { %424 = vmatpush.msra.mxu3 %v4994_v4  ;;  %289 = vmatpush.msrb.mxu2 %v245_v19 }
  0x1f   :  { %425 = vmatpush.msra.mxu3 %v4998_v5  ;;  %290 = vmatpush.msrb.mxu2 %v244_v20 }
  0x20   :  { %4514 = vmatmul.msk.f32.gmra.mxu0 %vm120_vm0, %v103_v12 }
  0x21   :  { %426 = vmatpush.msra.mxu3 %v5005_v9  ;;  %4518 = vmatmul.msk.f32.gmra.mxu2 %vm120_vm0, %v107_v13  ;;  %v353_v61 = vld [vmem:[#allocation12] sm:$0xff] }
  0x22   :  { %291 = vmatpush.msrb.mxu2 %v243_v21 }
  0x23   :  { %427 = vmatpush.msra.mxu3 %v5008_v10 }
  0x24   :  { %4523 = vmatmul.msk.f32.gmra.mxu1 %vm120_vm0, %v104_v14  ;;  %4527 = vmatmul.msk.f32.gmra.mxu3 %vm120_vm0, %v108_v15 }
  0x28   :  { %4515 = vmatmul.msk.f32.gmra.mxu0 %vm120_vm0, %v104_v14 }
  0x29   :  { %4519 = vmatmul.msk.f32.gmra.mxu2 %vm120_vm0, %v108_v15 }
  0x2c   :  { %4524 = vmatmul.msk.f32.gmra.mxu1 %vm120_vm0, %v105_v16  ;;  %4528 = vmatmul.msk.f32.gmra.mxu3 %vm120_vm0, %v109_v17 }
  0x30   :  { %4516 = vmatmul.msk.f32.gmra.mxu0 %vm120_vm0, %v105_v16 }
  0x31   :  { %4520 = vmatmul.msk.f32.gmra.mxu2 %vm120_vm0, %v109_v17 }
  0x34   :  { %4537 = vmatmul.msk.f32.vlgmr.msrb.gmra.mxu3 %vm8865_vm1, %v352_v18 }
  0x35   :  { %475 = vmatpush.msrb.mxu3 %v4994_v4 }
  0x37   :  { %476 = vmatpush.msrb.mxu3 %v4998_v5 }
  0x39   :  { %477 = vmatpush.msrb.mxu3 %v5005_v9 }
  0x3b   :  { %478 = vmatpush.msrb.mxu3 %v5008_v10 }
  0x91   :  { %v203_v24 = vpop.f32.mrf.mxu1 }
  0x92   :  { %v5056_v25 = vadd.f32 %v203_v24, %v117_v23 }
  0x94   :  { %v235_v26 = vmax.f32 %v5056_v25, 0.0 }
  0x95   :  { %v162_v44 = vpop.f32.mrf.mxu0 }
  0x96   :  { %4529 = vmatmul.msk.f32.vlgmr.msrb.gmra.mxu2 %vm8865_vm1, %v235_v26  ;;  %v163_v46 = vadd.f32 %v162_v44, %v5075_v42 }
  0x97   :  { %v215_v27 = vpop.f32.mrf.mxu3 }
  0x98   :  { %v5073_v41 = vadd.f32 %v215_v27, %v117_v23 }
  0x99   :  { %v206_v28 = vpop.f32.mrf.mxu1 }
  0x9a   :  { %v5060_v29 = vadd.f32 %v206_v28, %v117_v23  ;;  %v239_v45 = vmax.f32 %v5073_v41, 0.0 }
  0x9c   :  { %v236_v30 = vmax.f32 %v5060_v29, 0.0  ;;  %v5098_v63 = vpop.f32.mrf.mxu2 }
  0x9e   :  { %4530 = vmatmul.msk.f32.gmra.mxu2 %vm8865_vm1, %v236_v30 }
  0x9f   :  { %v218_v31 = vpop.f32.mrf.mxu3 }
  0xa0   :  { %v219_v49 = vadd.f32 %v218_v31, %v117_v23 }
  0xa1   :  { %v209_v32 = vpop.f32.mrf.mxu1 }
  0xa2   :  { %v5064_v33 = vadd.f32 %v209_v32, %v117_v23  ;;  %v240_v51 = vmax.f32 %v219_v49, 0.0 }
  0xa4   :  { %v237_v34 = vmax.f32 %v5064_v33, 0.0  ;;  %v5100_v0 = vpop.f32.mrf.mxu2 }
  0xa6   :  { %4531 = vmatmul.msk.f32.gmra.mxu2 %vm8865_vm1, %v237_v34 }
  0xa7   :  { %v221_v36 = vpop.f32.mrf.mxu3 }
  0xa8   :  { %v222_v55 = vadd.f32 %v221_v36, %v117_v23 }
  0xa9   :  { %v212_v37 = vpop.f32.mrf.mxu1 }
  0xaa   :  { %v213_v38 = vadd.f32 %v212_v37, %v117_v23  ;;  %v241_v59 = vmax.f32 %v222_v55, 0.0  ;;  %v840_v55 = vld [vmem:[%s8819_s8 + $0x28] sm:$0xff] }
  0xab   :  { %927 = vmatpush.msrb.mxu1 %v840_v55 }
  0xac   :  { %v238_v39 = vmax.f32 %v213_v38, 0.0  ;;  %v5102_v1 = vpop.f32.mrf.mxu2 }
  0xad   :  { %8870 = vst [vmem:[#allocation22_spill] sm:$0xff] %v5102_v1 }
  0xae   :  { %4532 = vmatmul.msk.f32.gmra.mxu2 %vm8865_vm1, %v238_v39 }
  0xaf   :  { %v224_v40 = vpop.f32.mrf.mxu3 }
  0xb0   :  { %v225_v60 = vadd.f32 %v224_v40, %v117_v23 }
  0xb2   :  { %v242_v62 = vmax.f32 %v225_v60, 0.0  ;;  %v836_v60 = vld [vmem:[%s8819_s8 + $0x8] sm:$0xff] }
  0xb4   :  { %v5104_v2 = vpop.f32.mrf.mxu2 }
  0xb5   :  { %8871 = vst [vmem:[#allocation23_spill] sm:$0xff] %v5104_v2 }
  0xb6   :  { %4533 = vmatmul.msk.f32.gmra.mxu2 %vm8865_vm1, %v239_v45 }
  0xb7   :  { %v375_v48 = vpop.f32.mrf.mxu3 }
  0xb8   :  { %v378_v50 = vadd.f32 %v375_v48, %v163_v46 }
  0xba   :  { %4588 = vtanh.f32 %v378_v50 }
  0xbe   :  { %4534 = vmatmul.msk.f32.gmra.mxu2 %vm8865_vm1, %v240_v51 }
  0xc0   :  { %v4589_v54 = vpop.eup %4588 }
  0xc1   :  { %v380_v57 = vmul.f32 %v4589_v54, %v5084_v53  ;;  %v839_v54 = vld [vmem:[%s8819_s8 + $0x20] sm:$0xff] }
  0xc3   :  { %v5091_v58 = vadd.f32 %v380_v57, %v5087_v56  ;;  %v837_v57 = vld [vmem:[%s8819_s8 + $0x10] sm:$0xff] }
  0xc5   :  { %388 = vrot.lane.b32.xlu0 %v5091_v58, %s4895_s2 }
  0xc6   :  { %4535 = vmatmul.msk.f32.gmra.mxu2 %vm8865_vm1, %v241_v59 }
  0xcd   :  { %383 = vrot.lane.b32.xlu0 %v353_v61, %s4896_s3 }
  0xce   :  { %4536 = vmatmul.msk.f32.gmra.mxu2 %vm8865_vm1, %v242_v62 }
 0x119   :  { %v293_v6 = vpop.f32.mrf.mxu2 }
 0x11a   :  { %v294_v7 = vadd.f32 %v4585_v3, %v293_v6 }
 0x11c   :  { %v317_v8 = vmax.f32 %v294_v7, 0.0 }
 0x11e   :  { %v325_v11 = vadd.f32 %v317_v8, %v235_v26 }
 0x120   :  { %333 = vst.msk [vmem:[#allocation4] sm:$0xff] %vm8865_vm1, %v325_v11 }
 0x121   :  { %v296_v12 = vpop.f32.mrf.mxu2 }
 0x122   :  { %v297_v13 = vadd.f32 %v4585_v3, %v296_v12 }
 0x124   :  { %v318_v14 = vmax.f32 %v297_v13, 0.0 }
 0x126   :  { %v326_v15 = vadd.f32 %v318_v14, %v236_v30 }
 0x128   :  { %334 = vst.msk [vmem:[#allocation4 + $0x8] sm:$0xff] %vm8865_vm1, %v326_v15 }
 0x129   :  { %v299_v16 = vpop.f32.mrf.mxu2 }
 0x12a   :  { %v300_v17 = vadd.f32 %v4585_v3, %v299_v16 }
 0x12c   :  { %v319_v18 = vmax.f32 %v300_v17, 0.0 }
 0x12e   :  { %v327_v19 = vadd.f32 %v319_v18, %v237_v34 }
 0x130   :  { %335 = vst.msk [vmem:[#allocation4 + $0x10] sm:$0xff] %vm8865_vm1, %v327_v19 }
 0x131   :  { %v302_v20 = vpop.f32.mrf.mxu2 }
 0x132   :  { %v303_v21 = vadd.f32 %v4585_v3, %v302_v20 }
 0x134   :  { %v320_v22 = vmax.f32 %v303_v21, 0.0 }
 0x136   :  { %v328_v23 = vadd.f32 %v320_v22, %v238_v39 }
 0x137   :  { %v389_v24 = vpop.permute.xlu0 %388 }
 0x138   :  { %336 = vst.msk [vmem:[#allocation4 + $0x18] sm:$0xff] %vm8865_vm1, %v328_v23  ;;  %v391_v25 = vmul.f32 %v389_v24, %v5091_v58 }
 0x139   :  { %v305_v26 = vpop.f32.mrf.mxu2 }
 0x13a   :  { %v306_v27 = vadd.f32 %v4585_v3, %v305_v26  ;;  %393 = vrot.lane.b32.xlu1 %v391_v25, %s4896_s3 }
 0x13c   :  { %v321_v28 = vmax.f32 %v306_v27, 0.0 }
 0x13e   :  { %v329_v29 = vadd.f32 %v321_v28, %v239_v45 }
 0x13f   :  { %v384_v43 = vpop.permute.xlu0 %383 }
 0x140   :  { %337 = vst.msk [vmem:[#allocation4 + $0x20] sm:$0xff] %vm8865_vm1, %v329_v29  ;;  %v386_v44 = vmul.f32 %v384_v43, %v5091_v58 }
 0x141   :  { %v308_v30 = vpop.f32.mrf.mxu2 }
 0x142   :  { %v309_v31 = vadd.f32 %v4585_v3, %v308_v30 }
 0x144   :  { %v322_v32 = vmax.f32 %v309_v31, 0.0 }
 0x146   :  { %v330_v33 = vadd.f32 %v322_v32, %v240_v51  ;;  %v841_v51 = vld [vmem:[%s8819_s8 + $0x30] sm:$0xff] }
 0x147   :  { %885 = vmatpush.msrb.mxu0 %v841_v51 }
 0x148   :  { %338 = vst.msk [vmem:[#allocation4 + $0x28] sm:$0xff] %vm8865_vm1, %v330_v33 }
 0x149   :  { %v311_v34 = vpop.f32.mrf.mxu2  ;;  %886 = vmatpush.msrb.mxu0 %v839_v54 }
 0x14a   :  { %v312_v35 = vadd.f32 %v4585_v3, %v311_v34 }
 0x14b   :  { %887 = vmatpush.msrb.mxu0 %v837_v57 }
 0x14c   :  { %v323_v36 = vmax.f32 %v312_v35, 0.0 }
 0x14e   :  { %v331_v37 = vadd.f32 %v323_v36, %v241_v59  ;;  %v835_v59 = vld [vmem:[%s8819_s8] sm:$0xff] }
 0x14f   :  { %888 = vmatpush.msrb.mxu0 %v835_v59 }
 0x150   :  { %339 = vst.msk [vmem:[#allocation4 + $0x30] sm:$0xff] %vm8865_vm1, %v331_v37 }
 0x151   :  { %v314_v38 = vpop.f32.mrf.mxu2 }
 0x152   :  { %v315_v39 = vadd.f32 %v4585_v3, %v314_v38  ;;  %v165_v3 = vpop.f32.mrf.mxu0 }
 0x153   :  { %v166_v6 = vadd.f32 %v165_v3, %v5075_v42 }
 0x154   :  { %v324_v40 = vmax.f32 %v315_v39, 0.0 }
 0x156   :  { %v332_v41 = vadd.f32 %v324_v40, %v242_v62 }
 0x158   :  { %340 = vst.msk [vmem:[#allocation4 + $0x38] sm:$0xff] %vm8865_vm1, %v332_v41 }
 0x15a   :  { %v168_v24 = vpop.f32.mrf.mxu0 }
 0x15b   :  { %v169_v25 = vadd.f32 %v168_v24, %v5075_v42 }
 0x162   :  { %v171_v41 = vpop.f32.mrf.mxu0 }
 0x163   :  { %v172_v43 = vadd.f32 %v171_v41, %v5075_v42 }
 0x1ac   :  { %v394_v45 = vpop.permute.xlu1 %393 }
 0x1ad   :  { %v396_v46 = vadd.f32 %v394_v45, %v386_v44 }
 0x1af   :  { %4590 = vtanh.f32 %v396_v46 }
 0x1b5   :  { %v4591_v48 = vpop.eup %4590 }
 0x1b6   :  { %399 = vrot.lane.b32.xlu1 %v4591_v48, %s4895_s2 }
 0x228   :  { %v400_v49 = vpop.permute.xlu1 %399 }
 0x229   :  { %v402_v50 = vmul.f32 %v400_v49, %v5091_v58  ;;  %v838_v58 = vld [vmem:[%s8819_s8 + $0x18] sm:$0xff]  ;;  %s4902_s8 = smov [#allocation11]  }
 0x22a   :  { %928 = vmatpush.msrb.mxu1 %v838_v58  ;;  %s4482_s0 = sshll.u32 %s4902_s8, 4  ;;  %s4483_s0 = int_to_ptr.vmem [resolvable:$true] %s4482_s0 }
 0x22b   :  { %404 = vrot.lane.b32.xlu2 %v402_v50, %s4896_s3 }
 0x22c   :  { %929 = vmatpush.msrb.mxu1 %v836_v60  ;;  %v5195_v60 = vld [vmem:[#allocation4] sm:$0xff] }
 0x285   :  { %v405_v61 = vpop.permute.xlu2 %404 }
 0x286   :  { %407 = vst.msk [vmem:[#allocation3] sm:$0xff] %vm8865_vm1, %v405_v61  ;;  %4538 = vmatmul.msk.f32.vlgmr.msra.gmra.mxu3 %vm8865_vm1, %v405_v61  ;;  %v5200_v61 = vld [vmem:[%s8822_s11] ss:$0 sm:$0xff]  ;;  %s4903_s11 = smov [#allocation12]  }
 0x287   :  { %526 = vmatpush.msra.mxu3 %v4994_v4  ;;  %s4493_s29 = sshll.u32 %s4903_s11, 4  ;;  %s4494_s29 = int_to_ptr.vmem [resolvable:$true] %s4493_s29 }
 0x289   :  { %527 = vmatpush.msra.mxu3 %v4998_v5 }
 0x28b   :  { %528 = vmatpush.msra.mxu3 %v5005_v9 }
 0x28d   :  { %v771_v62 = vld [vmem:[#allocation3] sm:$0xff]  ;;  %529 = vmatpush.msra.mxu3 %v5008_v10 }
 0x28e   :  { %4545 = vmatmul.msk.f32.vlgmr.msrb.gmra.mxu0 %vm8865_vm1, %v771_v62  ;;  %4553 = vmatmul.msk.f32.vlgmr.msrb.gmra.mxu1 %vm8865_vm1, %v771_v62  ;;  %v803_v62 = vmul.f32 %v5200_v61, %v5195_v60 }
 0x290   :  { %v811_v3 = vsel %vm8865_vm1, %v803_v62, 0.0 }
 0x309   :  { %v429_v7 = vpop.f32.mrf.mxu3 }
 0x30a   :  { %v432_v8 = vadd.f32 %v429_v7, %v166_v6  ;;  %v783_v6 = vld [vmem:[#allocation4 + $0x20] sm:$0xff] }
 0x30b   :  { %v807_v7 = vmul.f32 %v5200_v61, %v783_v6 }
 0x30c   :  { %4592 = vtanh.f32 %v432_v8 }
 0x30d   :  { %v823_v8 = vsel %vm8865_vm1, %v807_v7, 0.0 }
 0x312   :  { %v4593_v11 = vpop.eup %4592 }
 0x313   :  { %v434_v12 = vmul.f32 %v4593_v11, %v5084_v53 }
 0x315   :  { %v435_v13 = vadd.f32 %v434_v12, %v5087_v56 }
 0x317   :  { %438 = vrot.lane.b32.xlu2 %v435_v13, %s4895_s2  ;;  %v436_v16 = vmul.f32 %v435_v13, %v396_v46 }
 0x371   :  { %v439_v14 = vpop.permute.xlu2 %438 }
 0x372   :  { %v441_v15 = vmul.f32 %v439_v14, %v435_v13 }
 0x374   :  { %443 = vrot.lane.b32.xlu0 %v441_v15, %s4896_s3 }
 0x3e6   :  { %v444_v17 = vpop.permute.xlu0 %443 }
 0x3e7   :  { %v446_v18 = vadd.f32 %v444_v17, %v436_v16 }
 0x3e9   :  { %4594 = vtanh.f32 %v446_v18 }
 0x3ef   :  { %v4595_v19 = vpop.eup %4594 }
 0x3f0   :  { %449 = vrot.lane.b32.xlu1 %v4595_v19, %s4895_s2  ;;  %v780_v19 = vld [vmem:[#allocation4 + $0x8] sm:$0xff] }
 0x462   :  { %v450_v20 = vpop.permute.xlu1 %449 }
 0x463   :  { %v452_v21 = vmul.f32 %v450_v20, %v435_v13  ;;  %v175_v13 = vadd.f32 %v5098_v63, %v5075_v42  ;;  %v804_v20 = vmul.f32 %v5200_v61, %v780_v19 }
 0x465   :  { %454 = vrot.lane.b32.xlu2 %v452_v21, %s4896_s3  ;;  %v782_v21 = vld [vmem:[#allocation4 + $0x18] sm:$0xff] }
 0x466   :  { %v806_v63 = vmul.f32 %v5200_v61, %v782_v21 }
 0x4bf   :  { %v455_v22 = vpop.permute.xlu2 %454 }
 0x4c0   :  { %458 = vst.msk [vmem:[#allocation3 + $0x8] sm:$0xff] %vm8865_vm1, %v455_v22  ;;  %4539 = vmatmul.msk.f32.vlgmr.msrb.gmra.mxu3 %vm8865_vm1, %v455_v22  ;;  %v814_v22 = vsel %vm8865_vm1, %v804_v20, 0.0 }
 0x4c1   :  { %577 = vmatpush.msrb.mxu3 %v4994_v4 }
 0x4c3   :  { %578 = vmatpush.msrb.mxu3 %v4998_v5 }
 0x4c5   :  { %579 = vmatpush.msrb.mxu3 %v5005_v9 }
 0x4c7   :  { %v772_v23 = vld [vmem:[#allocation3 + $0x8] sm:$0xff]  ;;  %580 = vmatpush.msrb.mxu3 %v5008_v10 }
 0x4c8   :  { %4546 = vmatmul.msk.f32.gmra.mxu0 %vm8865_vm1, %v772_v23  ;;  %4554 = vmatmul.msk.f32.gmra.mxu1 %vm8865_vm1, %v772_v23  ;;  %v820_v23 = vsel %vm8865_vm1, %v806_v63, 0.0 }
 0x543   :  { %v480_v26 = vpop.f32.mrf.mxu3 }
 0x544   :  { %v483_v27 = vadd.f32 %v480_v26, %v169_v25  ;;  %v781_v26 = vld [vmem:[#allocation4 + $0x10] sm:$0xff] }
 0x546   :  { %4596 = vtanh.f32 %v483_v27  ;;  %v805_v27 = vmul.f32 %v5200_v61, %v781_v26 }
 0x54c   :  { %v4597_v28 = vpop.eup %4596 }
 0x54d   :  { %v485_v29 = vmul.f32 %v4597_v28, %v5084_v53  ;;  %v817_v28 = vsel %vm8865_vm1, %v805_v27, 0.0 }
 0x54f   :  { %v486_v30 = vadd.f32 %v485_v29, %v5087_v56  ;;  %v785_v29 = vld [vmem:[#allocation4 + $0x30] sm:$0xff] }
 0x551   :  { %489 = vrot.lane.b32.xlu0 %v486_v30, %s4895_s2  ;;  %v487_v33 = vmul.f32 %v486_v30, %v446_v18 }
 0x5c3   :  { %v490_v31 = vpop.permute.xlu0 %489 }
 0x5c4   :  { %v492_v32 = vmul.f32 %v490_v31, %v486_v30  ;;  %v890_v31 = vpop.f32.mrf.mxu0 }
 0x5c6   :  { %494 = vrot.lane.b32.xlu1 %v492_v32, %s4896_s3 }
 0x638   :  { %v495_v34 = vpop.permute.xlu1 %494 }
 0x639   :  { %v497_v35 = vadd.f32 %v495_v34, %v487_v33  ;;  %v893_v33 = vpop.f32.mrf.mxu0  ;;  %v843_v34 = vld [vmem:[%s8820_s9] sm:$0x3] }
 0x63b   :  { %4598 = vtanh.f32 %v497_v35 }
 0x641   :  { %v4599_v36 = vpop.eup %4598 }
 0x642   :  { %500 = vrot.lane.b32.xlu2 %v4599_v36, %s4895_s2  ;;  %v5236_v36 = vperm.slane %v843_v34, 0 }
 0x644   :  { %8872 = vst [vmem:[#allocation24_spill] sm:$0xff] %v5236_v36 }
 0x69c   :  { %v501_v37 = vpop.permute.xlu2 %500 }
 0x69d   :  { %v503_v38 = vmul.f32 %v501_v37, %v486_v30  ;;  %v809_v30 = vmul.f32 %v5200_v61, %v785_v29  ;;  %v5239_v37 = vadd.f32 %v893_v33, %v5236_v36 }
 0x69f   :  { %505 = vrot.lane.b32.xlu0 %v503_v38, %s4896_s3  ;;  %v829_v32 = vsel %vm8865_vm1, %v809_v30, 0.0 }
 0x711   :  { %v506_v39 = vpop.permute.xlu0 %505 }
 0x712   :  { %509 = vst.msk [vmem:[#allocation3 + $0x10] sm:$0xff] %vm8865_vm1, %v506_v39  ;;  %4540 = vmatmul.msk.f32.vlgmr.msra.gmra.mxu3 %vm8865_vm1, %v506_v39 }
 0x713   :  { %628 = vmatpush.msra.mxu3 %v4994_v4 }
 0x715   :  { %629 = vmatpush.msra.mxu3 %v4998_v5 }
 0x717   :  { %630 = vmatpush.msra.mxu3 %v5005_v9 }
 0x719   :  { %v773_v40 = vld [vmem:[#allocation3 + $0x10] sm:$0xff]  ;;  %631 = vmatpush.msra.mxu3 %v5008_v10 }
 0x71a   :  { %4547 = vmatmul.msk.f32.gmra.mxu0 %vm8865_vm1, %v773_v40  ;;  %4555 = vmatmul.msk.f32.gmra.mxu1 %vm8865_vm1, %v773_v40  ;;  %v931_v40 = vpop.f32.mrf.mxu1 }
 0x722   :  { %v934_v41 = vpop.f32.mrf.mxu1 }
 0x795   :  { %v531_v44 = vpop.f32.mrf.mxu3 }
 0x796   :  { %v534_v45 = vadd.f32 %v531_v44, %v172_v43  ;;  %v5255_v44 = vperm.slane %v843_v34, 1 }
 0x798   :  { %4600 = vtanh.f32 %v534_v45  ;;  %8873 = vst [vmem:[#allocation25_spill] sm:$0xff] %v5255_v44  ;;  %v937_v45 = vpop.f32.mrf.mxu1 }
 0x79e   :  { %v4601_v46 = vpop.eup %4600 }
 0x79f   :  { %v536_v48 = vmul.f32 %v4601_v46, %v5084_v53  ;;  %v5258_v46 = vadd.f32 %v931_v40, %v5255_v44 }
 0x7a1   :  { %v537_v49 = vadd.f32 %v536_v48, %v5087_v56 }
 0x7a3   :  { %540 = vrot.lane.b32.xlu1 %v537_v49, %s4895_s2  ;;  %v538_v52 = vmul.f32 %v537_v49, %v497_v35  ;;  %v896_v35 = vpop.f32.mrf.mxu0 }
 0x7a4   :  { %v5251_v43 = vadd.f32 %v896_v35, %v5236_v36  ;;  %v1142_v35 = vrot.slane %v5258_v46, 4 }
 0x815   :  { %v541_v50 = vpop.permute.xlu1 %540 }
 0x816   :  { %v543_v51 = vmul.f32 %v541_v50, %v537_v49 }
 0x818   :  { %545 = vrot.lane.b32.xlu2 %v543_v51, %s4896_s3 }
 0x872   :  { %v546_v54 = vpop.permute.xlu2 %545 }
 0x873   :  { %v5190_v55 = vadd.f32 %v546_v54, %v538_v52  ;;  %v5272_v54 = vadd.f32 %v934_v41, %v5255_v44 }
 0x875   :  { %4602 = vtanh.f32 %v5190_v55 }
 0x87b   :  { %v4603_v57 = vpop.eup %4602 }
 0x87c   :  { %551 = vrot.lane.b32.xlu0 %v4603_v57, %s4895_s2 }
 0x8ee   :  { %v552_v58 = vpop.permute.xlu0 %551 }
 0x8ef   :  { %v554_v59 = vmul.f32 %v552_v58, %v537_v49  ;;  %v5278_v58 = vadd.f32 %v937_v45, %v5255_v44  ;;  %v1342_v45 = vrot.slane %v5251_v43, 4 }
 0x8f1   :  { %556 = vrot.lane.b32.xlu1 %v554_v59, %s4896_s3 }
 0x91b   :  { %812 = vadd.xlane.f32.xlu1 %v811_v3  ;;  %v5288_v3 = vadd.f32 %v890_v31, %v5236_v36 }
 0x91d   :  { %v1118_v34 = vrot.slane %v5288_v3, 4 }
 0x923   :  { %824 = vadd.xlane.f32.xlu1 %v823_v8 }
 0x963   :  { %v557_v11 = vpop.permute.xlu1 %556 }
 0x964   :  { %560 = vst.msk [vmem:[#allocation3 + $0x18] sm:$0xff] %vm8865_vm1, %v557_v11  ;;  %4541 = vmatmul.msk.f32.vlgmr.msrb.gmra.mxu3 %vm8865_vm1, %v557_v11 }
 0x965   :  { %679 = vmatpush.msrb.mxu3 %v4994_v4 }
 0x967   :  { %680 = vmatpush.msrb.mxu3 %v4998_v5 }
 0x969   :  { %681 = vmatpush.msrb.mxu3 %v5005_v9 }
 0x96b   :  { %v774_v12 = vld [vmem:[#allocation3 + $0x18] sm:$0xff]  ;;  %682 = vmatpush.msrb.mxu3 %v5008_v10 }
 0x96c   :  { %4548 = vmatmul.msk.f32.gmra.mxu0 %vm8865_vm1, %v774_v12  ;;  %4556 = vmatmul.msk.f32.gmra.mxu1 %vm8865_vm1, %v774_v12  ;;  %v784_v12 = vld [vmem:[#allocation4 + $0x28] sm:$0xff] }
 0x98e   :  { %v5296_v6 = vpop.xlane.xlu1 %812 }
 0x98f   :  { %8875 = vst [vmem:[#allocation27_spill] sm:$0xff] %v5296_v6 }
 0x996   :  { %v5300_v7 = vpop.xlane.xlu1 %824 }
 0x997   :  { %8876 = vst [vmem:[#allocation28_spill] sm:$0xff] %v5300_v7 }
 0x9e7   :  { %v582_v14 = vpop.f32.mrf.mxu3 }
 0x9e8   :  { %v585_v15 = vadd.f32 %v582_v14, %v175_v13  ;;  %v808_v13 = vmul.f32 %v5200_v61, %v784_v12 }
 0x9e9   :  { %v899_v38 = vpop.f32.mrf.mxu0  ;;  %v940_v48 = vpop.f32.mrf.mxu1 }
 0x9ea   :  { %4604 = vtanh.f32 %v585_v15  ;;  %v5244_v39 = vadd.f32 %v899_v38, %v5236_v36  ;;  %v5263_v49 = vadd.f32 %v940_v48, %v5255_v44  ;;  %v826_v14 = vsel %vm8865_vm1, %v808_v13, 0.0 }
 0x9ec   :  { %v1454_v41 = vrot.slane %v5244_v39, 4 }
 0x9f0   :  { %v4605_v16 = vpop.eup %4604 }
 0x9f1   :  { %v587_v17 = vmul.f32 %v4605_v16, %v5084_v53 }
 0x9f3   :  { %v5219_v18 = vadd.f32 %v587_v17, %v5087_v56 }
 0x9f5   :  { %591 = vrot.lane.b32.xlu2 %v5219_v18, %s4895_s2  ;;  %v589_v50 = vmul.f32 %v5219_v18, %v5190_v55  ;;  %v786_v55 = vld [vmem:[#allocation4 + $0x38] sm:$0xff] }
 0x9f6   :  { %v810_v59 = vmul.f32 %v5200_v61, %v786_v55 }
 0x9f8   :  { %v832_v62 = vsel %vm8865_vm1, %v810_v59, 0.0 }
 0xa1e   :  { %815 = vadd.xlane.f32.xlu2 %v814_v22 }
 0xa26   :  { %821 = vadd.xlane.f32.xlu2 %v820_v23 }
 0xa4f   :  { %v592_v24 = vpop.permute.xlu2 %591 }
 0xa50   :  { %v594_v25 = vmul.f32 %v592_v24, %v5219_v18 }
 0xa52   :  { %596 = vrot.lane.b32.xlu0 %v594_v25, %s4896_s3 }
 0xa7c   :  { %818 = vadd.xlane.f32.xlu0 %v817_v28 }
 0xa84   :  { %830 = vadd.xlane.f32.xlu0 %v829_v32  ;;  %v4898_v32 = vmov 1983009808  }
 0xa85   :  { %v1121_v33 = vunpack.c.l.s4 %v4898_v32 }
 0xa87   :  { %v5376_v13 = vunpack.c.0.s8 %v1121_v33 }
 0xa89   :  { %8883 = vst [vmem:[#allocation35_spill] sm:$0xff] %v5376_v13 }
 0xa91   :  { %v5314_v15 = vpop.xlane.xlu2 %815 }
 0xa92   :  { %8877 = vst [vmem:[#allocation29_spill] sm:$0xff] %v5314_v15 }
 0xa98   :  { %965 = vrot.lane.b32.xlu0 %v5239_v37, %s4897_s4 }
 0xa99   :  { %v5320_v16 = vpop.xlane.xlu2 %821 }
 0xa9a   :  { %8878 = vst [vmem:[#allocation30_spill] sm:$0xff] %v5320_v16 }
 0xaa0   :  { %969 = vrot.lane.b32.xlu0 %v5244_v39, %s4897_s4 }
 0xaa8   :  { %989 = vrot.lane.b32.xlu0 %v5239_v37, %s4895_s2 }
 0xab0   :  { %1015 = vrot.lane.b32.xlu0 %v5251_v43, %s4896_s3 }
 0xab8   :  { %1043 = vrot.lane.b32.xlu0 %v5258_v46, %s4897_s4 }
 0xac0   :  { %1049 = vrot.lane.b32.xlu0 %v5263_v49, %s4897_s4 }
 0xac4   :  { %v597_v51 = vpop.permute.xlu0 %596 }
 0xac5   :  { %v5269_v52 = vadd.f32 %v597_v51, %v589_v50 }
 0xac7   :  { %8874 = vst [vmem:[#allocation26_spill] sm:$0xff] %v5269_v52  ;;  %4606 = vtanh.f32 %v5269_v52 }
 0xac8   :  { %1069 = vrot.lane.b32.xlu0 %v5272_v54, %s4895_s2 }
 0xacd   :  { %v4607_v57 = vpop.eup %4606 }
 0xace   :  { %602 = vrot.lane.b32.xlu1 %v4607_v57, %s4895_s2 }
 0xad0   :  { %1095 = vrot.lane.b32.xlu0 %v5278_v58, %s4896_s3 }
 0xaf8   :  { %833 = vadd.xlane.f32.xlu1 %v832_v62 }
 0xb11   :  { %967 = vrot.lane.b32.xlu1 %v5251_v43, %s4897_s4 }
 0xb19   :  { %987 = vrot.lane.b32.xlu1 %v5288_v3, %s4895_s2 }
 0xb21   :  { %993 = vrot.lane.b32.xlu1 %v5244_v39, %s4895_s2 }
 0xb29   :  { %1013 = vrot.lane.b32.xlu1 %v5239_v37, %s4896_s3 }
 0xb31   :  { %1047 = vrot.lane.b32.xlu1 %v5278_v58, %s4897_s4 }
 0xb39   :  { %1067 = vrot.lane.b32.xlu1 %v5258_v46, %s4895_s2 }
 0xb40   :  { %v603_v8 = vpop.permute.xlu1 %602 }
 0xb41   :  { %v605_v11 = vmul.f32 %v603_v8, %v5219_v18  ;;  %1073 = vrot.lane.b32.xlu1 %v5263_v49, %s4895_s2  ;;  %v5334_v18 = vpop.xlane.xlu0 %818 }
 0xb42   :  { %8879 = vst [vmem:[#allocation31_spill] sm:$0xff] %v5334_v18 }
 0xb43   :  { %607 = vrot.lane.b32.xlu2 %v605_v11, %s4896_s3  ;;  %v1478_v11 = vrot.slane %v5263_v49, 4 }
 0xb49   :  { %1093 = vrot.lane.b32.xlu1 %v5272_v54, %s4896_s3 }
 0xb6c   :  { %827 = vadd.xlane.f32.xlu2 %v826_v14 }
 0xb84   :  { %963 = vrot.lane.b32.xlu2 %v5288_v3, %s4897_s4 }
 0xb8c   :  { %991 = vrot.lane.b32.xlu2 %v5251_v43, %s4895_s2 }
 0xb94   :  { %1011 = vrot.lane.b32.xlu2 %v5288_v3, %s4896_s3 }
 0xb9c   :  { %1017 = vrot.lane.b32.xlu2 %v5244_v39, %s4896_s3 }
 0xb9d   :  { %v608_v61 = vpop.permute.xlu2 %607 }
 0xb9e   :  { %611 = vst.msk [vmem:[#allocation3 + $0x20] sm:$0xff] %vm8865_vm1, %v608_v61  ;;  %4542 = vmatmul.msk.f32.vlgmr.msra.gmra.mxu3 %vm8865_vm1, %v608_v61 }
 0xb9f   :  { %730 = vmatpush.msra.mxu3 %v4994_v4  ;;  %v5338_v4 = vpop.xlane.xlu0 %830 }
 0xba0   :  { %8880 = vst [vmem:[#allocation32_spill] sm:$0xff] %v5338_v4 }
 0xba1   :  { %731 = vmatpush.msra.mxu3 %v4998_v5 }
 0xba3   :  { %732 = vmatpush.msra.mxu3 %v5005_v9 }
 0xba4   :  { %1045 = vrot.lane.b32.xlu2 %v5272_v54, %s4897_s4 }
 0xba5   :  { %v775_v17 = vld [vmem:[#allocation3 + $0x20] sm:$0xff]  ;;  %733 = vmatpush.msra.mxu3 %v5008_v10  ;;  %v5348_v10 = vpop.xlane.xlu1 %833 }
 0xba6   :  { %4549 = vmatmul.msk.f32.gmra.mxu0 %vm8865_vm1, %v775_v17  ;;  %4557 = vmatmul.msk.f32.gmra.mxu1 %vm8865_vm1, %v775_v17  ;;  %8881 = vst [vmem:[#allocation33_spill] sm:$0xff] %v5348_v10  ;;  %v4899_v10 = vmov 1934713408  }
 0xba7   :  { %v5342_v5 = vpop.permute.xlu0 %965  ;;  %v1169_v47 = vunpack.c.l.s4 %v4899_v10 }
 0xbac   :  { %1071 = vrot.lane.b32.xlu2 %v5278_v58, %s4895_s2 }
 0xbad   :  { %v968_v19 = vpop.permute.xlu1 %967 }
 0xbae   :  { %v1354_v57 = vrot.slane %v968_v19, 4 }
 0xbaf   :  { %v5346_v9 = vpop.permute.xlu0 %969 }
 0xbb4   :  { %1091 = vrot.lane.b32.xlu2 %v5258_v46, %s4896_s3 }
 0xbb5   :  { %v988_v21 = vpop.permute.xlu1 %987 }
 0xbb6   :  { %v1115_v62 = vrot.slane %v988_v21, 4 }
 0xbb7   :  { %v5350_v20 = vpop.permute.xlu0 %989 }
 0xbb8   :  { %v1117_v12 = vsel %vm8862_vm5, %v1115_v62, %v5288_v3 }
 0xbbc   :  { %1097 = vrot.lane.b32.xlu2 %v5263_v49, %s4896_s3 }
 0xbbd   :  { %v994_v23 = vpop.permute.xlu1 %993 }
 0xbbe   :  { %v1452_v8 = vrot.slane %v994_v23, 4 }
 0xbbf   :  { %v1016_v22 = vpop.permute.xlu0 %1015 }
 0xbc0   :  { %v1352_v40 = vrot.slane %v1016_v22, 4 }
 0xbc2   :  { %v1353_v59 = vsel %vm8862_vm5, %v1352_v40, %v968_v19  ;;  %v1355_v19 = vsel %vm8862_vm5, %v1016_v22, %v1354_v57 }
 0xbc3   :  { %v1359_v40 = vperm.slane %v1353_v59, %v5376_v13 }
 0xbc5   :  { %v5358_v26 = vpop.permute.xlu1 %1013  ;;  %v1388_v59 = vrot.slane %v1359_v40, 4 }
 0xbc7   :  { %v5354_v24 = vpop.permute.xlu0 %1043 }
 0xbcd   :  { %v1048_v29 = vpop.permute.xlu1 %1047 }
 0xbce   :  { %v1378_v14 = vrot.slane %v1048_v29, 4 }
 0xbcf   :  { %v5360_v27 = vpop.permute.xlu0 %1049 }
 0xbd5   :  { %v1068_v38 = vpop.permute.xlu1 %1067 }
 0xbd6   :  { %v1140_v57 = vrot.slane %v1068_v38, 4  ;;  %v1143_v3 = vsel %vm8862_vm5, %v1068_v38, %v1142_v35 }
 0xbd7   :  { %v5362_v30 = vpop.permute.xlu0 %1069 }
 0xbd8   :  { %v1141_v62 = vsel %vm8862_vm5, %v1140_v57, %v5258_v46 }
 0xbdf   :  { %v5352_v63 = vpop.xlane.xlu2 %827  ;;  %v1096_v51 = vpop.permute.xlu0 %1095 }
 0xbe0   :  { %8882 = vst [vmem:[#allocation34_spill] sm:$0xff] %v5352_v63  ;;  %v1376_v50 = vrot.slane %v1096_v51, 4  ;;  %v1119_v63 = vsel %vm8862_vm5, %v988_v21, %v1118_v34  ;;  %v1379_v22 = vsel %vm8862_vm5, %v1096_v51, %v1378_v14  ;;  %v1363_v34 = vperm.slane %v1355_v19, %v5376_v13 }
 0xbe1   :  { %v5410_v51 = vunpack.c.0.s8 %v1169_v47  ;;  %v1387_v35 = vperm.slane %v1379_v22, %v5376_v13  ;;  %v5428_v22 = vperm.slane %v1141_v62, %v5376_v13 }
 0xbe2   :  { %v1377_v10 = vsel %vm8862_vm5, %v1376_v50, %v1048_v29  ;;  %v1074_v50 = vpop.permute.xlu1 %1073 }
 0xbe3   :  { %8884 = vst [vmem:[#allocation36_spill] sm:$0xff] %v5410_v51  ;;  %v1476_v19 = vrot.slane %v1074_v50, 4  ;;  %v1424_v17 = vrot.slane %v1387_v35, 4 }
 0xbe7   :  { %v5356_v25 = vpop.permute.xlu2 %963 }
 0xbef   :  { %v992_v28 = vpop.permute.xlu2 %991 }
 0xbf0   :  { %v1340_v55 = vrot.slane %v992_v28, 4  ;;  %v1343_v61 = vsel %vm8862_vm5, %v992_v28, %v1342_v45  ;;  %v1453_v28 = vsel %vm8862_vm5, %v1452_v8, %v5244_v39  ;;  %v1455_v45 = vsel %vm8862_vm5, %v994_v23, %v1454_v41 }
 0xbf1   :  { %v1351_v32 = vperm.slane %v1343_v61, %v5376_v13  ;;  %v1123_v23 = vperm.slane %v1117_v12, %v5376_v13  ;;  %v5405_v29 = vperm.slane %v1453_v28, %v5376_v13  ;;  %v5408_v41 = vperm.slane %v1455_v45, %v5376_v13 }
 0xbf2   :  { %v1341_v33 = vsel %vm8862_vm5, %v1340_v55, %v5251_v43  ;;  %v5397_v43 = vperm.slane %v1119_v63, %v5376_v13  ;;  %v1383_v63 = vperm.slane %v1377_v10, %v5376_v13  ;;  %v5417_v8 = vperm.slane %v1143_v3, %v5376_v13 }
 0xbf3   :  { %v1347_v39 = vperm.slane %v1341_v33, %v5376_v13  ;;  %v1402_v38 = vrot.slane %v1351_v32, 4  ;;  %v1130_v12 = vrot.slane %v5356_v25, 4  ;;  %v1400_v61 = vrot.slane %v1363_v34, 4 }
 0xbf4   :  { %v1178_v47 = vrot.slane %v5397_v43, 4  ;;  %v1166_v28 = vrot.slane %v1123_v23, 4  ;;  %v1412_v3 = vrot.slane %v1383_v63, 4  ;;  %v1202_v4 = vrot.slane %v5417_v8, 4 }
 0xbf5   :  { %v1390_v33 = vrot.slane %v1347_v39, 4  ;;  %v1479_v45 = vsel %vm8862_vm5, %v1074_v50, %v1478_v11  ;;  %v1477_v10 = vsel %vm8862_vm5, %v1476_v19, %v5263_v49  ;;  %v1190_v49 = vrot.slane %v5428_v22, 4 }
 0xbf6   :  { %v5451_v50 = vperm.slane %v1479_v45, %v5376_v13  ;;  %v8890_v2 = vrot.slane %v5408_v41, 4 }
 0xbf7   :  { %v5364_v31 = vpop.permute.xlu2 %1011  ;;  %v1391_v62 = vsel %vm8862_vm5, %v1359_v40, %v1390_v33 }
 0xbf8   :  { %v1128_v21 = vrot.slane %v5364_v31, 4  ;;  %v1131_v46 = vsel %vm8862_vm5, %v5364_v31, %v1130_v12  ;;  %v5460_v19 = vperm.slane %v1391_v62, %v5410_v51  ;;  %v1538_v15 = vrot.slane %v5451_v50, 4 }
 0xbf9   :  { %v1139_v31 = vperm.slane %v1131_v46, %v5376_v13 }
 0xbfa   :  { %v1129_v14 = vsel %vm8862_vm5, %v1128_v21, %v5356_v25  ;;  %v1389_v25 = vsel %vm8862_vm5, %v1388_v59, %v1347_v39  ;;  %v1403_v21 = vsel %vm8862_vm5, %v1363_v34, %v1402_v38  ;;  %v8885_v39 = vrot.slane %v5278_v58, 4 }
 0xbfb   :  { %v1135_v57 = vperm.slane %v1129_v14, %v5376_v13  ;;  %v1401_v14 = vsel %vm8862_vm5, %v1400_v61, %v1351_v32  ;;  %v5444_v59 = vperm.slane %v1389_v25, %v5410_v51  ;;  %v5447_v11 = vperm.slane %v1403_v21, %v5410_v51 }
 0xbfc   :  { %v5455_v32 = vperm.slane %v1477_v10, %v5376_v13  ;;  %v5463_v33 = vperm.slane %v1401_v14, %v5410_v51  ;;  %v1179_v21 = vsel %vm8862_vm5, %v1139_v31, %v1178_v47 }
 0xbfd   :  { %v1164_v38 = vrot.slane %v1135_v57, 4  ;;  %v5478_v16 = vperm.slane %v1179_v21, %v5410_v51 }
 0xbff   :  { %v5370_v48 = vpop.permute.xlu2 %1017  ;;  %v1165_v62 = vsel %vm8862_vm5, %v1164_v38, %v1123_v23  ;;  %v8886_v23 = vrot.slane %v5346_v9, 4 }
 0xc00   :  { %v1464_v46 = vrot.slane %v5370_v48, 4 }
 0xc01   :  { %v1467_v38 = vsel %vm8862_vm5, %v5370_v48, %v8886_v23 }
 0xc07   :  { %v5401_v55 = vpop.permute.xlu2 %1045 }
 0xc0f   :  { %v1072_v12 = vpop.permute.xlu2 %1071 }
 0xc10   :  { %v1364_v18 = vrot.slane %v1072_v12, 4  ;;  %v1367_v34 = vsel %vm8862_vm5, %v1072_v12, %v8885_v39  ;;  %v1176_v12 = vrot.slane %v1139_v31, 4  ;;  %v1438_v39 = vrot.slane %v5444_v59, 4 }
 0xc11   :  { %v1375_v40 = vperm.slane %v1367_v34, %v5376_v13  ;;  %v1465_v31 = vsel %vm8862_vm5, %v1464_v46, %v5346_v9 }
 0xc12   :  { %v1365_v61 = vsel %vm8862_vm5, %v1364_v18, %v5278_v58  ;;  %v1450_v58 = vrot.slane %v5447_v11, 4  ;;  %v1177_v46 = vsel %vm8862_vm5, %v1176_v12, %v5397_v43 }
 0xc13   :  { %v1371_v45 = vperm.slane %v1365_v61, %v5376_v13  ;;  %v1426_v25 = vrot.slane %v1375_v40, 4  ;;  %v1425_v10 = vsel %vm8862_vm5, %v1424_v17, %v1375_v40  ;;  %v1167_v61 = vsel %vm8862_vm5, %v1135_v57, %v1166_v28 }
 0xc14   :  { %v5473_v14 = vperm.slane %v1425_v10, %v5410_v51  ;;  %v1471_v10 = vperm.slane %v1465_v31, %v5376_v13 }
 0xc15   :  { %v1414_v18 = vrot.slane %v1371_v45, 4  ;;  %v1413_v34 = vsel %vm8862_vm5, %v1412_v3, %v1371_v45  ;;  %v1427_v17 = vsel %vm8862_vm5, %v1387_v35, %v1426_v25  ;;  %v8887_v45 = vrot.slane %v5354_v24, 4 }
 0xc16   :  { %v5481_v47 = vperm.slane %v1413_v34, %v5410_v51  ;;  %v1444_v28 = vrot.slane %v5473_v14, 4  ;;  %v1171_v35 = vperm.slane %v1165_v62, %v5410_v51  ;;  %v5508_v25 = vperm.slane %v1427_v17, %v5410_v51 }
 0xc17   :  { %v1092_v40 = vpop.permute.xlu2 %1091  ;;  %v1415_v3 = vsel %vm8862_vm5, %v1383_v63, %v1414_v18  ;;  %v1475_v18 = vperm.slane %v1467_v38, %v5376_v13  ;;  %v5524_v17 = vperm.slane %v1167_v61, %v5410_v51  ;;  %v1226_v38 = vrot.slane %v5478_v16, 4 }
 0xc18   :  { %v1152_v57 = vrot.slane %v1092_v40, 4  ;;  %v1155_v21 = vsel %vm8862_vm5, %v1092_v40, %v8887_v45  ;;  %v5501_v48 = vsel %vm8862_vm5, %v5481_v47, %v1438_v39  ;;  %v5505_v63 = vsel %vm8862_vm5, %v1444_v28, %v5463_v33 }
 0xc19   :  { %v1163_v9 = vperm.slane %v1155_v21, %v5376_v13  ;;  %v5515_v12 = vperm.slane %v1415_v3, %v5410_v51  ;;  %v5521_v23 = vsel %vm8862_vm5, %v5508_v25, %v1450_v58  ;;  %v1183_v28 = vperm.slane %v1177_v46, %v5410_v51 }
 0xc1a   :  { %v1153_v43 = vsel %vm8862_vm5, %v1152_v57, %v5354_v24  ;;  %v1442_v24 = vrot.slane %v5460_v19, 4  ;;  %v1512_v57 = vrot.slane %v1475_v18, 4  ;;  %v1214_v45 = vrot.slane %v1171_v35, 4 }
 0xc1b   :  { %v1159_v39 = vperm.slane %v1153_v43, %v5376_v13  ;;  %v1200_v62 = vrot.slane %v1163_v9, 4  ;;  %v1203_v34 = vsel %vm8862_vm5, %v1163_v9, %v1202_v4  ;;  %v1500_v21 = vrot.slane %v1471_v10, 4 }
 0xc1c   :  { %v1211_v31 = vperm.slane %v1203_v34, %v5410_v51  ;;  %v1513_v6 = vsel %vm8862_vm5, %v1512_v57, %v5408_v41  ;;  %v1515_v1 = vsel %vm8862_vm5, %v1475_v18, %v8890_v2 }
 0xc1d   :  { %v1188_v40 = vrot.slane %v1159_v39, 4  ;;  %v1191_v3 = vsel %vm8862_vm5, %v1159_v39, %v1190_v49  ;;  %v1201_v4 = vsel %vm8862_vm5, %v1200_v62, %v5417_v8  ;;  %v5542_v49 = vsel %vm8862_vm5, %v5515_v12, %v1442_v24 }
 0xc1e   :  { %v1199_v58 = vperm.slane %v1191_v3, %v5410_v51  ;;  %v5535_v61 = vsel %vm8862_vm5, %v1211_v31, %v1226_v38  ;;  %v1207_v34 = vperm.slane %v1201_v4, %v5410_v51  ;;  %8888 = vst [vmem:[#allocation37_spill] sm:$0xff] %v5542_v49  ;;  %v8889_v8 = vrot.slane %v5360_v27, 4 }
 0xc1f   :  { %v1098_v9 = vpop.permute.xlu2 %1097  ;;  %v1189_v43 = vsel %vm8862_vm5, %v1188_v40, %v5428_v22  ;;  %v1526_v3 = vrot.slane %v5455_v32, 4  ;;  %v1222_v40 = vrot.slane %v1183_v28, 4  ;;  %v1436_v49 = vrot.slane %v5481_v47, 4 }
 0xc20   :  { %v1488_v46 = vrot.slane %v1098_v9, 4  ;;  %v1491_v39 = vsel %vm8862_vm5, %v1098_v9, %v8889_v8  ;;  %v1216_v62 = vrot.slane %v1199_v58, 4  ;;  %v1195_v38 = vperm.slane %v1189_v43, %v5410_v51 }
 0xc21   :  { %v1499_v22 = vperm.slane %v1491_v39, %v5376_v13  ;;  %v1224_v9 = vrot.slane %v1211_v31, 4  ;;  %v1501_v31 = vsel %vm8862_vm5, %v1500_v21, %v5405_v29  ;;  %v1519_v21 = vperm.slane %v1513_v6, %v5410_v51 }
 0xc22   :  { %v1489_v4 = vsel %vm8862_vm5, %v1488_v46, %v5360_v27  ;;  %v5555_v24 = vsel %vm8862_vm5, %v1216_v62, %v5524_v17  ;;  %v5558_v7 = vsel %vm8862_vm5, %v1195_v38, %v1214_v45  ;;  %v1212_v27 = vrot.slane %v1195_v38, 4 }
 0xc23   :  { %v1495_v43 = vperm.slane %v1489_v4, %v5376_v13  ;;  %v2018_v8 = vsel %vm8865_vm1, %v5555_v24, 0.0  ;;  %v2015_v39 = vsel %vm8865_vm1, %v5558_v7, 0.0  ;;  %v1220_v46 = vrot.slane %v1207_v34, 4 }
 0xc24   :  { %2019 = vadd.xlane.f32.xlu1 %v2018_v8  ;;  %2016 = vadd.xlane.f32.xlu2 %v2015_v39  ;;  %v1218_v62 = vrot.slane %v5524_v17, 4  ;;  %v1536_v4 = vrot.slane %v1499_v22, 4  ;;  %v5575_v52 = vsel %vm8862_vm5, %v1212_v27, %v1171_v35  ;;  %v5579_v57 = vsel %vm8862_vm5, %v1224_v9, %v5478_v16 }
 0xc25   :  { %v1524_v45 = vrot.slane %v1495_v43, 4  ;;  %v8891_v17 = vrot.slane %v5405_v29, 4  ;;  %v2012_v41 = vsel %vm8865_vm1, %v5575_v52, 0.0  ;;  %v5588_v2 = vperm.slane %v1501_v31, %v5410_v51 }
 0xc26   :  { %v1527_v35 = vsel %vm8862_vm5, %v1495_v43, %v1526_v3  ;;  %2013 = vadd.xlane.f32.xlu0 %v2012_v41  ;;  %v5594_v16 = vsel %vm8862_vm5, %v1207_v34, %v1222_v40  ;;  %v5597_v29 = vsel %vm8862_vm5, %v1220_v46, %v1183_v28  ;;  %v1537_v3 = vsel %vm8862_vm5, %v1536_v4, %v5451_v50 }
 0xc27   :  { %v1503_v38 = vsel %vm8862_vm5, %v1471_v10, %v8891_v17  ;;  %v1525_v47 = vsel %vm8862_vm5, %v1524_v45, %v5455_v32  ;;  %v5600_v6 = vperm.slane %v1527_v35, %v5410_v51  ;;  %v5603_v10 = vperm.slane %v1515_v1, %v5410_v51  ;;  %v902_v17 = vpop.f32.mrf.mxu0 }
 0xc28   :  { %v5606_v18 = vperm.slane %v1503_v38, %v5410_v51  ;;  %v1539_v32 = vsel %vm8862_vm5, %v1499_v22, %v1538_v15  ;;  %v5613_v34 = vsel %vm8862_vm5, %v1436_v49, %v5444_v59  ;;  %v5616_v28 = vperm.slane %v1525_v47, %v5410_v51 }
 0xc29   :  { %v1552_v40 = vrot.slane %v5600_v6, 4  ;;  %v1543_v1 = vperm.slane %v1537_v3, %v5410_v51  ;;  %v1558_v9 = vrot.slane %v1519_v21, 4  ;;  %v2027_v43 = vsel %vm8865_vm1, %v5594_v16, 0.0  ;;  %v1094_v3 = vpop.permute.xlu1 %1093 }
 0xc2a   :  { %v2024_v15 = vsel %vm8865_vm1, %v5597_v29, 0.0  ;;  %v5625_v50 = vsel %vm8862_vm5, %v1199_v58, %v1218_v62  ;;  %v1550_v59 = vrot.slane %v5588_v2, 4  ;;  %v5629_v49 = vperm.slane %v1539_v32, %v5410_v51 }
 0xc2b   :  { %v5633_v22 = vsel %vm8862_vm5, %v1552_v40, %v5606_v18  ;;  %v5636_v8 = vsel %vm8862_vm5, %v1543_v1, %v1558_v9  ;;  %v1448_v39 = vrot.slane %v5508_v25, 4  ;;  %v1562_v46 = vrot.slane %v5603_v10, 4 }
 0xc2c   :  { %2028 = vadd.xlane.f32.xlu1 %v2027_v43  ;;  %2025 = vadd.xlane.f32.xlu2 %v2024_v15  ;;  %v5645_v27 = vsel %vm8862_vm5, %v5616_v28, %v1550_v59  ;;  %v2021_v62 = vsel %vm8865_vm1, %v5625_v50, 0.0  ;;  %v1556_v31 = vrot.slane %v1543_v1, 4  ;;  %v178_v4 = vadd.f32 %v5100_v0, %v5075_v42 }
 0xc2d   :  { %v5641_v58 = vsel %vm8862_vm5, %v1448_v39, %v5447_v11  ;;  %v5652_v45 = vsel %vm8862_vm5, %v5629_v49, %v1562_v46  ;;  %v633_v11 = vpop.f32.mrf.mxu3  ;;  %v5660_v41 = vadd.f32 %v902_v17, %v5236_v36  ;;  %v1264_v40 = vrot.slane %v1094_v3, 4 }
 0xc2e   :  { %2022 = vadd.xlane.f32.xlu0 %v2021_v62  ;;  %v5655_v25 = vsel %vm8862_vm5, %v1556_v31, %v1519_v21  ;;  %v636_v38 = vadd.f32 %v633_v11, %v178_v4  ;;  %v943_v21 = vpop.f32.mrf.mxu1  ;;  %v1252_v9 = vrot.slane %v5362_v30, 4  ;;  %v1240_v43 = vrot.slane %v5358_v26, 4 }
 0xc2f   :  { %v5669_v47 = vadd.f32 %v943_v21, %v5255_v44  ;;  %v1265_v1 = vsel %vm8862_vm5, %v1264_v40, %v5401_v55  ;;  %v1228_v62 = vrot.slane %v5350_v20, 4 }
 0xc30   :  { %4608 = vtanh.f32 %v636_v38  ;;  %v1271_v15 = vperm.slane %v1265_v1, %v5376_v13  ;;  %v1253_v59 = vsel %vm8862_vm5, %v1252_v9, %v5272_v54  ;;  %v1241_v39 = vsel %vm8862_vm5, %v1240_v43, %v5342_v5 }
 0xc31   :  { %v1259_v31 = vperm.slane %v1253_v59, %v5376_v13  ;;  %v1247_v11 = vperm.slane %v1241_v39, %v5376_v13  ;;  %v1229_v17 = vsel %vm8862_vm5, %v1228_v62, %v5239_v37  ;;  %v1266_v59 = vrot.slane %v5401_v55, 4 }
 0xc32   :  { %v1300_v46 = vrot.slane %v1271_v15, 4 }
 0xc33   :  { %v1276_v38 = vrot.slane %v1247_v11, 4 }
 0xc34   :  { %v1301_v4 = vsel %vm8862_vm5, %v1300_v46, %v1259_v31 }
 0xc35   :  { %v1307_v21 = vperm.slane %v1301_v4, %v5410_v51  ;;  %v1267_v4 = vsel %vm8862_vm5, %v1094_v3, %v1266_v59 }
 0xc36   :  { %v4609_v0 = vpop.eup %4608 }
 0xc37   :  { %v638_v35 = vmul.f32 %v4609_v0, %v5084_v53  ;;  %v1235_v0 = vperm.slane %v1229_v17, %v5376_v13  ;;  %v1324_v9 = vrot.slane %v1307_v21, 4 }
 0xc39   :  { %v5679_v32 = vadd.f32 %v638_v35, %v5087_v56  ;;  %v1302_v35 = vrot.slane %v1259_v31, 4  ;;  %v1277_v40 = vsel %vm8862_vm5, %v1276_v38, %v1235_v0  ;;  %v1278_v43 = vrot.slane %v1235_v0, 4 }
 0xc3a   :  { %v1283_v39 = vperm.slane %v1277_v40, %v5410_v51  ;;  %v2033_v31 = vsel %vm8865_vm1, %v5535_v61, 0.0  ;;  %v1275_v38 = vperm.slane %v1267_v4, %v5376_v13  ;;  %v1254_v0 = vrot.slane %v5272_v54, 4 }
 0xc3b   :  { %v1303_v1 = vsel %vm8862_vm5, %v1271_v15, %v1302_v35  ;;  %v1279_v62 = vsel %vm8862_vm5, %v1247_v11, %v1278_v43  ;;  %v1242_v11 = vrot.slane %v5342_v5, 4  ;;  %v4900_v5 = vmov 32.0  }
 0xc3c   :  { %v1311_v46 = vperm.slane %v1303_v1, %v5410_v51  ;;  %v5707_v56 = vsel %vm8862_vm5, %v1324_v9, %v1283_v39  ;;  %v1287_v15 = vperm.slane %v1279_v62, %v5410_v51  ;;  %v1255_v40 = vsel %vm8862_vm5, %v5362_v30, %v1254_v0 }
 0xc3d   :  { %v2036_v55 = vsel %vm8865_vm1, %v5707_v56, 0.0  ;;  %v1243_v1 = vsel %vm8862_vm5, %v5358_v26, %v1242_v11  ;;  %v1312_v9 = vrot.slane %v1275_v38, 4  ;;  %4610 = vrcp.f32 %v4900_v5 }
 0xc3e   :  { %v1328_v17 = vrot.slane %v1311_v46, 4  ;;  %v1330_v3 = vrot.slane %v1287_v15, 4  ;;  %v1263_v54 = vperm.slane %v1255_v40, %v5376_v13  ;;  %v1251_v62 = vperm.slane %v1243_v1, %v5376_v13 }
 0xc3f   :  { %v2030_v4 = vsel %vm8865_vm1, %v5579_v57, 0.0  ;;  %v1230_v30 = vrot.slane %v5239_v37, 4 }
 0xc40   :  { %v5719_v35 = vsel %vm8862_vm5, %v1328_v17, %v1287_v15  ;;  %v5726_v43 = vsel %vm8862_vm5, %v1311_v46, %v1330_v3  ;;  %v1313_v46 = vsel %vm8862_vm5, %v1312_v9, %v1263_v54  ;;  %v1326_v15 = vrot.slane %v1283_v39, 4 }
 0xc41   :  { %v2042_v59 = vsel %vm8865_vm1, %v5719_v35, 0.0  ;;  %v2045_v26 = vsel %vm8865_vm1, %v5726_v43, 0.0  ;;  %v1288_v17 = vrot.slane %v1251_v62, 4  ;;  %v5744_v0 = vperm.slane %v1313_v46, %v5410_v51 }
 0xc42   :  { %995 = vrot.lane.b32.xlu0 %v5660_v41, %s4895_s2  ;;  %v5741_v11 = vsel %vm8862_vm5, %v1307_v21, %v1326_v15  ;;  %v1314_v21 = vrot.slane %v1263_v54, 4  ;;  %v5771_v54 = vld [vmem:[%s8821_s10] ss:$0 sm:$0xff] }
 0xc43   :  { %v2039_v3 = vsel %vm8865_vm1, %v5741_v11, 0.0 }
 0xc44   :  { %971 = vrot.lane.b32.xlu2 %v5660_v41, %s4897_s4 }
 0xc45   :  { %1019 = vrot.lane.b32.xlu1 %v5660_v41, %s4896_s3 }
 0xc4a   :  { %1075 = vrot.lane.b32.xlu0 %v5669_v47, %s4895_s2 }
 0xc4c   :  { %1051 = vrot.lane.b32.xlu2 %v5669_v47, %s4897_s4 }
 0xc4d   :  { %1099 = vrot.lane.b32.xlu1 %v5669_v47, %s4896_s3 }
 0xc52   :  { %642 = vrot.lane.b32.xlu0 %v5679_v32, %s4895_s2 }
 0xc75   :  { %2034 = vadd.xlane.f32.xlu2 %v2033_v31  ;;  %v1231_v31 = vsel %vm8862_vm5, %v5350_v20, %v1230_v30  ;;  %v1332_v20 = vrot.slane %v5744_v0, 4  ;;  %v1315_v30 = vsel %vm8862_vm5, %v1275_v38, %v1314_v21  ;;  %v5776_v38 = vmul.f32 %v5771_v54, %v5195_v60 }
 0xc76   :  { %v1239_v37 = vperm.slane %v1231_v31, %v5376_v13  ;;  %v5766_v15 = vperm.slane %v1315_v30, %v5410_v51 }
 0xc77   :  { %2037 = vadd.xlane.f32.xlu1 %v2036_v55  ;;  %v4611_v55 = vpop.eup %4610  ;;  %v3372_v60 = vrot.slane %v5776_v38, 2 }
 0xc78   :  { %v1289_v40 = vsel %vm8862_vm5, %v1288_v17, %v1239_v37  ;;  %v2205_v1 = vmul.f32 32.0, %v4611_v55  ;;  %v1290_v39 = vrot.slane %v1239_v37, 4  ;;  %vm2209_vm6 = vweird.f32 %v4611_v55 }
 0xc79   :  { %v5752_v9 = vperm.slane %v1289_v40, %v5410_v51 }
 0xc7a   :  { %v2206_v5 = vsub.f32 1.0, %v2205_v1  ;;  %v1440_v1 = vrot.slane %v5515_v12, 4 }
 0xc7c   :  { %2031 = vadd.xlane.f32.xlu0 %v2030_v4  ;;  %v5757_v4 = vsel %vm8862_vm5, %v1332_v20, %v5752_v9  ;;  %v2207_v31 = vmul.f32 %v4611_v55, %v2206_v5  ;;  %v3371_v20 = vrot.slane %v5776_v38, 1 }
 0xc7d   :  { %2043 = vadd.xlane.f32.xlu2 %v2042_v59  ;;  %v1291_v59 = vsel %vm8862_vm5, %v1251_v62, %v1290_v39  ;;  %v2048_v46 = vsel %vm8865_vm1, %v5757_v4, 0.0 }
 0xc7e   :  { %v2208_v17 = vadd.f32 %v4611_v55, %v2207_v31  ;;  %v3428_v12 = vperm.slane %v3371_v20, 0 }
 0xc7f   :  { %2046 = vadd.xlane.f32.xlu1 %v2045_v26  ;;  %v5761_v26 = vperm.slane %v1291_v59, %v5410_v51 }
 0xc80   :  { %v5784_v40 = vsel %vm2209_vm6, %v4611_v55, %v2208_v17  ;;  %v5799_v55 = vsel %vm8862_vm5, %v1440_v1, %v5460_v19  ;;  %v3427_v19 = vperm.slane %v5776_v38, 0  ;;  %v3374_v1 = vrot.slane %v5776_v38, 4 }
 0xc81   :  { %v1338_v62 = vrot.slane %v5761_v26, 4 }
 0xc83   :  { %v5780_v37 = vsel %vm8862_vm5, %v5766_v15, %v1338_v62  ;;  %v3429_v62 = vperm.slane %v3372_v60, 0  ;;  %v3375_v60 = vrot.slane %v5776_v38, 5 }
 0xc84   :  { %2040 = vadd.xlane.f32.xlu0 %v2039_v3  ;;  %v2057_v3 = vsel %vm8865_vm1, %v5780_v37, 0.0 }
 0xc8c   :  { %2049 = vadd.xlane.f32.xlu0 %v2048_v46 }
 0xc94   :  { %2058 = vadd.xlane.f32.xlu0 %v2057_v3 }
 0xc97   :  { %v2020_v39 = vpop.xlane.xlu1 %2019  ;;  %v2017_v21 = vpop.xlane.xlu2 %2016 }
 0xc98   :  { %v2213_v59 = vmul.f32 %v5784_v40, %v2020_v39  ;;  %v2212_v5 = vmul.f32 %v5784_v40, %v2017_v21  ;;  %v2066_v39 = vsel %vm8865_vm1, %v5799_v55, 0.0 }
 0xc99   :  { %v2014_v31 = vpop.xlane.xlu0 %2013 }
 0xc9a   :  { %v5792_v30 = vsub.f32 %v5555_v24, %v2213_v59  ;;  %v5795_v46 = vsub.f32 %v5558_v7, %v2212_v5  ;;  %v2211_v17 = vmul.f32 %v5784_v40, %v2014_v31 }
 0xc9c   :  { %v5803_v3 = vmul.f32 %v3428_v12, %v5795_v46  ;;  %v5808_v24 = vmul.f32 %v3429_v62, %v5792_v30  ;;  %v5811_v7 = vsub.f32 %v5575_v52, %v2211_v17  ;;  %2067 = vadd.xlane.f32.xlu0 %v2066_v39  ;;  %v1446_v12 = vrot.slane %v5463_v33, 4 }
 0xc9d   :  { %v3373_v52 = vrot.slane %v5776_v38, 3 }
 0xc9e   :  { %8892 = vst [vmem:[#allocation38_spill] sm:$0xff] %v5803_v3  ;;  %v5820_v31 = vmul.f32 %v3427_v19, %v5811_v7  ;;  %v5831_v39 = vsel %vm8862_vm5, %v5473_v14, %v1446_v12  ;;  %v1548_v14 = vrot.slane %v5616_v28, 4  ;;  %v1566_v28 = vrot.slane %v5660_v41, 4 }
 0xc9f   :  { %8893 = vst [vmem:[#allocation39_spill] sm:$0xff] %v5808_v24  ;;  %v2029_v20 = vpop.xlane.xlu1 %2028  ;;  %v2026_v21 = vpop.xlane.xlu2 %2025  ;;  %v2075_v44 = vsel %vm8865_vm1, %v5831_v39, 0.0 }
 0xca0   :  { %v2216_v59 = vmul.f32 %v5784_v40, %v2029_v20  ;;  %v2215_v5 = vmul.f32 %v5784_v40, %v2026_v21  ;;  %v3431_v20 = vperm.slane %v3374_v1, 0  ;;  %v3432_v21 = vperm.slane %v3375_v60, 0 }
 0xca1   :  { %v2023_v53 = vpop.xlane.xlu0 %2022  ;;  %v3430_v1 = vperm.slane %v3373_v52, 0 }
 0xca2   :  { %v5824_v62 = vsub.f32 %v5594_v16, %v2216_v59  ;;  %v5827_v17 = vsub.f32 %v5597_v29, %v2215_v5  ;;  %v2214_v33 = vmul.f32 %v5784_v40, %v2023_v53  ;;  %v5851_v53 = vsel %vm8862_vm5, %v1548_v14, %v5588_v2 }
 0xca3   :  { %v2084_v59 = vsel %vm8865_vm1, %v5851_v53, 0.0  ;;  %v1554_v5 = vrot.slane %v5606_v18, 4  ;;  %v1560_v2 = vrot.slane %v5629_v49, 4 }
 0xca4   :  { %v5835_v19 = vmul.f32 %v3431_v20, %v5827_v17  ;;  %v5840_v16 = vmul.f32 %v3432_v21, %v5824_v62  ;;  %v5843_v29 = vsub.f32 %v5625_v50, %v2214_v33  ;;  %2076 = vadd.xlane.f32.xlu0 %v2075_v44 }
 0xca5   :  { %v5858_v44 = vsel %vm8862_vm5, %v5600_v6, %v1554_v5  ;;  %v5873_v49 = vsel %vm8862_vm5, %v1560_v2, %v5603_v10 }
 0xca6   :  { %8894 = vst [vmem:[#allocation40_spill] sm:$0xff] %v5835_v19  ;;  %v5847_v60 = vmul.f32 %v3430_v1, %v5843_v29  ;;  %v2093_v50 = vsel %vm8865_vm1, %v5858_v44, 0.0 }
 0xca7   :  { %8895 = vst [vmem:[#allocation41_spill] sm:$0xff] %v5840_v16  ;;  %v972_v12 = vpop.permute.xlu2 %971 }
 0xca8   :  { %8896 = vst [vmem:[#allocation42_spill] sm:$0xff] %v5847_v60  ;;  %v1578_v52 = vrot.slane %v972_v12, 4 }
 0xcac   :  { %2085 = vadd.xlane.f32.xlu0 %v2084_v59 }
 0xcb4   :  { %v996_v20 = vpop.permute.xlu0 %995  ;;  %2094 = vadd.xlane.f32.xlu0 %v2093_v50  ;;  %v1052_v50 = vpop.permute.xlu2 %1051 }
 0xcb5   :  { %v1564_v21 = vrot.slane %v996_v20, 4  ;;  %v1567_v33 = vsel %vm8862_vm5, %v996_v20, %v1566_v28 }
 0xcb6   :  { %v1575_v18 = vperm.slane %v1567_v33, %v5376_v13  ;;  %v1590_v33 = vrot.slane %v5669_v47, 4 }
 0xcb7   :  { %v1020_v14 = vpop.permute.xlu1 %1019  ;;  %v1565_v5 = vsel %vm8862_vm5, %v1564_v21, %v5660_v41  ;;  %v1602_v21 = vrot.slane %v1052_v50, 4 }
 0xcb8   :  { %v1576_v1 = vrot.slane %v1020_v14, 4  ;;  %v1579_v6 = vsel %vm8862_vm5, %v1020_v14, %v1578_v52  ;;  %v1626_v36 = vrot.slane %v1575_v18, 4  ;;  %v1571_v52 = vperm.slane %v1565_v5, %v5376_v13 }
 0xcb9   :  { %v1587_v59 = vperm.slane %v1579_v6, %v5376_v13  ;;  %v2102_v6 = vsel %vm8865_vm1, %v5873_v49, 0.0 }
 0xcba   :  { %v1577_v42 = vsel %vm8862_vm5, %v1576_v1, %v972_v12  ;;  %v1614_v3 = vrot.slane %v1571_v52, 4 }
 0xcbb   :  { %v1583_v28 = vperm.slane %v1577_v42, %v5376_v13  ;;  %v1624_v20 = vrot.slane %v1587_v59, 4  ;;  %v1627_v10 = vsel %vm8862_vm5, %v1587_v59, %v1626_v36 }
 0xcbc   :  { %v1076_v12 = vpop.permute.xlu0 %1075  ;;  %2103 = vadd.xlane.f32.xlu0 %v2102_v6  ;;  %v5890_v6 = vperm.slane %v1627_v10, %v5410_v51 }
 0xcbd   :  { %v1612_v14 = vrot.slane %v1583_v28, 4  ;;  %v1625_v41 = vsel %vm8862_vm5, %v1624_v20, %v1575_v18  ;;  %v1588_v2 = vrot.slane %v1076_v12, 4  ;;  %v1591_v1 = vsel %vm8862_vm5, %v1076_v12, %v1590_v33 }
 0xcbe   :  { %v1599_v16 = vperm.slane %v1591_v1, %v5376_v13  ;;  %v1631_v12 = vperm.slane %v1625_v41, %v5410_v51  ;;  %v1615_v10 = vsel %vm8862_vm5, %v1583_v28, %v1614_v3 }
 0xcbf   :  { %v1100_v42 = vpop.permute.xlu1 %1099  ;;  %v1613_v19 = vsel %vm8862_vm5, %v1612_v14, %v1571_v52  ;;  %v1589_v18 = vsel %vm8862_vm5, %v1588_v2, %v5669_v47 }
 0xcc0   :  { %v1600_v24 = vrot.slane %v1100_v42, 4  ;;  %v1603_v5 = vsel %vm8862_vm5, %v1100_v42, %v1602_v21  ;;  %v1595_v36 = vperm.slane %v1589_v18, %v5376_v13  ;;  %v1650_v59 = vrot.slane %v1599_v16, 4 }
 0xcc1   :  { %v1611_v20 = vperm.slane %v1603_v5, %v5376_v13  ;;  %v5897_v52 = vperm.slane %v1613_v19, %v5410_v51  ;;  %v1670_v18 = vrot.slane %v1631_v12, 4  ;;  %v1674_v19 = vrot.slane %v5890_v6, 4 }
 0xcc2   :  { %v1601_v33 = vsel %vm8862_vm5, %v1600_v24, %v1052_v50  ;;  %v1638_v14 = vrot.slane %v1595_v36, 4 }
 0xcc3   :  { %v1607_v21 = vperm.slane %v1601_v33, %v5376_v13  ;;  %v1648_v1 = vrot.slane %v1611_v20, 4  ;;  %v1651_v47 = vsel %vm8862_vm5, %v1611_v20, %v1650_v59  ;;  %v1662_v3 = vrot.slane %v5897_v52, 4 }
 0xcc4   :  { %v5902_v42 = vperm.slane %v1651_v47, %v5410_v51  ;;  %v643_v24 = vpop.permute.xlu0 %642 }
 0xcc5   :  { %v1636_v2 = vrot.slane %v1607_v21, 4  ;;  %v1649_v5 = vsel %vm8862_vm5, %v1648_v1, %v1599_v16  ;;  %v1639_v50 = vsel %vm8862_vm5, %v1607_v21, %v1638_v14  ;;  %v645_v33 = vmul.f32 %v643_v24, %v5679_v32 }
 0xcc6   :  { %v1655_v41 = vperm.slane %v1649_v5, %v5410_v51  ;;  %v5911_v59 = vperm.slane %v1639_v50, %v5410_v51  ;;  %v5922_v1 = vsel %vm8862_vm5, %v5902_v42, %v1674_v19  ;;  %v3377_v24 = vrot.slane %v5776_v38, 7 }
 0xcc7   :  { %v1637_v20 = vsel %vm8862_vm5, %v1636_v2, %v1595_v36  ;;  %647 = vrot.lane.b32.xlu1 %v645_v33, %s4896_s3  ;;  %v5926_v36 = vperm.slane %v1615_v10, %v5410_v51 }
 0xcc8   :  { %v5915_v28 = vperm.slane %v1637_v20, %v5410_v51  ;;  %v5918_v16 = vsel %vm8862_vm5, %v1655_v41, %v1670_v18  ;;  %v1668_v21 = vrot.slane %v1655_v41, 4  ;;  %v1664_v14 = vrot.slane %v5911_v59, 4  ;;  %v4750_v41 = vld [vmem:[#allocation4 + $0x8] sm:$0xff] }
 0xcc9   :  { %v5942_v10 = vmul.f32 %v4750_v41, %v5771_v54 }
 0xcca   :  { %v5931_v47 = vsel %vm8862_vm5, %v5915_v28, %v1662_v3  ;;  %v5935_v2 = vsel %vm8862_vm5, %v1664_v14, %v5926_v36  ;;  %v5938_v5 = vsel %vm8862_vm5, %v1668_v21, %v1631_v12  ;;  %v1336_v3 = vrot.slane %v5766_v15, 4 }
 0xccb   :  { %v3434_v14 = vperm.slane %v3377_v24, 0  ;;  %v3435_v21 = vperm.slane %v5942_v10, 0  ;;  %v3379_v41 = vrot.slane %v5942_v10, 2  ;;  %v3376_v15 = vrot.slane %v5776_v38, 6 }
 0xce8   :  { %v2035_v50 = vpop.xlane.xlu2 %2034 }
 0xce9   :  { %v2218_v18 = vmul.f32 %v5784_v40, %v2035_v50  ;;  %v5959_v50 = vsel %vm8862_vm5, %v1336_v3, %v5761_v26 }
 0xcea   :  { %v2038_v19 = vpop.xlane.xlu1 %2037 }
 0xceb   :  { %v5946_v33 = vsub.f32 %v5535_v61, %v2218_v18  ;;  %v2219_v20 = vmul.f32 %v5784_v40, %v2038_v19  ;;  %v3380_v19 = vrot.slane %v5942_v10, 3 }
 0xced   :  { %v5951_v12 = vsub.f32 %v5707_v56, %v2219_v20  ;;  %v5955_v51 = vmul.f32 %v3434_v14, %v5946_v33  ;;  %v2054_v14 = vsel %vm8865_vm1, %v5959_v50, 0.0  ;;  %v3438_v13 = vperm.slane %v3380_v19, 0 }
 0xcef   :  { %8897 = vst [vmem:[#allocation43_spill] sm:$0xff] %v5955_v51  ;;  %v5962_v61 = vmul.f32 %v3435_v21, %v5951_v12  ;;  %v2032_v24 = vpop.xlane.xlu0 %2031  ;;  %v3437_v51 = vperm.slane %v3379_v41, 0 }
 0xcf0   :  { %v2044_v18 = vpop.xlane.xlu2 %2043  ;;  %v2217_v20 = vmul.f32 %v5784_v40, %v2032_v24 }
 0xcf1   :  { %8898 = vst [vmem:[#allocation44_spill] sm:$0xff] %v5962_v61  ;;  %v2221_v56 = vmul.f32 %v5784_v40, %v2044_v18  ;;  %2055 = vadd.xlane.f32.xlu1 %v2054_v14  ;;  %v3433_v61 = vperm.slane %v3376_v15, 0  ;;  %v2063_v15 = vsel %vm8865_vm1, %v5501_v48, 0.0  ;;  %v2072_v14 = vsel %vm8865_vm1, %v5505_v63, 0.0 }
 0xcf2   :  { %v2047_v26 = vpop.xlane.xlu1 %2046  ;;  %v5976_v38 = vsub.f32 %v5579_v57, %v2217_v20 }
 0xcf3   :  { %v5972_v3 = vsub.f32 %v5719_v35, %v2221_v56  ;;  %v2222_v21 = vmul.f32 %v5784_v40, %v2047_v26  ;;  %v3378_v56 = vrot.slane %v5942_v10, 1 }
 0xcf4   :  { %v5985_v60 = vmul.f32 %v3433_v61, %v5976_v38  ;;  %v3381_v61 = vrot.slane %v5942_v10, 4 }
 0xcf5   :  { %v5979_v18 = vsub.f32 %v5726_v43, %v2222_v21  ;;  %v5982_v24 = vmul.f32 %v3437_v51, %v5972_v3  ;;  %v3436_v51 = vperm.slane %v3378_v56, 0  ;;  %v3384_v56 = vrot.slane %v5942_v10, 7 }
 0xcf6   :  { %v3439_v21 = vperm.slane %v3381_v61, 0 }
 0xcf7   :  { %8899 = vst [vmem:[#allocation45_spill] sm:$0xff] %v5982_v24  ;;  %v5988_v35 = vmul.f32 %v3438_v13, %v5979_v18  ;;  %v2041_v41 = vpop.xlane.xlu0 %2040  ;;  %v3442_v61 = vperm.slane %v3384_v56, 0  ;;  %v2090_v24 = vsel %vm8865_vm1, %v5633_v22, 0.0 }
 0xcf8   :  { %v2220_v57 = vmul.f32 %v5784_v40, %v2041_v41 }
 0xcf9   :  { %8900 = vst [vmem:[#allocation46_spill] sm:$0xff] %v5988_v35  ;;  %2064 = vadd.xlane.f32.xlu1 %v2063_v15  ;;  %v2081_v15 = vsel %vm8865_vm1, %v5521_v23, 0.0  ;;  %v2099_v35 = vsel %vm8865_vm1, %v5636_v8, 0.0 }
 0xcfa   :  { %v5995_v43 = vsub.f32 %v5741_v11, %v2220_v57 }
 0xcfc   :  { %v5998_v19 = vmul.f32 %v3436_v51, %v5995_v43  ;;  %v4751_v51 = vld [vmem:[#allocation4 + $0x10] sm:$0xff] }
 0xcff   :  { %v2050_v13 = vpop.xlane.xlu0 %2049 }
 0xd00   :  { %v2223_v20 = vmul.f32 %v5784_v40, %v2050_v13  ;;  %v6015_v13 = vmul.f32 %v4751_v51, %v5771_v54 }
 0xd01   :  { %2073 = vadd.xlane.f32.xlu1 %v2072_v14 }
 0xd02   :  { %v6005_v26 = vsub.f32 %v5757_v4, %v2223_v20  ;;  %v3386_v14 = vrot.slane %v6015_v13, 2  ;;  %v3389_v56 = vrot.slane %v6015_v13, 5 }
 0xd04   :  { %v6008_v11 = vmul.f32 %v3439_v21, %v6005_v26  ;;  %v3445_v51 = vperm.slane %v3386_v14, 0 }
 0xd07   :  { %v2059_v41 = vpop.xlane.xlu0 %2058 }
 0xd08   :  { %v2226_v57 = vmul.f32 %v5784_v40, %v2059_v41 }
 0xd09   :  { %2082 = vadd.xlane.f32.xlu1 %v2081_v15 }
 0xd0a   :  { %v6018_v4 = vsub.f32 %v5780_v37, %v2226_v57 }
 0xd0c   :  { %v6021_v20 = vmul.f32 %v3442_v61, %v6018_v4 }
 0xd0f   :  { %v2068_v21 = vpop.xlane.xlu0 %2067 }
 0xd10   :  { %v2229_v41 = vmul.f32 %v5784_v40, %v2068_v21  ;;  %v1660_v21 = vrot.slane %v5915_v28, 4 }
 0xd11   :  { %2091 = vadd.xlane.f32.xlu1 %v2090_v24 }
 0xd12   :  { %v6028_v15 = vsub.f32 %v5799_v55, %v2229_v41  ;;  %v3448_v55 = vperm.slane %v3389_v56, 0  ;;  %v6046_v41 = vsel %vm8862_vm5, %v1660_v21, %v5897_v52 }
 0xd13   :  { %v2108_v28 = vsel %vm8865_vm1, %v6046_v41, 0.0 }
 0xd14   :  { %v6031_v37 = vmul.f32 %v3445_v51, %v6028_v15  ;;  %v4752_v51 = vld [vmem:[#allocation4 + $0x18] sm:$0xff] }
 0xd16   :  { %8901 = vst [vmem:[#allocation47_spill] sm:$0xff] %v6031_v37 }
 0xd17   :  { %v2077_v57 = vpop.xlane.xlu0 %2076 }
 0xd18   :  { %v2232_v61 = vmul.f32 %v5784_v40, %v2077_v57  ;;  %v6049_v57 = vmul.f32 %v4752_v51, %v5771_v54 }
 0xd19   :  { %2100 = vadd.xlane.f32.xlu1 %v2099_v35 }
 0xd1a   :  { %v6039_v24 = vsub.f32 %v5831_v39, %v2232_v61  ;;  %v3451_v56 = vperm.slane %v6049_v57, 0  ;;  %v1666_v61 = vrot.slane %v5926_v36, 4 }
 0xd1c   :  { %v6042_v14 = vmul.f32 %v3448_v55, %v6039_v24  ;;  %v6064_v21 = vsel %vm8862_vm5, %v5911_v59, %v1666_v61  ;;  %v3397_v61 = vrot.slane %v6049_v57, 6 }
 0xd1f   :  { %v2086_v37 = vpop.xlane.xlu0 %2085 }
 0xd20   :  { %v2235_v35 = vmul.f32 %v5784_v40, %v2086_v37  ;;  %v3394_v37 = vrot.slane %v6049_v57, 3 }
 0xd21   :  { %2109 = vadd.xlane.f32.xlu1 %v2108_v28 }
 0xd22   :  { %v6055_v39 = vsub.f32 %v5851_v53, %v2235_v35  ;;  %v2117_v53 = vsel %vm8865_vm1, %v6064_v21, 0.0  ;;  %v1672_v35 = vrot.slane %v5902_v42, 4  ;;  %v3454_v28 = vperm.slane %v3394_v37, 0 }
 0xd23   :  { %v3457_v42 = vperm.slane %v3397_v61, 0  ;;  %v2340_v37 = vmul.f32 %v5795_v46, %v5795_v46  ;;  %v2346_v61 = vmul.f32 %v5946_v33, %v5946_v33 }
 0xd24   :  { %v6060_v52 = vmul.f32 %v3451_v56, %v6055_v39  ;;  %v6079_v59 = vsel %vm8862_vm5, %v1672_v35, %v5890_v6  ;;  %v8905_v6 = vld [vmem:[#allocation26_spill] sm:$0xff] }
 0xd25   :  { %v640_v35 = vmul.f32 %v5679_v32, %v8905_v6 }
 0xd26   :  { %8902 = vst [vmem:[#allocation48_spill] sm:$0xff] %v6060_v52 }
 0xd27   :  { %v2095_v55 = vpop.xlane.xlu0 %2094 }
 0xd28   :  { %v2238_v51 = vmul.f32 %v5784_v40, %v2095_v55 }
 0xd29   :  { %2118 = vadd.xlane.f32.xlu1 %v2117_v53  ;;  %v2126_v53 = vsel %vm8865_vm1, %v6079_v59, 0.0 }
 0xd2a   :  { %v6072_v36 = vsub.f32 %v5858_v44, %v2238_v51 }
 0xd2c   :  { %v6075_v56 = vmul.f32 %v3454_v28, %v6072_v36  ;;  %v2406_v28 = vsel %vm8865_vm1, %v2340_v37, 0.0 }
 0xd2e   :  { %8903 = vst [vmem:[#allocation49_spill] sm:$0xff] %v6075_v56 }
 0xd2f   :  { %v2104_v55 = vpop.xlane.xlu0 %2103 }
 0xd30   :  { %v2241_v52 = vmul.f32 %v5784_v40, %v2104_v55 }
 0xd31   :  { %2127 = vadd.xlane.f32.xlu1 %v2126_v53  ;;  %v2424_v53 = vsel %vm8865_vm1, %v2346_v61, 0.0 }
 0xd32   :  { %v6086_v44 = vsub.f32 %v5873_v49, %v2241_v52  ;;  %v2343_v49 = vmul.f32 %v5827_v17, %v5827_v17  ;;  %v3383_v17 = vrot.slane %v5942_v10, 6 }
 0xd34   :  { %v6091_v51 = vmul.f32 %v3457_v42, %v6086_v44  ;;  %v2415_v52 = vsel %vm8865_vm1, %v2343_v49, 0.0  ;;  %v2349_v42 = vmul.f32 %v5972_v3, %v5972_v3  ;;  %v3441_v33 = vperm.slane %v3383_v17, 0 }
 0xd36   :  { %8904 = vst [vmem:[#allocation50_spill] sm:$0xff] %v6091_v51  ;;  %v2433_v37 = vsel %vm8865_vm1, %v2349_v42, 0.0 }
 0xd39   :  { %v648_v55 = vpop.permute.xlu1 %647  ;;  %2407 = vadd.xlane.f32.xlu1 %v2406_v28  ;;  %v1334_v28 = vrot.slane %v5752_v9, 4 }
 0xd3a   :  { %v6096_v56 = vadd.f32 %v648_v55, %v640_v35 }
 0xd3b   :  { %v6117_v49 = vsel %vm8862_vm5, %v5744_v0, %v1334_v28  ;;  %v2060_v0 = vsel %vm8865_vm1, %v5613_v34, 0.0 }
 0xd3c   :  { %4612 = vtanh.f32 %v6096_v56 }
 0xd41   :  { %2416 = vadd.xlane.f32.xlu1 %v2415_v52  ;;  %v2051_v52 = vsel %vm8865_vm1, %v6117_v49, 0.0 }
 0xd42   :  { %v4613_v46 = vpop.eup %4612 }
 0xd43   :  { %653 = vrot.lane.b32.xlu2 %v4613_v46, %s4895_s2  ;;  %v3385_v46 = vrot.slane %v6015_v13, 1 }
 0xd49   :  { %2425 = vadd.xlane.f32.xlu1 %v2424_v53  ;;  %v3444_v53 = vperm.slane %v3385_v46, 0  ;;  %v3391_v46 = vrot.slane %v6015_v13, 7 }
 0xd51   :  { %2434 = vadd.xlane.f32.xlu1 %v2433_v37  ;;  %v3388_v37 = vrot.slane %v6015_v13, 4 }
 0xd53   :  { %v3447_v28 = vperm.slane %v3388_v37, 0  ;;  %v2078_v37 = vsel %vm8865_vm1, %v5641_v58, 0.0 }
 0xd64   :  { %v2056_v6 = vpop.xlane.xlu1 %2055 }
 0xd65   :  { %v2225_v35 = vmul.f32 %v5784_v40, %v2056_v6 }
 0xd67   :  { %v6113_v55 = vsub.f32 %v5959_v50, %v2225_v35 }
 0xd69   :  { %v6120_v3 = vmul.f32 %v3441_v33, %v6113_v55  ;;  %v8906_v33 = vld [vmem:[#allocation37_spill] sm:$0xff] }
 0xd6c   :  { %v2065_v61 = vpop.xlane.xlu1 %2064  ;;  %2052 = vadd.xlane.f32.xlu2 %v2051_v52  ;;  %v2069_v52 = vsel %vm8865_vm1, %v8906_v33, 0.0 }
 0xd6d   :  { %v2228_v9 = vmul.f32 %v5784_v40, %v2065_v61 }
 0xd6f   :  { %v6127_v50 = vsub.f32 %v5501_v48, %v2228_v9 }
 0xd71   :  { %v6130_v42 = vmul.f32 %v3444_v53, %v6127_v50 }
 0xd74   :  { %v2074_v17 = vpop.xlane.xlu1 %2073  ;;  %2061 = vadd.xlane.f32.xlu2 %v2060_v0  ;;  %v3450_v0 = vperm.slane %v3391_v46, 0  ;;  %v2087_v46 = vsel %vm8865_vm1, %v5645_v27, 0.0 }
 0xd75   :  { %v2231_v6 = vmul.f32 %v5784_v40, %v2074_v17  ;;  %v3393_v17 = vrot.slane %v6049_v57, 2 }
 0xd77   :  { %v6137_v35 = vsub.f32 %v5505_v63, %v2231_v6 }
 0xd79   :  { %v6140_v48 = vmul.f32 %v3447_v28, %v6137_v35 }
 0xd7c   :  { %v2083_v61 = vpop.xlane.xlu1 %2082  ;;  %2070 = vadd.xlane.f32.xlu2 %v2069_v52 }
 0xd7d   :  { %v2234_v9 = vmul.f32 %v5784_v40, %v2083_v61  ;;  %v3453_v61 = vperm.slane %v3393_v17, 0  ;;  %v4753_v17 = vld [vmem:[#allocation4 + $0x20] sm:$0xff] }
 0xd7f   :  { %v6147_v53 = vsub.f32 %v5521_v23, %v2234_v9  ;;  %v3396_v9 = vrot.slane %v6049_v57, 5 }
 0xd81   :  { %v6150_v63 = vmul.f32 %v3450_v0, %v6147_v53 }
 0xd84   :  { %v2092_v6 = vpop.xlane.xlu1 %2091  ;;  %2079 = vadd.xlane.f32.xlu2 %v2078_v37 }
 0xd85   :  { %v2237_v28 = vmul.f32 %v5784_v40, %v2092_v6  ;;  %v3456_v6 = vperm.slane %v3396_v9, 0  ;;  %v2105_v9 = vsel %vm8865_vm1, %v5652_v45, 0.0 }
 0xd87   :  { %v6157_v52 = vsub.f32 %v5633_v22, %v2237_v28  ;;  %v6173_v28 = vmul.f32 %v4753_v17, %v5771_v54 }
 0xd89   :  { %v6160_v23 = vmul.f32 %v3453_v61, %v6157_v52  ;;  %v2096_v61 = vsel %vm8865_vm1, %v5655_v25, 0.0  ;;  %v3401_v54 = vrot.slane %v6173_v28, 3 }
 0xd8b   :  { %8907 = vst [vmem:[#allocation26_spill] sm:$0xff] %v6160_v23 }
 0xd8c   :  { %v2101_v0 = vpop.xlane.xlu1 %2100  ;;  %2088 = vadd.xlane.f32.xlu2 %v2087_v46 }
 0xd8d   :  { %v2240_v51 = vmul.f32 %v5784_v40, %v2101_v0 }
 0xd8f   :  { %v6167_v37 = vsub.f32 %v5636_v8, %v2240_v51  ;;  %v3459_v8 = vperm.slane %v6173_v28, 0 }
 0xd91   :  { %v6170_v22 = vmul.f32 %v3456_v6, %v6167_v37 }
 0xd93   :  { %8908 = vst [vmem:[#allocation37_spill] sm:$0xff] %v6170_v22 }
 0xd94   :  { %2097 = vadd.xlane.f32.xlu2 %v2096_v61  ;;  %v2110_v23 = vpop.xlane.xlu1 %2109 }
 0xd95   :  { %v2243_v46 = vmul.f32 %v5784_v40, %v2110_v23 }
 0xd97   :  { %v6179_v0 = vsub.f32 %v6046_v41, %v2243_v46  ;;  %v3462_v46 = vperm.slane %v3401_v54, 0 }
 0xd99   :  { %v6183_v51 = vmul.f32 %v3459_v8, %v6179_v0 }
 0xd9b   :  { %8909 = vst [vmem:[#allocation51_spill] sm:$0xff] %v6183_v51  ;;  %v2114_v51 = vsel %vm8865_vm1, %v5935_v2, 0.0 }
 0xd9c   :  { %2106 = vadd.xlane.f32.xlu2 %v2105_v9  ;;  %v2119_v6 = vpop.xlane.xlu1 %2118  ;;  %v3404_v9 = vrot.slane %v6173_v28, 6 }
 0xd9d   :  { %v2246_v17 = vmul.f32 %v5784_v40, %v2119_v6  ;;  %v654_v61 = vpop.permute.xlu2 %653 }
 0xd9e   :  { %v656_v23 = vmul.f32 %v654_v61, %v5679_v32  ;;  %v2339_v61 = vmul.f32 %v5811_v7, %v5811_v7  ;;  %v2111_v7 = vsel %vm8865_vm1, %v5931_v47, 0.0 }
 0xd9f   :  { %v6191_v41 = vsub.f32 %v6064_v21, %v2246_v17  ;;  %v3465_v21 = vperm.slane %v3404_v9, 0  ;;  %v2123_v17 = vsel %vm8865_vm1, %v5918_v16, 0.0  ;;  %v2348_v9 = vmul.f32 %v5995_v43, %v5995_v43 }
 0xda0   :  { %658 = vrot.lane.b32.xlu0 %v656_v23, %s4896_s3  ;;  %v2403_v23 = vsel %vm8865_vm1, %v2339_v61, 0.0  ;;  %v2354_v43 = vmul.f32 %v6018_v4, %v6018_v4 }
 0xda1   :  { %v6195_v8 = vmul.f32 %v3462_v46, %v6191_v41 }
 0xda2   :  { %v2448_v61 = vsel %vm8865_vm1, %v2354_v43, 0.0 }
 0xda4   :  { %2115 = vadd.xlane.f32.xlu2 %v2114_v51  ;;  %v2128_v22 = vpop.xlane.xlu1 %2127  ;;  %v2345_v51 = vmul.f32 %v5976_v38, %v5976_v38 }
 0xda5   :  { %v2249_v6 = vmul.f32 %v5784_v40, %v2128_v22  ;;  %v2342_v22 = vmul.f32 %v5843_v29, %v5843_v29  ;;  %v2351_v29 = vmul.f32 %v6005_v26, %v6005_v26  ;;  %v2341_v26 = vmul.f32 %v5792_v30, %v5792_v30 }
 0xda6   :  { %v2421_v46 = vsel %vm8865_vm1, %v2345_v51, 0.0  ;;  %v2344_v30 = vmul.f32 %v5824_v62, %v5824_v62 }
 0xda7   :  { %v6202_v32 = vsub.f32 %v6079_v59, %v2249_v6  ;;  %v2412_v59 = vsel %vm8865_vm1, %v2342_v22, 0.0  ;;  %v2430_v6 = vsel %vm8865_vm1, %v2348_v9, 0.0  ;;  %v2439_v38 = vsel %vm8865_vm1, %v2351_v29, 0.0 }
 0xda8   :  { %v2409_v4 = vsel %vm8865_vm1, %v2341_v26, 0.0 }
 0xda9   :  { %v6205_v54 = vmul.f32 %v3465_v21, %v6202_v32  ;;  %v2120_v21 = vsel %vm8865_vm1, %v5938_v5, 0.0 }
 0xdac   :  { %2124 = vadd.xlane.f32.xlu2 %v2123_v17  ;;  %v2129_v17 = vsel %vm8865_vm1, %v5922_v1, 0.0 }
 0xdb4   :  { %2404 = vadd.xlane.f32.xlu2 %v2403_v23  ;;  %v3382_v23 = vrot.slane %v5942_v10, 5 }
 0xdb6   :  { %v3440_v9 = vperm.slane %v3382_v23, 0  ;;  %v2347_v23 = vmul.f32 %v5951_v12, %v5951_v12 }
 0xdbc   :  { %2413 = vadd.xlane.f32.xlu2 %v2412_v59  ;;  %v2357_v59 = vmul.f32 %v6028_v15, %v6028_v15 }
 0xdc4   :  { %2422 = vadd.xlane.f32.xlu2 %v2421_v46 }
 0xdca   :  { %2112 = vadd.xlane.f32.xlu0 %v2111_v7  ;;  %v2457_v7 = vsel %vm8865_vm1, %v2357_v59, 0.0 }
 0xdcc   :  { %2431 = vadd.xlane.f32.xlu2 %v2430_v6 }
 0xdd2   :  { %2121 = vadd.xlane.f32.xlu0 %v2120_v21  ;;  %v2360_v21 = vmul.f32 %v6039_v24, %v6039_v24 }
 0xdd4   :  { %2440 = vadd.xlane.f32.xlu2 %v2439_v38  ;;  %v2418_v38 = vsel %vm8865_vm1, %v2344_v30, 0.0  ;;  %v2350_v30 = vmul.f32 %v5979_v18, %v5979_v18 }
 0xdda   :  { %2130 = vadd.xlane.f32.xlu0 %v2129_v17  ;;  %v3443_v17 = vperm.slane %v6015_v13, 0 }
 0xddc   :  { %2449 = vadd.xlane.f32.xlu2 %v2448_v61  ;;  %v2466_v61 = vsel %vm8865_vm1, %v2360_v21, 0.0 }
 0xddf   :  { %v2053_v22 = vpop.xlane.xlu2 %2052 }
 0xde0   :  { %v2224_v51 = vmul.f32 %v5784_v40, %v2053_v22  ;;  %v3387_v22 = vrot.slane %v6015_v13, 3 }
 0xde2   :  { %v2288_v46 = vsub.f32 %v6117_v49, %v2224_v51  ;;  %2410 = vadd.xlane.f32.xlu0 %v2409_v4  ;;  %v2427_v4 = vsel %vm8865_vm1, %v2347_v23, 0.0 }
 0xde4   :  { %2458 = vadd.xlane.f32.xlu2 %v2457_v7  ;;  %v2352_v6 = vmul.f32 %v2288_v46, %v2288_v46  ;;  %v6242_v29 = vmul.f32 %v3440_v9, %v2288_v46  ;;  %v3446_v9 = vperm.slane %v3387_v22, 0 }
 0xde6   :  { %v2442_v10 = vsel %vm8865_vm1, %v2352_v6, 0.0 }
 0xde7   :  { %2443 = vadd.xlane.f32.xlu1 %v2442_v10  ;;  %v2062_v15 = vpop.xlane.xlu2 %2061 }
 0xde8   :  { %v2227_v49 = vmul.f32 %v5784_v40, %v2062_v15 }
 0xdea   :  { %v2291_v43 = vsub.f32 %v5613_v34, %v2227_v49  ;;  %2419 = vadd.xlane.f32.xlu0 %v2418_v38  ;;  %v2363_v34 = vmul.f32 %v6055_v39, %v6055_v39  ;;  %v3390_v39 = vrot.slane %v6015_v13, 6  ;;  %v2436_v49 = vsel %vm8865_vm1, %v2350_v30, 0.0 }
 0xdeb   :  { %v2353_v13 = vmul.f32 %v6113_v55, %v6113_v55 }
 0xdec   :  { %2467 = vadd.xlane.f32.xlu2 %v2466_v61  ;;  %v2355_v62 = vmul.f32 %v2291_v43, %v2291_v43  ;;  %v6254_v26 = vmul.f32 %v3443_v17, %v2291_v43  ;;  %v2475_v7 = vsel %vm8865_vm1, %v2363_v34, 0.0  ;;  %v3449_v43 = vperm.slane %v3390_v39, 0 }
 0xded   :  { %v2445_v22 = vsel %vm8865_vm1, %v2353_v13, 0.0 }
 0xdee   :  { %v2451_v24 = vsel %vm8865_vm1, %v2355_v62, 0.0 }
 0xdef   :  { %2452 = vadd.xlane.f32.xlu1 %v2451_v24  ;;  %v2071_v59 = vpop.xlane.xlu2 %2070 }
 0xdf0   :  { %v2230_v51 = vmul.f32 %v5784_v40, %v2071_v59 }
 0xdf2   :  { %v2294_v46 = vsub.f32 %v8906_v33, %v2230_v51  ;;  %2428 = vadd.xlane.f32.xlu0 %v2427_v4  ;;  %v2366_v33 = vmul.f32 %v6072_v36, %v6072_v36  ;;  %v3392_v36 = vrot.slane %v6049_v57, 1 }
 0xdf4   :  { %2476 = vadd.xlane.f32.xlu2 %v2475_v7  ;;  %v2358_v12 = vmul.f32 %v2294_v46, %v2294_v46  ;;  %v6266_v6 = vmul.f32 %v3446_v9, %v2294_v46  ;;  %v2484_v17 = vsel %vm8865_vm1, %v2366_v33, 0.0  ;;  %v3452_v34 = vperm.slane %v3392_v36, 0 }
 0xdf5   :  { %v2356_v46 = vmul.f32 %v6127_v50, %v6127_v50  ;;  %v2359_v50 = vmul.f32 %v6137_v35, %v6137_v35  ;;  %v3400_v36 = vrot.slane %v6173_v28, 2 }
 0xdf6   :  { %v2460_v10 = vsel %vm8865_vm1, %v2358_v12, 0.0 }
 0xdf7   :  { %2461 = vadd.xlane.f32.xlu1 %v2460_v10  ;;  %v2080_v15 = vpop.xlane.xlu2 %2079 }
 0xdf8   :  { %v2233_v21 = vmul.f32 %v5784_v40, %v2080_v15 }
 0xdfa   :  { %v2297_v38 = vsub.f32 %v5641_v58, %v2233_v21  ;;  %2437 = vadd.xlane.f32.xlu0 %v2436_v49  ;;  %v2369_v58 = vmul.f32 %v6086_v44, %v6086_v44  ;;  %v3395_v44 = vrot.slane %v6049_v57, 4  ;;  %v3398_v21 = vrot.slane %v6049_v57, 7 }
 0xdfb   :  { %v2362_v57 = vmul.f32 %v6147_v53, %v6147_v53 }
 0xdfc   :  { %2485 = vadd.xlane.f32.xlu2 %v2484_v17  ;;  %v2361_v18 = vmul.f32 %v2297_v38, %v2297_v38  ;;  %v6278_v61 = vmul.f32 %v3449_v43, %v2297_v38  ;;  %v2493_v51 = vsel %vm8865_vm1, %v2369_v58, 0.0  ;;  %v3455_v10 = vperm.slane %v3395_v44, 0 }
 0xdfd   :  { %v2463_v43 = vsel %vm8865_vm1, %v2359_v50, 0.0  ;;  %v2472_v58 = vsel %vm8865_vm1, %v2362_v57, 0.0  ;;  %v2371_v50 = vmul.f32 %v6179_v0, %v6179_v0 }
 0xdfe   :  { %v2469_v62 = vsel %vm8865_vm1, %v2361_v18, 0.0  ;;  %v3458_v18 = vperm.slane %v3398_v21, 0  ;;  %v2374_v21 = vmul.f32 %v6191_v41, %v6191_v41 }
 0xdff   :  { %2470 = vadd.xlane.f32.xlu1 %v2469_v62  ;;  %v2089_v23 = vpop.xlane.xlu2 %2088 }
 0xe00   :  { %v2236_v24 = vmul.f32 %v5784_v40, %v2089_v23 }
 0xe02   :  { %v2300_v59 = vsub.f32 %v5645_v27, %v2236_v24  ;;  %2446 = vadd.xlane.f32.xlu0 %v2445_v22  ;;  %v2454_v27 = vsel %vm8865_vm1, %v2356_v46, 0.0  ;;  %v3403_v46 = vrot.slane %v6173_v28, 5 }
 0xe04   :  { %2494 = vadd.xlane.f32.xlu2 %v2493_v51  ;;  %v2364_v55 = vmul.f32 %v2300_v59, %v2300_v59  ;;  %v6290_v4 = vmul.f32 %v3452_v34, %v2300_v59  ;;  %v3461_v59 = vperm.slane %v3400_v36, 0  ;;  %v2365_v51 = vmul.f32 %v6157_v52, %v6157_v52 }
 0xe05   :  { %v2368_v52 = vmul.f32 %v6167_v37, %v6167_v37  ;;  %v8910_v37 = vld [vmem:[#allocation42_spill] sm:$0xff] }
 0xe06   :  { %v2478_v9 = vsel %vm8865_vm1, %v2364_v55, 0.0  ;;  %v2481_v44 = vsel %vm8865_vm1, %v2365_v51, 0.0  ;;  %v3405_v51 = vrot.slane %v6173_v28, 7 }
 0xe07   :  { %2479 = vadd.xlane.f32.xlu1 %v2478_v9  ;;  %v2098_v7 = vpop.xlane.xlu2 %2097 }
 0xe08   :  { %v2239_v12 = vmul.f32 %v5784_v40, %v2098_v7 }
 0xe0a   :  { %v2303_v30 = vsub.f32 %v5655_v25, %v2239_v12  ;;  %2455 = vadd.xlane.f32.xlu0 %v2454_v27  ;;  %v3464_v12 = vperm.slane %v3403_v46, 0 }
 0xe0c   :  { %v2367_v39 = vmul.f32 %v2303_v30, %v2303_v30  ;;  %v6299_v15 = vmul.f32 %v3455_v10, %v2303_v30 }
 0xe0e   :  { %v2487_v33 = vsel %vm8865_vm1, %v2367_v39, 0.0  ;;  %v2490_v39 = vsel %vm8865_vm1, %v2368_v52, 0.0  ;;  %v8913_v52 = vld [vmem:[#allocation39_spill] sm:$0xff] }
 0xe0f   :  { %2488 = vadd.xlane.f32.xlu1 %v2487_v33  ;;  %v2107_v49 = vpop.xlane.xlu2 %2106  ;;  %v2499_v33 = vsel %vm8865_vm1, %v2371_v50, 0.0 }
 0xe10   :  { %v2242_v38 = vmul.f32 %v5784_v40, %v2107_v49  ;;  %v3628_v49 = vsel %vm8865_vm1, %v8910_v37, 0.0 }
 0xe12   :  { %v2306_v25 = vsub.f32 %v5652_v45, %v2242_v38  ;;  %2464 = vadd.xlane.f32.xlu0 %v2463_v43  ;;  %v659_v17 = vpop.permute.xlu0 %658  ;;  %v2508_v38 = vsel %vm8865_vm1, %v2374_v21, 0.0  ;;  %v3399_v43 = vrot.slane %v6173_v28, 1 }
 0xe13   :  { %662 = vst.msk [vmem:[#allocation3 + $0x28] sm:$0xff] %vm8865_vm1, %v659_v17  ;;  %4543 = vmatmul.msk.f32.vlgmr.msrb.gmra.mxu3 %vm8865_vm1, %v659_v17  ;;  %v3637_v17 = vsel %vm8865_vm1, %v5985_v60, 0.0 }
 0xe14   :  { %v2370_v35 = vmul.f32 %v2306_v25, %v2306_v25  ;;  %v6310_v13 = vmul.f32 %v3458_v18, %v2306_v25  ;;  %v3460_v18 = vperm.slane %v3399_v43, 0 }
 0xe16   :  { %v2496_v62 = vsel %vm8865_vm1, %v2370_v35, 0.0 }
 0xe17   :  { %2497 = vadd.xlane.f32.xlu1 %v2496_v62  ;;  %v2116_v23 = vpop.xlane.xlu2 %2115 }
 0xe18   :  { %v2245_v45 = vmul.f32 %v5784_v40, %v2116_v23  ;;  %v3402_v23 = vrot.slane %v6173_v28, 4  ;;  %v3625_v28 = vsel %vm8865_vm1, %v8913_v52, 0.0 }
 0xe1a   :  { %v2309_v24 = vsub.f32 %v5935_v2, %v2245_v45  ;;  %2473 = vadd.xlane.f32.xlu0 %v2472_v58  ;;  %v776_v22 = vld [vmem:[#allocation3 + $0x28] sm:$0xff]  ;;  %v3463_v58 = vperm.slane %v3402_v23, 0 }
 0xe1b   :  { %4550 = vmatmul.msk.f32.gmra.mxu0 %vm8865_vm1, %v776_v22  ;;  %4558 = vmatmul.msk.f32.gmra.mxu1 %vm8865_vm1, %v776_v22 }
 0xe1c   :  { %v2373_v53 = vmul.f32 %v2309_v24, %v2309_v24  ;;  %v6321_v34 = vmul.f32 %v3461_v59, %v2309_v24  ;;  %v8911_v24 = vld [vmem:[#allocation38_spill] sm:$0xff] }
 0xe1e   :  { %v2505_v55 = vsel %vm8865_vm1, %v2373_v53, 0.0 }
 0xe1f   :  { %2506 = vadd.xlane.f32.xlu1 %v2505_v55  ;;  %v2125_v9 = vpop.xlane.xlu2 %2124 }
 0xe20   :  { %v2248_v2 = vmul.f32 %v5784_v40, %v2125_v9 }
 0xe22   :  { %v2312_v7 = vsub.f32 %v5918_v16, %v2248_v2  ;;  %2482 = vadd.xlane.f32.xlu0 %v2481_v44  ;;  %v3619_v16 = vsel %vm8865_vm1, %v5820_v31, 0.0  ;;  %v2377_v31 = vmul.f32 %v6202_v32, %v6202_v32  ;;  %v3466_v2 = vperm.slane %v3405_v51, 0 }
 0xe24   :  { %v2376_v27 = vmul.f32 %v2312_v7, %v2312_v7  ;;  %v6330_v30 = vmul.f32 %v3464_v12, %v2312_v7  ;;  %v2517_v35 = vsel %vm8865_vm1, %v2377_v31, 0.0 }
 0xe26   :  { %v2514_v10 = vsel %vm8865_vm1, %v2376_v27, 0.0 }
 0xe27   :  { %2515 = vadd.xlane.f32.xlu1 %v2514_v10  ;;  %v6375_v10 = vpop.xlane.xlu2 %2404 }
 0xe2a   :  { %2491 = vadd.xlane.f32.xlu0 %v2490_v39  ;;  %v8914_v39 = vld [vmem:[#allocation41_spill] sm:$0xff] }
 0xe2f   :  { %3620 = vadd.xlane.f32.xlu1 %v3619_v16  ;;  %v6379_v50 = vpop.xlane.xlu2 %2413  ;;  %v6381_v16 = vpop.xlane.xlu1 %2407 }
 0xe30   :  { %8915 = vst [vmem:[#allocation42_spill] sm:$0xff] %v6379_v50 }
 0xe32   :  { %2500 = vadd.xlane.f32.xlu0 %v2499_v33 }
 0xe37   :  { %3629 = vadd.xlane.f32.xlu1 %v3628_v49  ;;  %v6383_v33 = vpop.xlane.xlu2 %2422  ;;  %v6387_v37 = vpop.xlane.xlu1 %2416 }
 0xe38   :  { %8916 = vst [vmem:[#allocation38_spill] sm:$0xff] %v6383_v33 }
 0xe3a   :  { %2509 = vadd.xlane.f32.xlu0 %v2508_v38 }
 0xe3d   :  { %v2113_v0 = vpop.xlane.xlu0 %2112 }
 0xe3e   :  { %v2244_v25 = vmul.f32 %v5784_v40, %v2113_v0 }
 0xe3f   :  { %3638 = vadd.xlane.f32.xlu1 %v3637_v17  ;;  %v6389_v49 = vpop.xlane.xlu2 %2431  ;;  %v6393_v43 = vpop.xlane.xlu1 %2425 }
 0xe40   :  { %v2308_v41 = vsub.f32 %v5931_v47, %v2244_v25  ;;  %v3622_v47 = vsel %vm8865_vm1, %v8911_v24, 0.0  ;;  %8918 = vst [vmem:[#allocation39_spill] sm:$0xff] %v6389_v49 }
 0xe41   :  { %8920 = vst [vmem:[#allocation52_spill] sm:$0xff] %v6393_v43 }
 0xe42   :  { %2518 = vadd.xlane.f32.xlu0 %v2517_v35  ;;  %v2372_v57 = vmul.f32 %v2308_v41, %v2308_v41  ;;  %v6354_v62 = vmul.f32 %v3460_v18, %v2308_v41  ;;  %v8925_v18 = vld [vmem:[#allocation18_spill] sm:$0xff] }
 0xe43   :  { %v8926_v35 = vld [vmem:[#allocation22_spill] sm:$0xff] }
 0xe44   :  { %v2502_v36 = vsel %vm8865_vm1, %v2372_v57, 0.0  ;;  %v181_v57 = vadd.f32 %v8926_v35, %v8925_v18 }
 0xe45   :  { %2503 = vadd.xlane.f32.xlu2 %v2502_v36  ;;  %v2122_v32 = vpop.xlane.xlu0 %2121 }
 0xe46   :  { %v2247_v45 = vmul.f32 %v5784_v40, %v2122_v32 }
 0xe47   :  { %v6395_v0 = vpop.xlane.xlu2 %2440  ;;  %v6399_v25 = vpop.xlane.xlu1 %2434 }
 0xe48   :  { %v2311_v60 = vsub.f32 %v5938_v5, %v2247_v45  ;;  %v8912_v5 = vld [vmem:[#allocation40_spill] sm:$0xff]  ;;  %8921 = vst [vmem:[#allocation53_spill] sm:$0xff] %v6395_v0 }
 0xe49   :  { %v3631_v44 = vsel %vm8865_vm1, %v8912_v5, 0.0  ;;  %8917 = vst [vmem:[#allocation40_spill] sm:$0xff] %v6387_v37 }
 0xe4a   :  { %3623 = vadd.xlane.f32.xlu0 %v3622_v47  ;;  %v2375_v22 = vmul.f32 %v2311_v60, %v2311_v60  ;;  %v6362_v59 = vmul.f32 %v3463_v58, %v2311_v60  ;;  %8923 = vst [vmem:[#allocation55_spill] sm:$0xff] %v6399_v25  ;;  %v8929_v60 = vld [vmem:[#allocation24_spill] sm:$0xff] }
 0xe4c   :  { %v2511_v53 = vsel %vm8865_vm1, %v2375_v22, 0.0 }
 0xe4d   :  { %2512 = vadd.xlane.f32.xlu2 %v2511_v53  ;;  %v2131_v55 = vpop.xlane.xlu0 %2130  ;;  %v8932_v53 = vld [vmem:[#allocation25_spill] sm:$0xff] }
 0xe4e   :  { %v2250_v46 = vmul.f32 %v5784_v40, %v2131_v55 }
 0xe4f   :  { %v6401_v17 = vpop.xlane.xlu2 %2449 }
 0xe50   :  { %v2314_v9 = vsub.f32 %v5922_v1, %v2250_v46  ;;  %v3634_v1 = vsel %vm8865_vm1, %v8914_v39, 0.0  ;;  %8924 = vst [vmem:[#allocation56_spill] sm:$0xff] %v6401_v17 }
 0xe52   :  { %3632 = vadd.xlane.f32.xlu0 %v3631_v44  ;;  %v2378_v7 = vmul.f32 %v2314_v9, %v2314_v9  ;;  %v6370_v12 = vmul.f32 %v3466_v2, %v2314_v9  ;;  %v8934_v9 = vld [vmem:[#allocation20_spill] sm:$0xff]  ;;  %v8936_v44 = vld [vmem:[#allocation21_spill] sm:$0xff] }
 0xe54   :  { %v2520_v27 = vsel %vm8865_vm1, %v2378_v7, 0.0 }
 0xe55   :  { %2521 = vadd.xlane.f32.xlu2 %v2520_v27  ;;  %v6385_v21 = vpop.xlane.xlu0 %2410 }
 0xe57   :  { %v6413_v47 = vpop.xlane.xlu2 %2458 }
 0xe58   :  { %8930 = vst [vmem:[#allocation57_spill] sm:$0xff] %v6413_v47 }
 0xe5a   :  { %v6407_v23 = vpop.xlane.xlu1 %2443 }
 0xe5b   :  { %8928 = vst [vmem:[#allocation22_spill] sm:$0xff] %v6407_v23 }
 0xe5d   :  { %3626 = vadd.xlane.f32.xlu2 %v3625_v28  ;;  %v6391_v38 = vpop.xlane.xlu0 %2419 }
 0xe5e   :  { %8919 = vst [vmem:[#allocation41_spill] sm:$0xff] %v6391_v38 }
 0xe5f   :  { %v6424_v5 = vpop.xlane.xlu2 %2467 }
 0xe60   :  { %8935 = vst [vmem:[#allocation20_spill] sm:$0xff] %v6424_v5 }
 0xe62   :  { %v6418_v55 = vpop.xlane.xlu1 %2452 }
 0xe63   :  { %8933 = vst [vmem:[#allocation59_spill] sm:$0xff] %v6418_v55 }
 0xe65   :  { %3635 = vadd.xlane.f32.xlu2 %v3634_v1  ;;  %v6397_v31 = vpop.xlane.xlu0 %2428 }
 0xe66   :  { %8922 = vst [vmem:[#allocation54_spill] sm:$0xff] %v6397_v31 }
 0xe67   :  { %v6435_v28 = vpop.xlane.xlu2 %2476 }
 0xe68   :  { %8939 = vst [vmem:[#allocation61_spill] sm:$0xff] %v6435_v28 }
 0xe6a   :  { %v6431_v52 = vpop.xlane.xlu1 %2461 }
 0xe6b   :  { %8938 = vst [vmem:[#allocation60_spill] sm:$0xff] %v6431_v52 }
 0xe6d   :  { %v6405_v36 = vpop.xlane.xlu0 %2437 }
 0xe6e   :  { %8927 = vst [vmem:[#allocation18_spill] sm:$0xff] %v6405_v36 }
 0xe72   :  { %v6439_v1 = vpop.xlane.xlu1 %2470 }
 0xe73   :  { %8941 = vst [vmem:[#allocation63_spill] sm:$0xff] %v6439_v1 }
 0xe75   :  { %v6415_v22 = vpop.xlane.xlu0 %2446 }
 0xe76   :  { %8931 = vst [vmem:[#allocation58_spill] sm:$0xff] %v6415_v22 }
 0xe7d   :  { %v6429_v27 = vpop.xlane.xlu0 %2455 }
 0xe7e   :  { %8937 = vst [vmem:[#allocation21_spill] sm:$0xff] %v6429_v27 }
 0xe85   :  { %v6437_v39 = vpop.xlane.xlu0 %2464 }
 0xe86   :  { %8940 = vst [vmem:[#allocation62_spill] sm:$0xff] %v6437_v39 }
 0xe8d   :  { %v6443_v35 = vpop.xlane.xlu0 %2473 }
 0xe8e   :  { %8943 = vst [vmem:[#allocation65_spill] sm:$0xff] %v6443_v35 }
 0xe96   :  { %v684_v41 = vpop.f32.mrf.mxu3 }
 0xe97   :  { %v687_v45 = vadd.f32 %v684_v41, %v181_v57  ;;  %v6441_v41 = vpop.xlane.xlu2 %2485  ;;  %v6445_v57 = vpop.xlane.xlu1 %2479 }
 0xe98   :  { %v905_v32 = vpop.f32.mrf.mxu0  ;;  %v946_v24 = vpop.f32.mrf.mxu1  ;;  %8942 = vst [vmem:[#allocation64_spill] sm:$0xff] %v6441_v41 }
 0xe99   :  { %v906_v58 = vadd.f32 %v905_v32, %v8929_v60  ;;  %4614 = vtanh.f32 %v687_v45  ;;  %v947_v51 = vadd.f32 %v946_v24, %v8932_v53  ;;  %8944 = vst [vmem:[#allocation66_spill] sm:$0xff] %v6445_v57  ;;  %v6449_v45 = vpop.xlane.xlu0 %2482 }
 0xe9a   :  { %8946 = vst [vmem:[#allocation68_spill] sm:$0xff] %v6449_v45 }
 0xe9b   :  { %1021 = vrot.lane.b32.xlu0 %v906_v58, %s4896_s3  ;;  %997 = vrot.lane.b32.xlu2 %v906_v58, %s4895_s2  ;;  %v1678_v1 = vrot.slane %v906_v58, 4  ;;  %v1702_v38 = vrot.slane %v947_v51, 4 }
 0xe9c   :  { %973 = vrot.lane.b32.xlu1 %v906_v58, %s4897_s4 }
 0xe9f   :  { %v4615_v46 = vpop.eup %4614  ;;  %v6447_v32 = vpop.xlane.xlu2 %2494 }
 0xea0   :  { %v689_v2 = vmul.f32 %v4615_v46, %v8934_v9  ;;  %8945 = vst [vmem:[#allocation67_spill] sm:$0xff] %v6447_v32  ;;  %v6451_v24 = vpop.xlane.xlu1 %2488 }
 0xea1   :  { %8947 = vst [vmem:[#allocation69_spill] sm:$0xff] %v6451_v24 }
 0xea2   :  { %v6427_v7 = vadd.f32 %v689_v2, %v8936_v44  ;;  %v6455_v2 = vpop.xlane.xlu0 %2491 }
 0xea3   :  { %1101 = vrot.lane.b32.xlu0 %v947_v51, %s4896_s3  ;;  %1077 = vrot.lane.b32.xlu2 %v947_v51, %s4895_s2  ;;  %8949 = vst [vmem:[#allocation71_spill] sm:$0xff] %v6455_v2 }
 0xea4   :  { %1053 = vrot.lane.b32.xlu1 %v947_v51, %s4897_s4 }
 0xea8   :  { %v6457_v27 = vpop.xlane.xlu1 %2497 }
 0xea9   :  { %8950 = vst [vmem:[#allocation72_spill] sm:$0xff] %v6457_v27 }
 0xeaa   :  { %v6461_v22 = vpop.xlane.xlu0 %2500 }
 0xeab   :  { %8952 = vst [vmem:[#allocation74_spill] sm:$0xff] %v6461_v22 }
 0xeac   :  { %693 = vrot.lane.b32.xlu1 %v6427_v7, %s4895_s2 }
 0xeb0   :  { %v6463_v41 = vpop.xlane.xlu1 %2506 }
 0xeb1   :  { %8953 = vst [vmem:[#allocation75_spill] sm:$0xff] %v6463_v41 }
 0xeb2   :  { %v6467_v57 = vpop.xlane.xlu0 %2509 }
 0xeb3   :  { %8955 = vst [vmem:[#allocation77_spill] sm:$0xff] %v6467_v57 }
 0xeb8   :  { %v6453_v46 = vpop.xlane.xlu2 %2503  ;;  %v6469_v32 = vpop.xlane.xlu1 %2515 }
 0xeb9   :  { %8948 = vst [vmem:[#allocation70_spill] sm:$0xff] %v6453_v46 }
 0xeba   :  { %8956 = vst [vmem:[#allocation78_spill] sm:$0xff] %v6469_v32  ;;  %v6473_v24 = vpop.xlane.xlu0 %2518 }
 0xebb   :  { %8957 = vst [vmem:[#allocation79_spill] sm:$0xff] %v6473_v24 }
 0xec0   :  { %v6459_v39 = vpop.xlane.xlu2 %2512  ;;  %v6475_v46 = vpop.xlane.xlu1 %3620 }
 0xec1   :  { %8951 = vst [vmem:[#allocation73_spill] sm:$0xff] %v6459_v39 }
 0xec2   :  { %v6479_v27 = vpop.xlane.xlu0 %3623 }
 0xec8   :  { %v6465_v35 = vpop.xlane.xlu2 %2521  ;;  %v6481_v39 = vpop.xlane.xlu1 %3629 }
 0xec9   :  { %8954 = vst [vmem:[#allocation76_spill] sm:$0xff] %v6465_v35 }
 0xeca   :  { %8959 = vst [vmem:[#allocation81_spill] sm:$0xff] %v6481_v39  ;;  %v6483_v41 = vpop.xlane.xlu0 %3632 }
 0xecb   :  { %8960 = vst [vmem:[#allocation82_spill] sm:$0xff] %v6483_v41 }
 0xed0   :  { %v6471_v45 = vpop.xlane.xlu2 %3626  ;;  %v6485_v35 = vpop.xlane.xlu1 %3638 }
 0xed1   :  { %8961 = vst [vmem:[#allocation83_spill] sm:$0xff] %v6485_v35 }
 0xed8   :  { %v6477_v2 = vpop.xlane.xlu2 %3635 }
 0xed9   :  { %8958 = vst [vmem:[#allocation80_spill] sm:$0xff] %v6477_v2  ;;  %v8962_v2 = vld [vmem:[#allocation35_spill] sm:$0xff] }
 0xef5   :  { %v998_v22 = vpop.permute.xlu2 %997 }
 0xef6   :  { %v1676_v32 = vrot.slane %v998_v22, 4  ;;  %v1679_v36 = vsel %vm8862_vm5, %v998_v22, %v1678_v1 }
 0xef7   :  { %v1687_v55 = vperm.slane %v1679_v36, %v8962_v2 }
 0xef8   :  { %v1677_v39 = vsel %vm8862_vm5, %v1676_v32, %v906_v58 }
 0xef9   :  { %v1683_v1 = vperm.slane %v1677_v39, %v8962_v2  ;;  %v1738_v17 = vrot.slane %v1687_v55, 4 }
 0xefd   :  { %v1078_v57 = vpop.permute.xlu2 %1077 }
 0xefe   :  { %v1700_v28 = vrot.slane %v1078_v57, 4  ;;  %v1703_v22 = vsel %vm8862_vm5, %v1078_v57, %v1702_v38 }
 0xeff   :  { %v1711_v58 = vperm.slane %v1703_v22, %v8962_v2 }
 0xf00   :  { %v1701_v47 = vsel %vm8862_vm5, %v1700_v28, %v947_v51 }
 0xf01   :  { %v1707_v0 = vperm.slane %v1701_v47, %v8962_v2  ;;  %v1762_v33 = vrot.slane %v1711_v58, 4 }
 0xf03   :  { %v1750_v28 = vrot.slane %v1707_v0, 4 }
 0xf0d   :  { %v1022_v24 = vpop.permute.xlu0 %1021 }
 0xf0e   :  { %v1688_v52 = vrot.slane %v1022_v24, 4  ;;  %v974_v31 = vpop.permute.xlu1 %973 }
 0xf0f   :  { %v1690_v5 = vrot.slane %v974_v31, 4 }
 0xf10   :  { %v1689_v41 = vsel %vm8862_vm5, %v1688_v52, %v974_v31 }
 0xf11   :  { %v1691_v35 = vsel %vm8862_vm5, %v1022_v24, %v1690_v5  ;;  %v1695_v36 = vperm.slane %v1689_v41, %v8962_v2  ;;  %v1726_v5 = vrot.slane %v1683_v1, 4  ;;  %v8963_v24 = vld [vmem:[#allocation36_spill] sm:$0xff] }
 0xf12   :  { %v1699_v23 = vperm.slane %v1691_v35, %v8962_v2 }
 0xf13   :  { %v1724_v35 = vrot.slane %v1695_v36, 4 }
 0xf14   :  { %v1739_v31 = vsel %vm8862_vm5, %v1699_v23, %v1738_v17  ;;  %v1736_v57 = vrot.slane %v1699_v23, 4  ;;  %v1727_v17 = vsel %vm8862_vm5, %v1695_v36, %v1726_v5 }
 0xf15   :  { %v1102_v49 = vpop.permute.xlu0 %1101  ;;  %v1747_v41 = vperm.slane %v1739_v31, %v8963_v24  ;;  %v1725_v23 = vsel %vm8862_vm5, %v1724_v35, %v1683_v1 }
 0xf16   :  { %v1712_v32 = vrot.slane %v1102_v49, 4  ;;  %v1054_v51 = vpop.permute.xlu1 %1053  ;;  %v1737_v31 = vsel %vm8862_vm5, %v1736_v57, %v1687_v55 }
 0xf17   :  { %v1714_v52 = vrot.slane %v1054_v51, 4  ;;  %v1743_v1 = vperm.slane %v1737_v31, %v8963_v24 }
 0xf18   :  { %v1713_v38 = vsel %vm8862_vm5, %v1712_v32, %v1054_v51  ;;  %v1786_v51 = vrot.slane %v1747_v41, 4 }
 0xf19   :  { %v1715_v39 = vsel %vm8862_vm5, %v1102_v49, %v1714_v52  ;;  %v1719_v47 = vperm.slane %v1713_v38, %v8962_v2  ;;  %v1735_v38 = vperm.slane %v1727_v17, %v8963_v24 }
 0xf1a   :  { %v1723_v22 = vperm.slane %v1715_v39, %v8962_v2 }
 0xf1b   :  { %v1748_v50 = vrot.slane %v1719_v47, 4  ;;  %v1751_v25 = vsel %vm8862_vm5, %v1719_v47, %v1750_v28 }
 0xf1c   :  { %v1760_v43 = vrot.slane %v1723_v22, 4  ;;  %v1763_v37 = vsel %vm8862_vm5, %v1723_v22, %v1762_v33  ;;  %v1759_v32 = vperm.slane %v1751_v25, %v8963_v24  ;;  %v1731_v33 = vperm.slane %v1725_v23, %v8963_v24 }
 0xf1d   :  { %v1771_v49 = vperm.slane %v1763_v37, %v8963_v24  ;;  %v1749_v28 = vsel %vm8862_vm5, %v1748_v50, %v1707_v0 }
 0xf1e   :  { %v694_v52 = vpop.permute.xlu1 %693  ;;  %v1776_v39 = vrot.slane %v1759_v32, 4  ;;  %v1761_v25 = vsel %vm8862_vm5, %v1760_v43, %v1711_v58  ;;  %v1755_v0 = vperm.slane %v1749_v28, %v8963_v24  ;;  %v1774_v43 = vrot.slane %v1731_v33, 4 }
 0xf1f   :  { %v696_v36 = vmul.f32 %v694_v52, %v6427_v7  ;;  %v6516_v5 = vsel %vm8862_vm5, %v1771_v49, %v1786_v51  ;;  %v1767_v35 = vperm.slane %v1761_v25, %v8963_v24  ;;  %v1782_v58 = vrot.slane %v1743_v1, 4 }
 0xf20   :  { %v2153_v37 = vsel %vm8865_vm1, %v6516_v5, 0.0  ;;  %v6523_v55 = vsel %vm8862_vm5, %v1776_v39, %v1735_v38  ;;  %v6532_v57 = vsel %vm8862_vm5, %v1755_v0, %v1774_v43  ;;  %v3646_v52 = vsel %vm8865_vm1, %v5998_v19, 0.0 }
 0xf21   :  { %698 = vrot.lane.b32.xlu2 %v696_v36, %s4896_s3  ;;  %2154 = vadd.xlane.f32.xlu1 %v2153_v37  ;;  %v2138_v50 = vsel %vm8865_vm1, %v6523_v55, 0.0  ;;  %v6535_v47 = vsel %vm8862_vm5, %v1767_v35, %v1782_v58  ;;  %v2135_v22 = vsel %vm8865_vm1, %v6532_v57, 0.0  ;;  %v1780_v23 = vrot.slane %v1767_v35, 4  ;;  %v8966_v58 = vld [vmem:[#allocation46_spill] sm:$0xff] }
 0xf22   :  { %2139 = vadd.xlane.f32.xlu0 %v2138_v50  ;;  %v2147_v17 = vsel %vm8865_vm1, %v6535_v47, 0.0  ;;  %v3655_v39 = vsel %vm8865_vm1, %v6008_v11, 0.0  ;;  %v1784_v28 = vrot.slane %v1771_v49, 4  ;;  %v3664_v25 = vsel %vm8865_vm1, %v6021_v20, 0.0  ;;  %v8964_v50 = vld [vmem:[#allocation47_spill] sm:$0xff] }
 0xf23   :  { %v6542_v51 = vsel %vm8862_vm5, %v1780_v23, %v1743_v1  ;;  %v1772_v1 = vrot.slane %v1755_v0, 4  ;;  %v3673_v11 = vsel %vm8865_vm1, %v8964_v50, 0.0  ;;  %v1778_v49 = vrot.slane %v1735_v38, 4  ;;  %v8965_v0 = vld [vmem:[#allocation44_spill] sm:$0xff] }
 0xf24   :  { %v2144_v31 = vsel %vm8865_vm1, %v6542_v51, 0.0  ;;  %v6551_v36 = vsel %vm8862_vm5, %v1784_v28, %v1747_v41  ;;  %v3682_v35 = vsel %vm8865_vm1, %v6042_v14, 0.0  ;;  %v3643_v43 = vsel %vm8865_vm1, %v8965_v0, 0.0 }
 0xf25   :  { %v2150_v37 = vsel %vm8865_vm1, %v6551_v36, 0.0  ;;  %v6558_v19 = vsel %vm8862_vm5, %v1772_v1, %v1731_v33  ;;  %v6565_v20 = vsel %vm8862_vm5, %v1759_v32, %v1778_v49  ;;  %v3661_v32 = vsel %vm8865_vm1, %v6120_v3, 0.0 }
 0xf26   :  { %v2132_v41 = vsel %vm8865_vm1, %v6558_v19, 0.0  ;;  %v2141_v33 = vsel %vm8865_vm1, %v6565_v20, 0.0  ;;  %v3670_v14 = vsel %vm8865_vm1, %v6130_v42, 0.0  ;;  %v691_v38 = vmul.f32 %v6427_v7, %v6096_v56  ;;  %v4754_v42 = vld [vmem:[#allocation4 + $0x28] sm:$0xff]  ;;  %v6592_v56 = vld [vmem:[%s8821_s10] ss:$0 sm:$0xff] }
 0xf27   :  { %v3688_v3 = vsel %vm8865_vm1, %v6150_v63, 0.0 }
 0xf29   :  { %2136 = vadd.xlane.f32.xlu1 %v2135_v22  ;;  %v3652_v22 = vsel %vm8865_vm1, %v8966_v58, 0.0 }
 0xf2a   :  { %2148 = vadd.xlane.f32.xlu0 %v2147_v17 }
 0xf31   :  { %2145 = vadd.xlane.f32.xlu1 %v2144_v31  ;;  %v3679_v31 = vsel %vm8865_vm1, %v6140_v48, 0.0 }
 0xf39   :  { %3647 = vadd.xlane.f32.xlu1 %v3646_v52 }
 0xf41   :  { %3656 = vadd.xlane.f32.xlu1 %v3655_v39  ;;  %v6595_v39 = vmul.f32 %v6592_v56, %v4754_v42 }
 0xf43   :  { %v3412_v28 = vrot.slane %v6595_v39, 7  ;;  %v3410_v58 = vrot.slane %v6595_v39, 5 }
 0xf49   :  { %3665 = vadd.xlane.f32.xlu1 %v3664_v25  ;;  %v3407_v25 = vrot.slane %v6595_v39, 2 }
 0xf4a   :  { %2151 = vadd.xlane.f32.xlu2 %v2150_v37 }
 0xf4b   :  { %v3469_v49 = vperm.slane %v3407_v25, 0 }
 0xf51   :  { %3674 = vadd.xlane.f32.xlu1 %v3673_v11  ;;  %v3474_v11 = vperm.slane %v3412_v28, 0  ;;  %v8969_v28 = vld [vmem:[#allocation37_spill] sm:$0xff] }
 0xf52   :  { %2133 = vadd.xlane.f32.xlu2 %v2132_v41 }
 0xf59   :  { %3683 = vadd.xlane.f32.xlu1 %v3682_v35 }
 0xf5a   :  { %2142 = vadd.xlane.f32.xlu2 %v2141_v33 }
 0xf62   :  { %3644 = vadd.xlane.f32.xlu2 %v3643_v43 }
 0xf6a   :  { %3653 = vadd.xlane.f32.xlu2 %v3652_v22 }
 0xf72   :  { %3662 = vadd.xlane.f32.xlu2 %v3661_v32 }
 0xf7a   :  { %3671 = vadd.xlane.f32.xlu2 %v3670_v14  ;;  %v3472_v14 = vperm.slane %v3410_v58, 0 }
 0xf7b   :  { %v699_v17 = vpop.permute.xlu2 %698 }
 0xf7c   :  { %v6581_v23 = vadd.f32 %v699_v17, %v691_v38 }
 0xf7e   :  { %4616 = vtanh.f32 %v6581_v23 }
 0xf82   :  { %3680 = vadd.xlane.f32.xlu2 %v3679_v31  ;;  %v8967_v31 = vld [vmem:[#allocation26_spill] sm:$0xff] }
 0xf84   :  { %v4617_v52 = vpop.eup %4616 }
 0xf85   :  { %704 = vrot.lane.b32.xlu0 %v4617_v52, %s4895_s2  ;;  %v3697_v52 = vsel %vm8865_vm1, %v8967_v31, 0.0 }
 0xf8a   :  { %3689 = vadd.xlane.f32.xlu2 %v3688_v3  ;;  %v8968_v3 = vld [vmem:[#allocation43_spill] sm:$0xff] }
 0xf8b   :  { %v3640_v42 = vsel %vm8865_vm1, %v8968_v3, 0.0 }
 0xf94   :  { %v2155_v48 = vpop.xlane.xlu1 %2154 }
 0xf95   :  { %v2258_v37 = vmul.f32 %v5784_v40, %v2155_v48  ;;  %v2140_v1 = vpop.xlane.xlu0 %2139  ;;  %v3706_v48 = vsel %vm8865_vm1, %v8969_v28, 0.0 }
 0xf96   :  { %v2253_v63 = vmul.f32 %v5784_v40, %v2140_v1 }
 0xf97   :  { %v6602_v50 = vsub.f32 %v6516_v5, %v2258_v37  ;;  %v8971_v37 = vld [vmem:[#allocation51_spill] sm:$0xff] }
 0xf98   :  { %v2317_v41 = vsub.f32 %v6523_v55, %v2253_v63  ;;  %v3715_v1 = vsel %vm8865_vm1, %v8971_v37, 0.0  ;;  %v3411_v63 = vrot.slane %v6595_v39, 6 }
 0xf99   :  { %v6606_v35 = vmul.f32 %v3474_v11, %v6602_v50 }
 0xf9a   :  { %v2381_v33 = vmul.f32 %v2317_v41, %v2317_v41  ;;  %v6608_v0 = vmul.f32 %v3469_v49, %v2317_v41  ;;  %v3658_v49 = vsel %vm8865_vm1, %v6242_v29, 0.0  ;;  %v3667_v29 = vsel %vm8865_vm1, %v6254_v26, 0.0 }
 0xf9b   :  { %v3408_v26 = vrot.slane %v6595_v39, 3 }
 0xf9c   :  { %v2529_v43 = vsel %vm8865_vm1, %v2381_v33, 0.0 }
 0xf9d   :  { %v2149_v22 = vpop.xlane.xlu0 %2148  ;;  %2530 = vadd.xlane.f32.xlu2 %v2529_v43  ;;  %v3473_v43 = vperm.slane %v3411_v63, 0 }
 0xf9e   :  { %v2256_v32 = vmul.f32 %v5784_v40, %v2149_v22 }
 0xfa0   :  { %v2320_v5 = vsub.f32 %v6535_v47, %v2256_v32  ;;  %v8970_v47 = vld [vmem:[#allocation45_spill] sm:$0xff]  ;;  %v2137_v32 = vpop.xlane.xlu1 %2136 }
 0xfa1   :  { %v3649_v25 = vsel %vm8865_vm1, %v8970_v47, 0.0  ;;  %v3733_v47 = vsel %vm8865_vm1, %v6205_v54, 0.0 }
 0xfa2   :  { %v2384_v38 = vmul.f32 %v2320_v5, %v2320_v5  ;;  %v6614_v55 = vmul.f32 %v3472_v14, %v2320_v5  ;;  %v3724_v14 = vsel %vm8865_vm1, %v6195_v8, 0.0 }
 0xfa4   :  { %v2538_v17 = vsel %vm8865_vm1, %v2384_v38, 0.0 }
 0xfa5   :  { %2539 = vadd.xlane.f32.xlu2 %v2538_v17 }
 0xfad   :  { %3698 = vadd.xlane.f32.xlu2 %v3697_v52  ;;  %v3467_v52 = vperm.slane %v6595_v39, 0 }
 0xfaf   :  { %3641 = vadd.xlane.f32.xlu0 %v3640_v42  ;;  %v3406_v42 = vrot.slane %v6595_v39, 1 }
 0xfb1   :  { %v3468_v63 = vperm.slane %v3406_v42, 0  ;;  %v3712_v42 = vsel %vm8865_vm1, %v6310_v13, 0.0 }
 0xfb5   :  { %3707 = vadd.xlane.f32.xlu2 %v3706_v48 }
 0xfb7   :  { %3650 = vadd.xlane.f32.xlu0 %v3649_v25  ;;  %v2146_v25 = vpop.xlane.xlu1 %2145 }
 0xfbd   :  { %v2152_v11 = vpop.xlane.xlu2 %2151  ;;  %3716 = vadd.xlane.f32.xlu2 %v3715_v1  ;;  %v3676_v1 = vsel %vm8865_vm1, %v6266_v6, 0.0  ;;  %v3685_v6 = vsel %vm8865_vm1, %v6278_v61, 0.0  ;;  %v3694_v61 = vsel %vm8865_vm1, %v6290_v4, 0.0  ;;  %v3730_v4 = vsel %vm8865_vm1, %v6330_v30, 0.0 }
 0xfbe   :  { %v2257_v41 = vmul.f32 %v5784_v40, %v2152_v11 }
 0xfbf   :  { %3659 = vadd.xlane.f32.xlu0 %v3658_v49  ;;  %v3470_v49 = vperm.slane %v3408_v26, 0 }
 0xfc0   :  { %v2321_v33 = vsub.f32 %v6551_v36, %v2257_v41  ;;  %v2252_v36 = vmul.f32 %v5784_v40, %v2137_v32 }
 0xfc2   :  { %v2385_v58 = vmul.f32 %v2321_v33, %v2321_v33  ;;  %v6632_v22 = vmul.f32 %v3473_v43, %v2321_v33  ;;  %v2316_v8 = vsub.f32 %v6532_v57, %v2252_v36  ;;  %v2255_v57 = vmul.f32 %v5784_v40, %v2146_v25 }
 0xfc3   :  { %v3409_v33 = vrot.slane %v6595_v39, 4 }
 0xfc4   :  { %v2541_v5 = vsel %vm8865_vm1, %v2385_v58, 0.0  ;;  %v3596_v41 = vmul.f32 %v3468_v63, %v2316_v8  ;;  %v2319_v58 = vsub.f32 %v6542_v51, %v2255_v57  ;;  %v3757_v30 = vsel %vm8865_vm1, %v6632_v22, 0.0 }
 0xfc5   :  { %2542 = vadd.xlane.f32.xlu1 %v2541_v5  ;;  %v2134_v38 = vpop.xlane.xlu2 %2133  ;;  %3725 = vadd.xlane.f32.xlu2 %v3724_v14  ;;  %v3471_v14 = vperm.slane %v3409_v33, 0  ;;  %v3727_v57 = vsel %vm8865_vm1, %v6362_v59, 0.0  ;;  %v3736_v22 = vsel %vm8865_vm1, %v6370_v12, 0.0 }
 0xfc6   :  { %v2251_v17 = vmul.f32 %v5784_v40, %v2134_v38  ;;  %v3742_v5 = vsel %vm8865_vm1, %v3596_v41, 0.0  ;;  %v2386_v38 = vmul.f32 %v6602_v50, %v6602_v50  ;;  %v2383_v36 = vmul.f32 %v2319_v58, %v2319_v58 }
 0xfc7   :  { %3668 = vadd.xlane.f32.xlu0 %v3667_v29 }
 0xfc8   :  { %v2315_v31 = vsub.f32 %v6558_v19, %v2251_v17  ;;  %v2544_v51 = vsel %vm8865_vm1, %v2386_v38, 0.0  ;;  %v2380_v17 = vmul.f32 %v2316_v8, %v2316_v8  ;;  %v3721_v8 = vsel %vm8865_vm1, %v6321_v34, 0.0  ;;  %v8974_v34 = vld [vmem:[#allocation49_spill] sm:$0xff] }
 0xfc9   :  { %v3700_v25 = vsel %vm8865_vm1, %v8974_v34, 0.0 }
 0xfca   :  { %v2379_v3 = vmul.f32 %v2315_v31, %v2315_v31  ;;  %v3595_v28 = vmul.f32 %v3467_v52, %v2315_v31  ;;  %v2526_v29 = vsel %vm8865_vm1, %v2380_v17, 0.0  ;;  %v2535_v31 = vsel %vm8865_vm1, %v2383_v36, 0.0 }
 0xfcb   :  { %v4901_v17 = vmov 0  }
 0xfcc   :  { %v2523_v48 = vsel %vm8865_vm1, %v2379_v3, 0.0  ;;  %v3703_v3 = vsel %vm8865_vm1, %v6299_v15, 0.0  ;;  %4584 = vset.pattern.permute.xlu1 %v4901_v17  ;;  %4582 = vset.pattern.permute.xlu0 %v4901_v17 }
 0xfcd   :  { %2524 = vadd.xlane.f32.xlu1 %v2523_v48  ;;  %v2143_v37 = vpop.xlane.xlu2 %2142  ;;  %3734 = vadd.xlane.f32.xlu2 %v3733_v47  ;;  %v6679_v48 = vpop.xlane.xlu1 %3647  ;;  %v8972_v47 = vld [vmem:[#allocation48_spill] sm:$0xff] }
 0xfce   :  { %v2254_v19 = vmul.f32 %v5784_v40, %v2143_v37  ;;  %v3691_v15 = vsel %vm8865_vm1, %v8972_v47, 0.0  ;;  %4583 = vset.pattern.permute.xlu2 %v4901_v17 }
 0xfcf   :  { %3677 = vadd.xlane.f32.xlu0 %v3676_v1  ;;  %v3718_v1 = vsel %vm8865_vm1, %v6354_v62, 0.0 }
 0xfd0   :  { %v2318_v11 = vsub.f32 %v6565_v20, %v2254_v19  ;;  %v3599_v20 = vmul.f32 %v3471_v14, %v2319_v58  ;;  %v2595_v14 = vmul.f32 %v6375_v10, %v5784_v40 }
 0xfd2   :  { %v2382_v54 = vmul.f32 %v2318_v11, %v2318_v11  ;;  %v3598_v43 = vmul.f32 %v3470_v49, %v2318_v11  ;;  %v3751_v39 = vsel %vm8865_vm1, %v3599_v20, 0.0  ;;  %v3745_v49 = vsel %vm8865_vm1, %v6608_v0, 0.0 }
 0xfd4   :  { %v2532_v32 = vsel %vm8865_vm1, %v2382_v54, 0.0  ;;  %v3748_v13 = vsel %vm8865_vm1, %v3598_v43, 0.0  ;;  %v3754_v54 = vsel %vm8865_vm1, %v6614_v55, 0.0 }
 0xfd5   :  { %2533 = vadd.xlane.f32.xlu1 %v2532_v32  ;;  %3743 = vadd.xlane.f32.xlu2 %v3742_v5  ;;  %v6684_v26 = vpop.xlane.xlu1 %3656  ;;  %v6718_v0 = vpop.xlane.xlu2 %3644 }
 0xfd6   :  { %8973 = vst [vmem:[#allocation47_spill] sm:$0xff] %v6684_v26 }
 0xfd7   :  { %3686 = vadd.xlane.f32.xlu0 %v3685_v6  ;;  %8982 = vst [vmem:[#allocation51_spill] sm:$0xff] %v6718_v0  ;;  %v2597_v6 = vmul.f32 %v6385_v21, %v5784_v40 }
 0xfd9   :  { %v2661_v38 = vadd.f32 1e-05, %v2597_v6 }
 0xfdb   :  { %4618 = vrsqrt.f32 %v2661_v38  ;;  %vm2749_vm9 = vweird.f32 %v2661_v38 }
 0xfdd   :  { %3752 = vadd.xlane.f32.xlu2 %v3751_v39  ;;  %v6692_v19 = vpop.xlane.xlu1 %3665  ;;  %v6722_v58 = vpop.xlane.xlu2 %3653  ;;  %v2659_v39 = vadd.f32 1e-05, %v2595_v14 }
 0xfde   :  { %8976 = vst [vmem:[#allocation44_spill] sm:$0xff] %v6692_v19 }
 0xfdf   :  { %2545 = vadd.xlane.f32.xlu0 %v2544_v51  ;;  %8983 = vst [vmem:[#allocation48_spill] sm:$0xff] %v6722_v58  ;;  %4620 = vrsqrt.f32 %v2659_v39  ;;  %vm2729_vm10 = vweird.f32 %v2659_v39 }
 0xfe1   :  { %v4619_v36 = vpop.eup %4618 }
 0xfe2   :  { %vm2750_vm7 = vweird.f32 %v4619_v36 }
 0xfe3   :  { %vm2751_vm11 = vmor %vm2749_vm9, %vm2750_vm7 }
 0xfe5   :  { %v6696_v63 = vpop.xlane.xlu1 %3674  ;;  %v6726_v32 = vpop.xlane.xlu2 %3662 }
 0xfe6   :  { %8977 = vst [vmem:[#allocation46_spill] sm:$0xff] %v6696_v63  ;;  %v9056_v63 = vld [vmem:[#allocation63_spill] sm:$0xff] }
 0xfe7   :  { %2527 = vadd.xlane.f32.xlu0 %v2526_v29  ;;  %8984 = vst [vmem:[#allocation49_spill] sm:$0xff] %v6726_v32 }
 0xfed   :  { %v6700_v11 = vpop.xlane.xlu1 %3683  ;;  %v6734_v20 = vpop.xlane.xlu2 %3671 }
 0xfee   :  { %8978 = vst [vmem:[#allocation26_spill] sm:$0xff] %v6700_v11  ;;  %v9039_v11 = vld [vmem:[#allocation59_spill] sm:$0xff] }
 0xfef   :  { %2536 = vadd.xlane.f32.xlu0 %v2535_v31  ;;  %v4621_v31 = vpop.eup %4620 }
 0xff0   :  { %v2724_v10 = vmul.f32 %v4621_v31, %v2659_v39  ;;  %vm2730_vm8 = vweird.f32 %v4621_v31  ;;  %v8991_v39 = vld [vmem:[#allocation27_spill] sm:$0xff] }
 0xff1   :  { %vm2731_vm12 = vmor %vm2729_vm10, %vm2730_vm8  ;;  %v3885_v17 = vperm.slane %v8991_v39, 2 }
 0xff5   :  { %v6738_v29 = vpop.xlane.xlu2 %3680 }
 0xff6   :  { %8986 = vst [vmem:[#allocation84_spill] sm:$0xff] %v6738_v29 }
 0xff7   :  { %3695 = vadd.xlane.f32.xlu0 %v3694_v61  ;;  %v705_v52 = vpop.permute.xlu0 %704  ;;  %v2744_v61 = vmul.f32 %v4619_v36, %v2661_v38 }
 0xff8   :  { %v707_v50 = vmul.f32 %v705_v52, %v6427_v7  ;;  %v3739_v7 = vsel %vm8865_vm1, %v3595_v28, 0.0  ;;  %v8975_v28 = vld [vmem:[#allocation50_spill] sm:$0xff] }
 0xff9   :  { %v3709_v37 = vsel %vm8865_vm1, %v8975_v28, 0.0  ;;  %8985 = vst [vmem:[#allocation50_spill] sm:$0xff] %v6734_v20  ;;  %v2745_v52 = vmul.f32 %v4619_v36, %v2744_v61 }
 0xffa   :  { %709 = vrot.lane.b32.xlu1 %v707_v50, %s4896_s3  ;;  %v2725_v50 = vmul.f32 %v4621_v31, %v2724_v10  ;;  %v3883_v10 = vperm.slane %v8991_v39, 0 }
 0xffc   :  { %v2726_v34 = vmul.f32 0.5, %v2725_v50 }
 0xfff   :  { %3704 = vadd.xlane.f32.xlu0 %v3703_v3  ;;  %v6742_v3 = vpop.xlane.xlu2 %3689 }
0x1000   :  { %8987 = vst [vmem:[#allocation85_spill] sm:$0xff] %v6742_v3 }
0x1007   :  { %3713 = vadd.xlane.f32.xlu0 %v3712_v42  ;;  %v8988_v42 = vld [vmem:[#allocation23_spill] sm:$0xff] }
0x100f   :  { %3722 = vadd.xlane.f32.xlu0 %v3721_v8  ;;  %v184_v8 = vadd.f32 %v8988_v42, %v8925_v18  ;;  %v2727_v18 = vsub.f32 1.5, %v2726_v34 }
0x1010   :  { %v6757_v28 = vpop.xlane.xlu2 %2530 }
0x1011   :  { %8989 = vst [vmem:[#allocation23_spill] sm:$0xff] %v6757_v28 }
0x1017   :  { %3731 = vadd.xlane.f32.xlu0 %v3730_v4 }
0x1018   :  { %v6774_v61 = vpop.xlane.xlu2 %2539 }
0x1019   :  { %8992 = vst [vmem:[#allocation27_spill] sm:$0xff] %v6774_v61 }
0x101f   :  { %3740 = vadd.xlane.f32.xlu0 %v3739_v7  ;;  %v2746_v7 = vmul.f32 0.5, %v2745_v52 }
0x1022   :  { %v6720_v43 = vpop.xlane.xlu0 %3641 }
0x1024   :  { %3692 = vadd.xlane.f32.xlu1 %v3691_v15 }
0x1027   :  { %3749 = vadd.xlane.f32.xlu0 %v3748_v13 }
0x102a   :  { %v6724_v55 = vpop.xlane.xlu0 %3650 }
0x102c   :  { %3701 = vadd.xlane.f32.xlu1 %v3700_v25 }
0x102f   :  { %3758 = vadd.xlane.f32.xlu0 %v3757_v30  ;;  %v2747_v30 = vsub.f32 1.5, %v2746_v7 }
0x1032   :  { %v6728_v5 = vpop.xlane.xlu0 %3659 }
0x1034   :  { %3710 = vadd.xlane.f32.xlu1 %v3709_v37 }
0x1038   :  { %v6704_v41 = vpop.xlane.xlu1 %2542 }
0x1039   :  { %8979 = vst [vmem:[#allocation43_spill] sm:$0xff] %v6704_v41 }
0x103a   :  { %v6736_v51 = vpop.xlane.xlu0 %3668 }
0x103c   :  { %3719 = vadd.xlane.f32.xlu1 %v3718_v1  ;;  %v2748_v1 = vmul.f32 %v4619_v36, %v2747_v30 }
0x1040   :  { %v6708_v62 = vpop.xlane.xlu1 %2524 }
0x1041   :  { %8980 = vst [vmem:[#allocation37_spill] sm:$0xff] %v6708_v62 }
0x1042   :  { %v6740_v21 = vpop.xlane.xlu0 %3677 }
0x1044   :  { %3728 = vadd.xlane.f32.xlu1 %v3727_v57  ;;  %v2728_v57 = vmul.f32 %v4621_v31, %v2727_v18 }
0x1048   :  { %v6712_v59 = vpop.xlane.xlu1 %2533 }
0x1049   :  { %8981 = vst [vmem:[#allocation45_spill] sm:$0xff] %v6712_v59 }
0x104a   :  { %v6746_v47 = vpop.xlane.xlu0 %3686 }
0x104c   :  { %3737 = vadd.xlane.f32.xlu1 %v3736_v22 }
0x1054   :  { %3746 = vadd.xlane.f32.xlu1 %v3745_v49 }
0x105c   :  { %3755 = vadd.xlane.f32.xlu1 %v3754_v54  ;;  %v6762_v54 = vpop.xlane.xlu0 %2545 }
0x105d   :  { %8990 = vst [vmem:[#allocation86_spill] sm:$0xff] %v6762_v54 }
0x106c   :  { %v710_v33 = vpop.permute.xlu1 %709 }
0x106d   :  { %713 = vst.msk [vmem:[#allocation3 + $0x30] sm:$0xff] %vm8865_vm1, %v710_v33  ;;  %4544 = vmatmul.msk.f32.vlgmr.msra.gmra.mxu3 %vm8865_vm1, %v710_v33  ;;  %v2752_v33 = vsel %vm2751_vm11, %v4619_v36, %v2748_v1  ;;  %v3760_v1 = vsel %vm8865_vm1, %v6606_v35, 0.0 }
0x106e   :  { %v3813_v6 = vmul.f32 %v6471_v45, %v2752_v33  ;;  %v6782_v45 = vpop.xlane.xlu0 %2527 }
0x106f   :  { %8993 = vst [vmem:[#allocation87_spill] sm:$0xff] %v6782_v45 }
0x1070   :  { %v4013_v52 = vadd.f32 %v3885_v17, %v3813_v6 }
0x1074   :  { %v777_v12 = vld [vmem:[#allocation3 + $0x30] sm:$0xff] }
0x1075   :  { %4551 = vmatmul.msk.f32.gmra.mxu0 %vm8865_vm1, %v777_v12  ;;  %4559 = vmatmul.msk.f32.gmra.mxu1 %vm8865_vm1, %v777_v12  ;;  %v2732_v12 = vsel %vm2731_vm12, %v4621_v31, %v2728_v57 }
0x1076   :  { %v3811_v38 = vmul.f32 %v6475_v46, %v2732_v12  ;;  %v6786_v46 = vpop.xlane.xlu0 %2536 }
0x1077   :  { %8995 = vst [vmem:[#allocation89_spill] sm:$0xff] %v6786_v46 }
0x1078   :  { %v4011_v36 = vadd.f32 %v3883_v10, %v3811_v38 }
0x1097   :  { %v6790_v42 = vpop.xlane.xlu1 %3692 }
0x1098   :  { %8997 = vst [vmem:[#allocation91_spill] sm:$0xff] %v6790_v42 }
0x10f0   :  { %v735_v4 = vpop.f32.mrf.mxu3 }
0x10f1   :  { %v738_v15 = vadd.f32 %v735_v4, %v184_v8  ;;  %v6794_v8 = vpop.xlane.xlu0 %3695 }
0x10f2   :  { %v908_v13 = vpop.f32.mrf.mxu0  ;;  %v949_v37 = vpop.f32.mrf.mxu1  ;;  %8998 = vst [vmem:[#allocation92_spill] sm:$0xff] %v6794_v8 }
0x10f3   :  { %v6749_v25 = vadd.f32 %v908_v13, %v8929_v60  ;;  %4622 = vtanh.f32 %v738_v15  ;;  %v6760_v22 = vadd.f32 %v949_v37, %v8932_v53  ;;  %v6798_v15 = vpop.xlane.xlu1 %3701 }
0x10f4   :  { %9000 = vst [vmem:[#allocation94_spill] sm:$0xff] %v6798_v15 }
0x10f5   :  { %1023 = vrot.lane.b32.xlu2 %v6749_v25, %s4896_s3  ;;  %999 = vrot.lane.b32.xlu1 %v6749_v25, %s4895_s2 }
0x10f6   :  { %975 = vrot.lane.b32.xlu0 %v6749_v25, %s4897_s4 }
0x10f9   :  { %v4623_v49 = vpop.eup %4622  ;;  %v6800_v13 = vpop.xlane.xlu0 %3704 }
0x10fa   :  { %v740_v14 = vmul.f32 %v4623_v49, %v8934_v9  ;;  %v6784_v9 = vpop.xlane.xlu2 %3698  ;;  %9001 = vst [vmem:[#allocation95_spill] sm:$0xff] %v6800_v13 }
0x10fb   :  { %8994 = vst [vmem:[#allocation88_spill] sm:$0xff] %v6784_v9  ;;  %v6804_v37 = vpop.xlane.xlu1 %3710 }
0x10fc   :  { %v6778_v50 = vadd.f32 %v740_v14, %v8936_v44  ;;  %v2596_v44 = vmul.f32 %v6381_v16, %v5784_v40  ;;  %9003 = vst [vmem:[#allocation97_spill] sm:$0xff] %v6804_v37 }
0x10fd   :  { %1103 = vrot.lane.b32.xlu2 %v6760_v22, %s4896_s3  ;;  %1079 = vrot.lane.b32.xlu1 %v6760_v22, %s4895_s2 }
0x10fe   :  { %1055 = vrot.lane.b32.xlu0 %v6760_v22, %s4897_s4  ;;  %v2660_v4 = vadd.f32 1e-05, %v2596_v44 }
0x1100   :  { %4624 = vrsqrt.f32 %v2660_v4  ;;  %vm2739_vm14 = vweird.f32 %v2660_v4 }
0x1101   :  { %v6808_v16 = vpop.xlane.xlu0 %3713 }
0x1102   :  { %v6788_v31 = vpop.xlane.xlu2 %3707  ;;  %9004 = vst [vmem:[#allocation98_spill] sm:$0xff] %v6808_v16 }
0x1103   :  { %8996 = vst [vmem:[#allocation90_spill] sm:$0xff] %v6788_v31  ;;  %v6812_v6 = vpop.xlane.xlu1 %3719 }
0x1104   :  { %9006 = vst [vmem:[#allocation100_spill] sm:$0xff] %v6812_v6 }
0x1105   :  { %744 = vrot.lane.b32.xlu2 %v6778_v50, %s4895_s2  ;;  %4146 = vperm.xlu1 %4584, %v4013_v52  }
0x1106   :  { %4140 = vperm.xlu0 %4582, %v4011_v36   ;;  %v4625_v34 = vpop.eup %4624  ;;  %v3884_v36 = vperm.slane %v8991_v39, 1 }
0x1107   :  { %v2734_v18 = vmul.f32 %v4625_v34, %v2660_v4  ;;  %vm2740_vm13 = vweird.f32 %v4625_v34 }
0x1108   :  { %vm2741_vm15 = vmor %vm2739_vm14, %vm2740_vm13 }
0x1109   :  { %v2735_v57 = vmul.f32 %v4625_v34, %v2734_v18  ;;  %v6814_v14 = vpop.xlane.xlu0 %3722 }
0x110a   :  { %v6796_v7 = vpop.xlane.xlu2 %3716  ;;  %9007 = vst [vmem:[#allocation101_spill] sm:$0xff] %v6814_v14 }
0x110b   :  { %8999 = vst [vmem:[#allocation93_spill] sm:$0xff] %v6796_v7  ;;  %v2736_v49 = vmul.f32 0.5, %v2735_v57  ;;  %v6819_v52 = vpop.xlane.xlu1 %3728 }
0x110c   :  { %9009 = vst [vmem:[#allocation103_spill] sm:$0xff] %v6819_v52 }
0x110d   :  { %v2737_v12 = vsub.f32 1.5, %v2736_v49 }
0x110f   :  { %v2738_v38 = vmul.f32 %v4625_v34, %v2737_v12 }
0x1111   :  { %v2742_v10 = vsel %vm2741_vm15, %v4625_v34, %v2738_v38  ;;  %v6822_v44 = vpop.xlane.xlu0 %3731 }
0x1112   :  { %v6802_v30 = vpop.xlane.xlu2 %3725  ;;  %v3812_v35 = vmul.f32 %v6479_v27, %v2742_v10  ;;  %9010 = vst [vmem:[#allocation104_spill] sm:$0xff] %v6822_v44 }
0x1113   :  { %9002 = vst [vmem:[#allocation96_spill] sm:$0xff] %v6802_v30  ;;  %v6826_v57 = vpop.xlane.xlu1 %3737 }
0x1114   :  { %v4012_v18 = vadd.f32 %v3884_v36, %v3812_v35  ;;  %9012 = vst [vmem:[#allocation106_spill] sm:$0xff] %v6826_v57  ;;  %v1790_v36 = vrot.slane %v6749_v25, 4 }
0x1119   :  { %v6828_v49 = vpop.xlane.xlu0 %3740 }
0x111a   :  { %v6810_v33 = vpop.xlane.xlu2 %3734  ;;  %9013 = vst [vmem:[#allocation107_spill] sm:$0xff] %v6828_v49 }
0x111b   :  { %9005 = vst [vmem:[#allocation99_spill] sm:$0xff] %v6810_v33  ;;  %v6830_v12 = vpop.xlane.xlu1 %3746 }
0x111c   :  { %9014 = vst [vmem:[#allocation108_spill] sm:$0xff] %v6830_v12 }
0x1121   :  { %v6832_v34 = vpop.xlane.xlu0 %3749 }
0x1122   :  { %v6816_v17 = vpop.xlane.xlu2 %3743  ;;  %9015 = vst [vmem:[#allocation109_spill] sm:$0xff] %v6832_v34 }
0x1123   :  { %9008 = vst [vmem:[#allocation102_spill] sm:$0xff] %v6816_v17  ;;  %v6834_v38 = vpop.xlane.xlu1 %3755 }
0x1124   :  { %9016 = vst [vmem:[#allocation110_spill] sm:$0xff] %v6834_v38 }
0x1129   :  { %v6836_v53 = vpop.xlane.xlu0 %3758 }
0x112a   :  { %9017 = vst [vmem:[#allocation111_spill] sm:$0xff] %v6836_v53 }
0x112e   :  { %3761 = vadd.xlane.f32.xlu2 %v3760_v1  ;;  %v6824_v1 = vpop.xlane.xlu2 %3752 }
0x112f   :  { %9011 = vst [vmem:[#allocation105_spill] sm:$0xff] %v6824_v1 }
0x1146   :  { %4143 = vperm.xlu2 %4583, %v4012_v18  }
0x114f   :  { %v1024_v4 = vpop.permute.xlu2 %1023 }
0x1150   :  { %v1800_v33 = vrot.slane %v1024_v4, 4 }
0x1157   :  { %v1104_v27 = vpop.permute.xlu2 %1103 }
0x115f   :  { %v745_v10 = vpop.permute.xlu2 %744 }
0x1160   :  { %v747_v35 = vmul.f32 %v745_v10, %v6778_v50 }
0x1162   :  { %749 = vrot.lane.b32.xlu0 %v747_v35, %s4896_s3 }
0x1167   :  { %v1000_v18 = vpop.permute.xlu1 %999 }
0x1168   :  { %v976_v60 = vpop.permute.xlu0 %975  ;;  %v1788_v1 = vrot.slane %v1000_v18, 4  ;;  %v1791_v17 = vsel %vm8862_vm5, %v1000_v18, %v1790_v36  ;;  %v1814_v36 = vrot.slane %v6760_v22, 4  ;;  %v1824_v18 = vrot.slane %v1104_v27, 4 }
0x1169   :  { %v1802_v30 = vrot.slane %v976_v60, 4  ;;  %v1799_v12 = vperm.slane %v1791_v17, %v8962_v2  ;;  %v1801_v38 = vsel %vm8862_vm5, %v1800_v33, %v976_v60 }
0x116a   :  { %v1789_v10 = vsel %vm8862_vm5, %v1788_v1, %v6749_v25  ;;  %v1807_v57 = vperm.slane %v1801_v38, %v8962_v2 }
0x116b   :  { %v1803_v54 = vsel %vm8862_vm5, %v1024_v4, %v1802_v30  ;;  %v1850_v7 = vrot.slane %v1799_v12, 4  ;;  %v1795_v31 = vperm.slane %v1789_v10, %v8962_v2 }
0x116c   :  { %v1811_v35 = vperm.slane %v1803_v54, %v8962_v2  ;;  %v1836_v1 = vrot.slane %v1807_v57, 4 }
0x116d   :  { %v1838_v4 = vrot.slane %v1795_v31, 4 }
0x116e   :  { %v1851_v17 = vsel %vm8862_vm5, %v1811_v35, %v1850_v7 }
0x116f   :  { %v1080_v52 = vpop.permute.xlu1 %1079  ;;  %v1859_v45 = vperm.slane %v1851_v17, %v8963_v24  ;;  %v1839_v6 = vsel %vm8862_vm5, %v1807_v57, %v1838_v4 }
0x1170   :  { %v1056_v46 = vpop.permute.xlu0 %1055  ;;  %v1812_v60 = vrot.slane %v1080_v52, 4  ;;  %v1815_v30 = vsel %vm8862_vm5, %v1080_v52, %v1814_v36 }
0x1171   :  { %v1825_v33 = vsel %vm8862_vm5, %v1824_v18, %v1056_v46  ;;  %v1826_v25 = vrot.slane %v1056_v46, 4  ;;  %v1823_v54 = vperm.slane %v1815_v30, %v8962_v2  ;;  %v1848_v46 = vrot.slane %v1811_v35, 4 }
0x1172   :  { %v1831_v38 = vperm.slane %v1825_v33, %v8962_v2  ;;  %v1813_v10 = vsel %vm8862_vm5, %v1812_v60, %v6760_v22  ;;  %v1837_v33 = vsel %vm8862_vm5, %v1836_v1, %v1795_v31  ;;  %v1847_v31 = vperm.slane %v1839_v6, %v8963_v24 }
0x1173   :  { %v1827_v53 = vsel %vm8862_vm5, %v1104_v27, %v1826_v25  ;;  %v1819_v7 = vperm.slane %v1813_v10, %v8962_v2  ;;  %v1874_v9 = vrot.slane %v1823_v54, 4  ;;  %v1898_v27 = vrot.slane %v1859_v45, 4 }
0x1174   :  { %v1835_v52 = vperm.slane %v1827_v53, %v8962_v2  ;;  %v1860_v36 = vrot.slane %v1831_v38, 4  ;;  %v1849_v53 = vsel %vm8862_vm5, %v1848_v46, %v1799_v12 }
0x1175   :  { %v1862_v18 = vrot.slane %v1819_v7, 4  ;;  %v1855_v10 = vperm.slane %v1849_v53, %v8963_v24 }
0x1176   :  { %v1875_v30 = vsel %vm8862_vm5, %v1835_v52, %v1874_v9  ;;  %v1872_v34 = vrot.slane %v1835_v52, 4  ;;  %v1861_v17 = vsel %vm8862_vm5, %v1860_v36, %v1819_v7  ;;  %v1843_v9 = vperm.slane %v1837_v33, %v8963_v24 }
0x1177   :  { %v1883_v22 = vperm.slane %v1875_v30, %v8963_v24  ;;  %v1863_v60 = vsel %vm8862_vm5, %v1831_v38, %v1862_v18  ;;  %v1867_v38 = vperm.slane %v1861_v17, %v8963_v24  ;;  %v1894_v6 = vrot.slane %v1855_v10, 4 }
0x1178   :  { %v1871_v25 = vperm.slane %v1863_v60, %v8963_v24  ;;  %v1873_v4 = vsel %vm8862_vm5, %v1872_v34, %v1823_v54  ;;  %v1886_v52 = vrot.slane %v1843_v9, 4 }
0x1179   :  { %v1899_v35 = vsel %vm8862_vm5, %v1883_v22, %v1898_v27  ;;  %v1879_v36 = vperm.slane %v1873_v4, %v8963_v24  ;;  %v1896_v30 = vrot.slane %v1883_v22, 4  ;;  %v1890_v4 = vrot.slane %v1847_v31, 4 }
0x117a   :  { %v2177_v57 = vsel %vm8865_vm1, %v1899_v35, 0.0  ;;  %v1888_v1 = vrot.slane %v1871_v25, 4  ;;  %v6881_v46 = vsel %vm8862_vm5, %v1867_v38, %v1886_v52 }
0x117b   :  { %2178 = vadd.xlane.f32.xlu2 %v2177_v57  ;;  %v2159_v34 = vsel %vm8865_vm1, %v6881_v46, 0.0  ;;  %v6886_v54 = vsel %vm8862_vm5, %v1879_v36, %v1894_v6  ;;  %v1892_v18 = vrot.slane %v1879_v36, 4  ;;  %v1897_v60 = vsel %vm8862_vm5, %v1896_v30, %v1859_v45  ;;  %v6917_v6 = vpop.permute.xlu1 %4146 }
0x117c   :  { %v1889_v7 = vsel %vm8862_vm5, %v1888_v1, %v1847_v31  ;;  %v2171_v33 = vsel %vm8865_vm1, %v6886_v54, 0.0  ;;  %v2174_v53 = vsel %vm8865_vm1, %v1897_v60, 0.0  ;;  %v1884_v57 = vrot.slane %v1867_v38, 4  ;;  %9021 = vst [vmem:[#allocation115_spill] sm:$0xff] %v6917_v6 }
0x117d   :  { %v2162_v12 = vsel %vm8865_vm1, %v1889_v7, 0.0  ;;  %v6891_v27 = vsel %vm8862_vm5, %v1892_v18, %v1855_v10  ;;  %v6903_v10 = vsel %vm8862_vm5, %v1871_v25, %v1890_v4  ;;  %v742_v38 = vmul.f32 %v6778_v50, %v6581_v23  ;;  %v4756_v18 = vld [vmem:[#allocation4 + $0x30] sm:$0xff] }
0x117e   :  { %2163 = vadd.xlane.f32.xlu1 %v2162_v12  ;;  %v2168_v17 = vsel %vm8865_vm1, %v6891_v27, 0.0  ;;  %v6898_v1 = vsel %vm8862_vm5, %v1884_v57, %v1843_v9  ;;  %v2165_v45 = vsel %vm8865_vm1, %v6903_v10, 0.0  ;;  %v6907_v12 = vpop.permute.xlu0 %4140  ;;  %v6920_v30 = vmul.f32 %v4756_v18, %v6592_v56 }
0x117f   :  { %v2156_v22 = vsel %vm8865_vm1, %v6898_v1, 0.0  ;;  %9018 = vst [vmem:[#allocation112_spill] sm:$0xff] %v6907_v12 }
0x1180   :  { %v3415_v24 = vrot.slane %v6920_v30, 3 }
0x1183   :  { %2160 = vadd.xlane.f32.xlu2 %v2159_v34 }
0x1186   :  { %2172 = vadd.xlane.f32.xlu1 %v2171_v33  ;;  %v3419_v33 = vrot.slane %v6920_v30, 7 }
0x1188   :  { %v3482_v57 = vperm.slane %v3419_v33, 0  ;;  %v3417_v33 = vrot.slane %v6920_v30, 5 }
0x118b   :  { %2169 = vadd.xlane.f32.xlu2 %v2168_v17 }
0x118c   :  { %2175 = vadd.xlane.f32.xlu0 %v2174_v53 }
0x1194   :  { %2157 = vadd.xlane.f32.xlu0 %v2156_v22 }
0x119c   :  { %2166 = vadd.xlane.f32.xlu0 %v2165_v45  ;;  %v3418_v45 = vrot.slane %v6920_v30, 6 }
0x11a1   :  { %v6913_v31 = vpop.xlane.xlu2 %3761 }
0x11a2   :  { %9019 = vst [vmem:[#allocation113_spill] sm:$0xff] %v6913_v31  ;;  %v3481_v31 = vperm.slane %v3418_v45, 0 }
0x11a9   :  { %v6915_v25 = vpop.permute.xlu2 %4143 }
0x11aa   :  { %9020 = vst [vmem:[#allocation114_spill] sm:$0xff] %v6915_v25 }
0x11d4   :  { %v750_v52 = vpop.permute.xlu0 %749 }
0x11d5   :  { %v752_v9 = vadd.f32 %v750_v52, %v742_v38  ;;  %v3413_v38 = vrot.slane %v6920_v30, 1  ;;  %v3414_v52 = vrot.slane %v6920_v30, 2 }
0x11d7   :  { %4626 = vtanh.f32 %v752_v9  ;;  %767 = vrot.lane.b32.xlu0 %v752_v9, %s4897_s4  ;;  %v9022_v9 = vld [vmem:[#allocation40_spill] sm:$0xff]  ;;  %v6940_v6 = vperm.slane %v3414_v52, 0  ;;  %v9026_v52 = vld [vmem:[#allocation42_spill] sm:$0xff] }
0x11d8   :  { %v2599_v56 = vmul.f32 %v9022_v9, %v5784_v40  ;;  %v6938_v9 = vperm.slane %v3413_v38, 0 }
0x11dd   :  { %v4627_v36 = vpop.eup %4626 }
0x11de   :  { %755 = vrot.lane.b32.xlu1 %v4627_v36, %s4895_s2 }
0x11ee   :  { %v2179_v34 = vpop.xlane.xlu2 %2178 }
0x11ef   :  { %v2266_v23 = vmul.f32 %v5784_v40, %v2179_v34  ;;  %v3416_v34 = vrot.slane %v6920_v30, 4 }
0x11f1   :  { %v2164_v17 = vpop.xlane.xlu1 %2163  ;;  %v2330_v53 = vsub.f32 %v1899_v35, %v2266_v23  ;;  %v6946_v12 = vperm.slane %v3416_v34, 0 }
0x11f2   :  { %v2261_v22 = vmul.f32 %v5784_v40, %v2164_v17 }
0x11f3   :  { %v3610_v4 = vmul.f32 %v3482_v57, %v2330_v53 }
0x11f4   :  { %v6931_v18 = vsub.f32 %v1889_v7, %v2261_v22  ;;  %v6942_v7 = vadd.f32 1e-05, %v2599_v56  ;;  %v9023_v22 = vld [vmem:[#allocation52_spill] sm:$0xff] }
0x11f5   :  { %v3784_v23 = vsel %vm8865_vm1, %v3610_v4, 0.0  ;;  %v2394_v4 = vmul.f32 %v2330_v53, %v2330_v53  ;;  %v9025_v53 = vld [vmem:[#allocation55_spill] sm:$0xff] }
0x11f6   :  { %v2389_v57 = vmul.f32 %v6931_v18, %v6931_v18  ;;  %v2605_v34 = vmul.f32 %v9025_v53, %v5784_v40  ;;  %v2161_v61 = vpop.xlane.xlu2 %2160  ;;  %4628 = vrsqrt.f32 %v6942_v7  ;;  %v2598_v53 = vmul.f32 %v9026_v52, %v5784_v40  ;;  %v9027_v52 = vld [vmem:[#allocation29_spill] sm:$0xff] }
0x11f7   :  { %vm2769_vm0 = vweird.f32 %v6942_v7 }
0x11f9   :  { %v2173_v17 = vpop.xlane.xlu1 %2172 }
0x11fc   :  { %v6996_v49 = vpop.eup %4628 }
0x11fd   :  { %vm2770_vm2 = vweird.f32 %v6996_v49 }
0x11fe   :  { %vm7130_vm4 = vmor %vm2769_vm0, %vm2770_vm2 }
0x11ff   :  { %v2176_v36 = vpop.xlane.xlu0 %2175 }
0x1200   :  { %v2265_v35 = vmul.f32 %v5784_v40, %v2176_v36  ;;  %v2602_v36 = vmul.f32 %v9023_v22, %v5784_v40 }
0x1201   :  { %3785 = vadd.xlane.f32.xlu0 %v3784_v23  ;;  %v2264_v23 = vmul.f32 %v5784_v40, %v2173_v17 }
0x1202   :  { %v2329_v2 = vsub.f32 %v1897_v60, %v2265_v35  ;;  %v6951_v60 = vperm.slane %v3417_v33, 0  ;;  %v6956_v35 = vperm.slane %v3415_v24, 0  ;;  %v6964_v33 = vadd.f32 1e-05, %v2602_v36 }
0x1203   :  { %v2568_v24 = vsel %vm8865_vm1, %v2394_v4, 0.0  ;;  %v6971_v22 = vsub.f32 %v6886_v54, %v2264_v23  ;;  %v6979_v4 = vadd.f32 1e-05, %v2605_v34  ;;  %v6989_v36 = vadd.f32 1e-05, %v2598_v53 }
0x1204   :  { %v2393_v25 = vmul.f32 %v2329_v2, %v2329_v2  ;;  %4630 = vrsqrt.f32 %v6964_v33  ;;  %vm2799_vm3 = vweird.f32 %v6964_v33 }
0x1205   :  { %v2392_v38 = vmul.f32 %v6971_v22, %v6971_v22  ;;  %4632 = vrsqrt.f32 %v6979_v4  ;;  %vm2829_vm7 = vweird.f32 %v6979_v4  ;;  %vm2759_vm12 = vweird.f32 %v6989_v36 }
0x1206   :  { %v2565_v37 = vsel %vm8865_vm1, %v2393_v25, 0.0  ;;  %v2553_v25 = vsel %vm8865_vm1, %v2389_v57, 0.0  ;;  %4634 = vrsqrt.f32 %v6989_v36 }
0x1207   :  { %2566 = vadd.xlane.f32.xlu2 %v2565_v37  ;;  %v2158_v56 = vpop.xlane.xlu0 %2157 }
0x1208   :  { %v2259_v17 = vmul.f32 %v5784_v40, %v2158_v56  ;;  %2569 = vadd.xlane.f32.xlu1 %v2568_v24  ;;  %v2260_v56 = vmul.f32 %v5784_v40, %v2161_v61  ;;  %v3609_v24 = vmul.f32 %v3481_v31, %v2329_v2  ;;  %v9030_v2 = vld [vmem:[#allocation39_spill] sm:$0xff]  ;;  %v2170_v31 = vpop.xlane.xlu2 %2169 }
0x1209   :  { %2554 = vadd.xlane.f32.xlu0 %v2553_v25  ;;  %v2604_v29 = vmul.f32 %v9030_v2, %v5784_v40  ;;  %v2263_v28 = vmul.f32 %v5784_v40, %v2170_v31  ;;  %v9032_v31 = vld [vmem:[#allocation31_spill] sm:$0xff] }
0x120a   :  { %v6984_v23 = vsub.f32 %v6898_v1, %v2259_v17  ;;  %v9028_v1 = vld [vmem:[#allocation38_spill] sm:$0xff]  ;;  %v3781_v61 = vsel %vm8865_vm1, %v3609_v24, 0.0  ;;  %v7016_v37 = vpop.eup %4630  ;;  %v9031_v24 = vld [vmem:[#allocation53_spill] sm:$0xff] }
0x120b   :  { %v2601_v17 = vmul.f32 %v9028_v1, %v5784_v40  ;;  %v2324_v1 = vsub.f32 %v6881_v46, %v2260_v56  ;;  %v2764_v46 = vmul.f32 %v6996_v49, %v6942_v7  ;;  %v7038_v2 = vadd.f32 1e-05, %v2604_v29  ;;  %v9034_v29 = vld [vmem:[#allocation22_spill] sm:$0xff] }
0x120c   :  { %v2387_v34 = vmul.f32 %v6984_v23, %v6984_v23  ;;  %v2608_v20 = vmul.f32 %v9034_v29, %v5784_v40  ;;  %vm2800_vm6 = vweird.f32 %v7016_v37 }
0x120d   :  { %v7020_v56 = vadd.f32 1e-05, %v2601_v17  ;;  %v2388_v44 = vmul.f32 %v2324_v1, %v2324_v1  ;;  %vm7154_vm8 = vmor %vm2799_vm3, %vm2800_vm6  ;;  %vm2819_vm0 = vweird.f32 %v7038_v2 }
0x120e   :  { %v2547_v25 = vsel %vm8865_vm1, %v2387_v34, 0.0  ;;  %v2562_v34 = vsel %vm8865_vm1, %v2392_v38, 0.0 }
0x120f   :  { %2548 = vadd.xlane.f32.xlu2 %v2547_v25  ;;  %v2167_v57 = vpop.xlane.xlu0 %2166  ;;  %v2607_v25 = vmul.f32 %v9031_v24, %v5784_v40  ;;  %v7034_v24 = vpop.eup %4632  ;;  %4636 = vrsqrt.f32 %v7020_v56  ;;  %v2550_v15 = vsel %vm8865_vm1, %v2388_v44, 0.0  ;;  %vm2789_vm13 = vweird.f32 %v7020_v56 }
0x1210   :  { %v2262_v53 = vmul.f32 %v5784_v40, %v2167_v57  ;;  %3782 = vadd.xlane.f32.xlu1 %v3781_v61  ;;  %v7048_v57 = vpop.eup %4634  ;;  %4638 = vrsqrt.f32 %v7038_v2  ;;  %vm2830_vm9 = vweird.f32 %v7034_v24 }
0x1211   :  { %2563 = vadd.xlane.f32.xlu0 %v2562_v34  ;;  %v2794_v34 = vmul.f32 %v7016_v37, %v6964_v33  ;;  %v7045_v17 = vadd.f32 1e-05, %v2607_v25  ;;  %v2327_v25 = vsub.f32 %v6891_v27, %v2263_v28  ;;  %v2754_v14 = vmul.f32 %v7048_v57, %v6989_v36  ;;  %vm7185_vm11 = vmor %vm2829_vm7, %vm2830_vm9 }
0x1212   :  { %v7029_v38 = vsub.f32 %v6903_v10, %v2262_v53  ;;  %v3604_v10 = vmul.f32 %v6938_v9, %v2324_v1  ;;  %v2765_v53 = vmul.f32 %v6996_v49, %v2764_v46  ;;  %v2824_v9 = vmul.f32 %v7034_v24, %v6979_v4  ;;  %v9033_v1 = vld [vmem:[#allocation56_spill] sm:$0xff] }
0x1213   :  { %v2610_v46 = vmul.f32 %v9033_v1, %v5784_v40  ;;  %v2795_v45 = vmul.f32 %v7016_v37, %v2794_v34  ;;  %4640 = vrsqrt.f32 %v7045_v17  ;;  %v2391_v29 = vmul.f32 %v2327_v25, %v2327_v25 }
0x1214   :  { %v2390_v61 = vmul.f32 %v7029_v38, %v7029_v38  ;;  %v2766_v54 = vmul.f32 0.5, %v2765_v53  ;;  %v3607_v44 = vmul.f32 %v6946_v12, %v2327_v25  ;;  %v2755_v27 = vmul.f32 %v7048_v57, %v2754_v14 }
0x1215   :  { %v7074_v34 = vpop.eup %4636  ;;  %v7077_v53 = vadd.f32 1e-05, %v2610_v46  ;;  %v2796_v28 = vmul.f32 0.5, %v2795_v45  ;;  %v9037_v45 = vld [vmem:[#allocation57_spill] sm:$0xff]  ;;  %v2611_v1 = vmul.f32 %v9039_v11, %v5784_v40  ;;  %v9040_v11 = vperm.slane %v6920_v30, 0 }
0x1216   :  { %v2556_v42 = vsel %vm8865_vm1, %v2390_v61, 0.0  ;;  %v3766_v61 = vsel %vm8865_vm1, %v3604_v10, 0.0  ;;  %v2825_v10 = vmul.f32 %v7034_v24, %v2824_v9  ;;  %v2767_v41 = vsub.f32 1.5, %v2766_v54  ;;  %v7087_v9 = vpop.eup %4638  ;;  %v9038_v54 = vld [vmem:[#allocation41_spill] sm:$0xff] }
0x1217   :  { %2557 = vadd.xlane.f32.xlu2 %v2556_v42  ;;  %v2784_v46 = vmul.f32 %v7074_v34, %v7020_v56  ;;  %4642 = vrsqrt.f32 %v7077_v53  ;;  %v2600_v25 = vmul.f32 %v9038_v54, %v5784_v40  ;;  %vm2760_vm10 = vweird.f32 %v7048_v57 }
0x1218   :  { %2551 = vadd.xlane.f32.xlu1 %v2550_v15  ;;  %v3605_v15 = vmul.f32 %v6940_v6, %v6931_v18  ;;  %v2826_v14 = vmul.f32 0.5, %v2825_v10  ;;  %v2559_v18 = vsel %vm8865_vm1, %v2391_v29, 0.0  ;;  %v3775_v6 = vsel %vm8865_vm1, %v3607_v44, 0.0  ;;  %vm7211_vm15 = vmor %vm2759_vm12, %vm2760_vm10 }
0x1219   :  { %3767 = vadd.xlane.f32.xlu0 %v3766_v61  ;;  %v7080_v61 = vadd.f32 1e-05, %v2608_v20  ;;  %v2613_v20 = vmul.f32 %v9037_v45, %v5784_v40  ;;  %v7095_v12 = vpop.eup %4640  ;;  %v2797_v45 = vsub.f32 1.5, %v2796_v28  ;;  %v2814_v10 = vmul.f32 %v7087_v9, %v7038_v2 }
0x121a   :  { %v3769_v32 = vsel %vm8865_vm1, %v3605_v15, 0.0  ;;  %v2756_v15 = vmul.f32 0.5, %v2755_v27  ;;  %v7109_v54 = vmul.f32 %v6996_v49, %v2767_v41  ;;  %v2844_v29 = vmul.f32 %v7095_v12, %v7045_v17 }
0x121b   :  { %4644 = vrsqrt.f32 %v7080_v61  ;;  %v7114_v28 = vadd.f32 1e-05, %v2613_v20  ;;  %v3608_v44 = vmul.f32 %v6951_v60, %v6971_v22  ;;  %v7118_v27 = vadd.f32 1e-05, %v2600_v25 }
0x121c   :  { %v3603_v41 = vmul.f32 %v9040_v11, %v6984_v23  ;;  %v2798_v60 = vmul.f32 %v7016_v37, %v2797_v45  ;;  %v2815_v30 = vmul.f32 %v7087_v9, %v2814_v10  ;;  %v7140_v23 = vadd.f32 1e-05, %v2611_v1 }
0x121d   :  { %v7137_v22 = vpop.eup %4642  ;;  %v2845_v45 = vmul.f32 %v7095_v12, %v2844_v29  ;;  %4646 = vrsqrt.f32 %v7114_v28  ;;  %vm2790_vm14 = vweird.f32 %v7074_v34  ;;  %vm2820_vm2 = vweird.f32 %v7087_v9 }
0x121e   :  { %9044 = vst [vmem:[#allocation40_spill] sm:$0xff] %v7137_v22  ;;  %4648 = vrsqrt.f32 %v7118_v27  ;;  %v3763_v10 = vsel %vm8865_vm1, %v3603_v41, 0.0  ;;  %v2802_v7 = vsel %vm7154_vm8, %v7016_v37, %v2798_v60  ;;  %v9048_v41 = vld [vmem:[#allocation60_spill] sm:$0xff]  ;;  %vm7251_vm3 = vmor %vm2789_vm13, %vm2790_vm14  ;;  %vm2849_vm6 = vweird.f32 %v7045_v17 }
0x121f   :  { %3770 = vadd.xlane.f32.xlu2 %v3769_v32  ;;  %v2785_v32 = vmul.f32 %v7074_v34, %v2784_v46  ;;  %4650 = vrsqrt.f32 %v7140_v23  ;;  %v2846_v16 = vmul.f32 0.5, %v2845_v45  ;;  %vm2850_vm7 = vweird.f32 %v7095_v12  ;;  %vm7276_vm8 = vmor %vm2819_vm0, %vm2820_vm2 }
0x1220   :  { %2560 = vadd.xlane.f32.xlu1 %v2559_v18  ;;  %v2827_v18 = vsub.f32 1.5, %v2826_v14  ;;  %v2757_v14 = vsub.f32 1.5, %v2756_v15  ;;  %vm2879_vm9 = vweird.f32 %v7077_v53  ;;  %vm7289_vm10 = vmor %vm2849_vm6, %vm2850_vm7  ;;  %vm2859_vm12 = vweird.f32 %v7080_v61 }
0x1221   :  { %3776 = vadd.xlane.f32.xlu0 %v3775_v6  ;;  %v9041_v6 = vld [vmem:[#allocation20_spill] sm:$0xff]  ;;  %v7146_v25 = vpop.eup %4644  ;;  %v2786_v11 = vmul.f32 0.5, %v2785_v32  ;;  %v2874_v32 = vmul.f32 %v7137_v22, %v7077_v53  ;;  %vm2909_vm14 = vweird.f32 %v7114_v28  ;;  %vm2779_vm0 = vweird.f32 %v7118_v27 }
0x1222   :  { %v2616_v46 = vmul.f32 %v9041_v6, %v5784_v40  ;;  %v3778_v6 = vsel %vm8865_vm1, %v3608_v44, 0.0  ;;  %v7159_v15 = vmul.f32 %v7034_v24, %v2827_v18  ;;  %v9047_v44 = vld [vmem:[#allocation54_spill] sm:$0xff]  ;;  %v2816_v18 = vmul.f32 0.5, %v2815_v30 }
0x1223   :  { %v2603_v33 = vmul.f32 %v9047_v44, %v5784_v40  ;;  %v2854_v42 = vmul.f32 %v7146_v25, %v7080_v61  ;;  %v2787_v44 = vsub.f32 1.5, %v2786_v11  ;;  %v3606_v30 = vmul.f32 %v6956_v35, %v7029_v38 }
0x1224   :  { %v7165_v29 = vadd.f32 1e-05, %v2616_v46  ;;  %v7178_v46 = vmul.f32 %v7048_v57, %v2757_v14  ;;  %v2832_v60 = vsel %vm7185_vm11, %v7034_v24, %v7159_v15  ;;  %v7197_v14 = vpop.eup %4646  ;;  %v2875_v4 = vmul.f32 %v7137_v22, %v2874_v32 }
0x1225   :  { %9051 = vst [vmem:[#allocation52_spill] sm:$0xff] %v7197_v14  ;;  %v7201_v11 = vadd.f32 1e-05, %v2603_v33  ;;  %v7204_v36 = vpop.eup %4648  ;;  %v2855_v45 = vmul.f32 %v7146_v25, %v2854_v42  ;;  %v2817_v38 = vsub.f32 1.5, %v2816_v18  ;;  %v7221_v15 = vmul.f32 %v7074_v34, %v2787_v44  ;;  %v9054_v33 = vld [vmem:[#allocation61_spill] sm:$0xff] }
0x1226   :  { %4652 = vrsqrt.f32 %v7165_v29  ;;  %v2847_v42 = vsub.f32 1.5, %v2846_v16  ;;  %v2904_v32 = vmul.f32 %v7197_v14, %v7114_v28  ;;  %v2619_v18 = vmul.f32 %v9054_v33, %v5784_v40  ;;  %v9055_v16 = vld [vmem:[#allocation18_spill] sm:$0xff] }
0x1227   :  { %3779 = vadd.xlane.f32.xlu2 %v3778_v6  ;;  %v2614_v6 = vmul.f32 %v9048_v41, %v5784_v40  ;;  %v3818_v41 = vmul.f32 %v6720_v43, %v2802_v7  ;;  %v2876_v37 = vmul.f32 0.5, %v2875_v4  ;;  %v2774_v44 = vmul.f32 %v7204_v36, %v7118_v27 }
0x1228   :  { %3764 = vadd.xlane.f32.xlu1 %v3763_v10  ;;  %v7224_v10 = vpop.eup %4650  ;;  %4654 = vrsqrt.f32 %v7201_v11  ;;  %v2606_v24 = vmul.f32 %v9055_v16, %v5784_v40  ;;  %v2856_v58 = vmul.f32 0.5, %v2855_v45  ;;  %v2617_v33 = vmul.f32 %v9056_v63, %v5784_v40 }
0x1229   :  { %v7207_v1 = vadd.f32 1e-05, %v2614_v6  ;;  %v3772_v6 = vsel %vm8865_vm1, %v3606_v30, 0.0  ;;  %v7241_v43 = vmul.f32 %v7087_v9, %v2817_v38  ;;  %v2884_v30 = vmul.f32 %v7224_v10, %v7140_v23 }
0x122a   :  { %v7256_v45 = vmul.f32 %v7095_v12, %v2847_v42  ;;  %v2905_v63 = vmul.f32 %v7197_v14, %v2904_v32  ;;  %v7261_v38 = vadd.f32 1e-05, %v2619_v18  ;;  %v2775_v59 = vmul.f32 %v7204_v36, %v2774_v44 }
0x122b   :  { %4656 = vrsqrt.f32 %v7207_v1  ;;  %v7270_v42 = vadd.f32 1e-05, %v2606_v24  ;;  %v2877_v32 = vsub.f32 1.5, %v2876_v37  ;;  %v7283_v56 = vadd.f32 1e-05, %v2617_v33 }
0x122c   :  { %v7243_v7 = vpop.eup %4652  ;;  %v2857_v2 = vsub.f32 1.5, %v2856_v58  ;;  %v2885_v37 = vmul.f32 %v7224_v10, %v2884_v30  ;;  %vm2880_vm11 = vweird.f32 %v7137_v22  ;;  %v2906_v0 = vmul.f32 0.5, %v2905_v63  ;;  %v9066_v63 = vld [vmem:[#allocation66_spill] sm:$0xff] }
0x122d   :  { %v2934_v18 = vmul.f32 %v7243_v7, %v7165_v29  ;;  %4658 = vrsqrt.f32 %v7261_v38  ;;  %v3821_v58 = vmul.f32 %v6724_v55, %v2832_v60  ;;  %v2776_v30 = vmul.f32 0.5, %v2775_v59  ;;  %vm7332_vm2 = vmor %vm2879_vm9, %vm2880_vm11 }
0x122e   :  { %v7293_v44 = vpop.eup %4654  ;;  %4660 = vrsqrt.f32 %v7270_v42  ;;  %vm2860_vm13 = vweird.f32 %v7146_v25  ;;  %v2620_v33 = vmul.f32 %v9066_v63, %v5784_v40  ;;  %v2858_v55 = vmul.f32 %v7146_v25, %v2857_v2 }
0x122f   :  { %4662 = vrsqrt.f32 %v7283_v56  ;;  %v2886_v60 = vmul.f32 0.5, %v2885_v37  ;;  %v2804_v59 = vmul.f32 %v7293_v44, %v7201_v11  ;;  %v9068_v2 = vmov 0  ;;  %vm7347_vm7 = vmor %vm2859_vm12, %vm2860_vm13 }
0x1230   :  { %3773 = vadd.xlane.f32.xlu1 %v3772_v6  ;;  %v9059_v6 = vperm.slane %v8991_v39, 7  ;;  %v9069_v2 = vsel %vm7332_vm2, 4294967295, %v9068_v2  ;;  %v2907_v37 = vsub.f32 1.5, %v2906_v0  ;;  %v9071_v63 = vperm.slane %v9027_v52, 2 }
0x1231   :  { %v7303_v24 = vpop.eup %4656  ;;  %9070 = vst [vmem:[#allocation42_spill] sm:$0xff] %v9069_v2  ;;  %v2777_v8 = vsub.f32 1.5, %v2776_v30  ;;  %vm2910_vm6 = vweird.f32 %v7197_v14  ;;  %vm2889_vm9 = vweird.f32 %v7140_v23  ;;  %v7354_v30 = vadd.f32 1e-05, %v2620_v33 }
0x1232   :  { %v4018_v16 = vadd.f32 %v9059_v6, %v3818_v41  ;;  %v9064_v6 = vld [vmem:[#allocation64_spill] sm:$0xff]  ;;  %v4021_v62 = vadd.f32 %v9071_v63, %v3821_v58  ;;  %vm2780_vm11 = vweird.f32 %v7204_v36  ;;  %v2805_v61 = vmul.f32 %v7293_v44, %v2804_v59 }
0x1233   :  { %v2622_v13 = vmul.f32 %v9064_v6, %v5784_v40  ;;  %v2935_v6 = vmul.f32 %v7243_v7, %v2934_v18  ;;  %v9067_v18 = vld [vmem:[#allocation58_spill] sm:$0xff]  ;;  %v7352_v0 = vpop.eup %4658  ;;  %v7372_v53 = vmul.f32 %v7197_v14, %v2907_v37  ;;  %vm2940_vm12 = vweird.f32 %v7243_v7 }
0x1234   :  { %v2609_v19 = vmul.f32 %v9067_v18, %v5784_v40  ;;  %v2862_v18 = vsel %vm7347_vm7, %v7146_v25, %v2858_v55  ;;  %v7360_v63 = vpop.eup %4660  ;;  %v2964_v25 = vmul.f32 %v7352_v0, %v7261_v38  ;;  %v7378_v55 = vmul.f32 %v7204_v36, %v2777_v8  ;;  %vm7393_vm7 = vmor %vm2909_vm14, %vm2910_vm6 }
0x1235   :  { %4161 = vperm.xlu0 %4582, %v4018_v16   ;;  %v7310_v16 = vmul.f32 %v7137_v22, %v2877_v32  ;;  %v2914_v32 = vmul.f32 %v7303_v24, %v7207_v1  ;;  %v7323_v3 = vadd.f32 1e-05, %v2622_v13  ;;  %v2936_v58 = vmul.f32 0.5, %v2935_v6  ;;  %v7365_v22 = vpop.eup %4662  ;;  %v9074_v6 = vld [vmem:[#allocation67_spill] sm:$0xff]  ;;  %9075 = vst [vmem:[#allocation29_spill] sm:$0xff] %v7372_v53  ;;  %vm7412_vm14 = vmor %vm2779_vm0, %vm2780_vm11 }
0x1236   :  { %v7367_v33 = vadd.f32 1e-05, %v2609_v19  ;;  %v2625_v2 = vmul.f32 %v9074_v6, %v5784_v40  ;;  %vm2890_vm13 = vweird.f32 %v7224_v10  ;;  %v2834_v19 = vmul.f32 %v7360_v63, %v7270_v42 }
0x1237   :  { %9065 = vst [vmem:[#allocation55_spill] sm:$0xff] %v7310_v16  ;;  %v2915_v13 = vmul.f32 %v7303_v24, %v2914_v32  ;;  %4664 = vrsqrt.f32 %v7323_v3  ;;  %v2887_v16 = vsub.f32 1.5, %v2886_v60  ;;  %v9076_v60 = vld [vmem:[#allocation69_spill] sm:$0xff]  ;;  %v2937_v32 = vsub.f32 1.5, %v2936_v58  ;;  %vm2891_vm6 = vmor %vm2889_vm9, %vm2890_vm13 }
0x1238   :  { %4666 = vrsqrt.f32 %v7354_v30  ;;  %v2623_v59 = vmul.f32 %v9076_v60, %v5784_v40  ;;  %vm2939_vm5 = vweird.f32 %v7165_v29  ;;  %v7400_v58 = vadd.f32 1e-05, %v2625_v2 }
0x1239   :  { %v2916_v37 = vmul.f32 0.5, %v2915_v13  ;;  %v2888_v6 = vmul.f32 %v7224_v10, %v2887_v16  ;;  %4668 = vrsqrt.f32 %v7367_v33  ;;  %v9079_v13 = vsel %vm7130_vm4, %v6996_v49, %v7109_v54  ;;  %vm7481_vm11 = vmor %vm2939_vm5, %vm2940_vm12 }
0x123a   :  { %v9083_v16 = vperm.slane %v9027_v52, 5  ;;  %v2965_v20 = vmul.f32 %v7352_v0, %v2964_v25  ;;  %vm2810_vm4 = vweird.f32 %v7293_v44  ;;  %v2835_v27 = vmul.f32 %v7360_v63, %v2834_v19 }
0x123b   :  { %v7436_v25 = vmul.f32 %v7243_v7, %v2937_v32  ;;  %vm2809_vm0 = vweird.f32 %v7201_v11  ;;  %v2892_v19 = vsel %vm2891_vm6, %v7224_v10, %v2888_v6  ;;  %v2917_v49 = vsub.f32 1.5, %v2916_v37  ;;  %v9087_v6 = vld [vmem:[#allocation72_spill] sm:$0xff] }
0x123c   :  { %4670 = vrsqrt.f32 %v7400_v58  ;;  %v9085_v32 = vperm.slane %v8991_v39, 4  ;;  %v3827_v23 = vmul.f32 %v6736_v51, %v2892_v19  ;;  %v2966_v14 = vmul.f32 0.5, %v2965_v20  ;;  %vm7514_vm12 = vmor %vm2809_vm0, %vm2810_vm4 }
0x123d   :  { %4170 = vperm.xlu0 %4582, %v4021_v62   ;;  %v3824_v62 = vmul.f32 %v6728_v5, %v2862_v18  ;;  %v2806_v5 = vmul.f32 0.5, %v2805_v61  ;;  %v2944_v18 = vmul.f32 %v7365_v22, %v7283_v56  ;;  %v9080_v61 = vld [vmem:[#allocation82_spill] sm:$0xff]  ;;  %v7418_v2 = vpop.eup %4664  ;;  %vm2919_vm9 = vweird.f32 %v7207_v1 }
0x123e   :  { %v3815_v60 = vmul.f32 %v9080_v61, %v9079_v13  ;;  %v7433_v61 = vadd.f32 1e-05, %v2623_v59  ;;  %v2994_v59 = vmul.f32 %v7418_v2, %v7323_v3  ;;  %v2918_v19 = vmul.f32 %v7303_v24, %v2917_v49 }
0x123f   :  { %v4024_v26 = vadd.f32 %v9083_v16, %v3824_v62  ;;  %v9084_v62 = vld [vmem:[#allocation21_spill] sm:$0xff]  ;;  %v2945_v16 = vmul.f32 %v7365_v22, %v2944_v18  ;;  %v2807_v54 = vsub.f32 1.5, %v2806_v5  ;;  %v2836_v5 = vmul.f32 0.5, %v2835_v27 }
0x1240   :  { %v2612_v13 = vmul.f32 %v9084_v62, %v5784_v40  ;;  %v7445_v62 = vpop.eup %4666  ;;  %v4015_v53 = vadd.f32 %v9085_v32, %v3815_v60  ;;  %4672 = vrsqrt.f32 %v7433_v61  ;;  %v2626_v60 = vmul.f32 %v9087_v6, %v5784_v40 }
0x1241   :  { %v7457_v10 = vpop.eup %4668  ;;  %v2946_v51 = vmul.f32 0.5, %v2945_v16  ;;  %v2974_v20 = vmul.f32 %v7445_v62, %v7354_v30  ;;  %vm2920_vm13 = vweird.f32 %v7303_v24  ;;  %vm2969_vm6 = vweird.f32 %v7261_v38 }
0x1242   :  { %v7459_v37 = vadd.f32 1e-05, %v2612_v13  ;;  %v2995_v27 = vmul.f32 %v7418_v2, %v2994_v59  ;;  %v9088_v13 = vsel %vm7251_vm3, %v7074_v34, %v7221_v15  ;;  %v9092_v4 = vperm.slane %v9032_v31, 0  ;;  %vm2921_vm3 = vmor %vm2919_vm9, %vm2920_vm13 }
0x1243   :  { %v2864_v34 = vmul.f32 %v7457_v10, %v7367_v33  ;;  %v2967_v6 = vsub.f32 1.5, %v2966_v14  ;;  %vm2840_vm5 = vweird.f32 %v7360_v63  ;;  %vm2950_vm0 = vweird.f32 %v7365_v22 }
0x1244   :  { %v4027_v59 = vadd.f32 %v9092_v4, %v3827_v23  ;;  %4674 = vrsqrt.f32 %v7459_v37  ;;  %v2975_v23 = vmul.f32 %v7445_v62, %v2974_v20  ;;  %v2996_v1 = vmul.f32 0.5, %v2995_v27  ;;  %v9096_v27 = vld [vmem:[#allocation75_spill] sm:$0xff] }
0x1245   :  { %4179 = vperm.xlu0 %4582, %v4024_v26   ;;  %v9086_v26 = vld [vmem:[#allocation62_spill] sm:$0xff]  ;;  %vm9100_vm9 = vweird.f32 %v7352_v0 }
0x1246   :  { %v2615_v18 = vmul.f32 %v9086_v26, %v5784_v40  ;;  %v7486_v26 = vmul.f32 %v7293_v44, %v2807_v54  ;;  %v7502_v54 = vadd.f32 1e-05, %v2626_v60  ;;  %vm7564_vm13 = vmor %vm2969_vm6, %vm9100_vm9  ;;  %vm2979_vm6 = vweird.f32 %v7354_v30 }
0x1247   :  { %vm3029_vm9 = vweird.f32 %v7400_v58 }
0x1248   :  { %v7493_v15 = vadd.f32 1e-05, %v2615_v18  ;;  %v2922_v18 = vsel %vm2921_vm3, %v7303_v24, %v2918_v19  ;;  %vm2999_vm3 = vweird.f32 %v7323_v3 }
0x1249   :  { %v768_v32 = vpop.permute.xlu0 %767  ;;  %4152 = vperm.xlu1 %4584, %v4015_v53   ;;  %v9089_v53 = vld [vmem:[#allocation83_spill] sm:$0xff]  ;;  %v3830_v20 = vmul.f32 %v6740_v21, %v2922_v18 }
0x124a   :  { %770 = vst.msk [vmem:[#allocation12] sm:$0xff] %vm8865_vm1, %v768_v32  ;;  %v3817_v16 = vmul.f32 %v9089_v53, %v9088_v13  ;;  %v7499_v32 = vpop.eup %4670  ;;  %v2837_v13 = vsub.f32 1.5, %v2836_v5  ;;  %v2947_v5 = vsub.f32 1.5, %v2946_v51  ;;  %vm2949_vm1 = vweird.f32 %v7283_v56 }
0x124b   :  { %v7520_v60 = vpop.eup %4672  ;;  %v9095_v53 = vperm.slane %v8991_v39, 6  ;;  %v3024_v24 = vmul.f32 %v7499_v32, %v7400_v58  ;;  %4676 = vrsqrt.f32 %v7493_v15  ;;  %v7534_v51 = vmul.f32 %v7352_v0, %v2967_v6  ;;  %4498 = dma.vmem_to_hbm [thread:$0]  %s4494_s29, 128, %s4496_s30, [#allocation13]  }
0x124c   :  { %4678 = vrsqrt.f32 %v7502_v54  ;;  %v3004_v18 = vmul.f32 %v7520_v60, %v7433_v61  ;;  %v2948_v6 = vmul.f32 %v7365_v22, %v2947_v5  ;;  %v7548_v29 = vpop.eup %4674 }
0x124d   :  { %4188 = vperm.xlu0 %4582, %v4027_v59   ;;  %v4017_v4 = vadd.f32 %v9095_v53, %v3817_v16  ;;  %v2865_v59 = vmul.f32 %v7457_v10, %v2864_v34  ;;  %v2629_v16 = vmul.f32 %v9096_v27, %v5784_v40  ;;  %v7540_v53 = vmul.f32 %v7360_v63, %v2837_v13  ;;  %v9097_v27 = vld [vmem:[#allocation65_spill] sm:$0xff] }
0x124e   :  { %v2976_v34 = vmul.f32 0.5, %v2975_v23  ;;  %v2618_v11 = vmul.f32 %v9097_v27, %v5784_v40  ;;  %v9098_v13 = vsel %vm7276_vm8, %v7087_v9, %v7241_v43  ;;  %v9099_v23 = vperm.slane %v9032_v31, 3 }
0x124f   :  { %v2866_v17 = vmul.f32 0.5, %v2865_v59  ;;  %v3025_v9 = vmul.f32 %v7499_v32, %v3024_v24  ;;  %vm9103_vm8 = vweird.f32 %v7270_v42  ;;  %v7584_v38 = vadd.f32 1e-05, %v2629_v16  ;;  %v9108_v59 = vld [vmem:[#allocation81_spill] sm:$0xff] }
0x1250   :  { %v756_v19 = vpop.permute.xlu1 %755  ;;  %vm7575_vm4 = vmor %vm9103_vm8, %vm2840_vm5  ;;  %v9107_v42 = vsel %vm7211_vm15, %v7048_v57, %v7178_v46  ;;  %v2894_v35 = vmul.f32 %v7548_v29, %v7459_v37  ;;  %v3005_v57 = vmul.f32 %v7520_v60, %v3004_v18  ;;  %v2977_v27 = vsub.f32 1.5, %v2976_v34 }
0x1251   :  { %v758_v21 = vmul.f32 %v756_v19, %v6778_v50  ;;  %4158 = vperm.xlu1 %4584, %v4017_v4   ;;  %v3820_v50 = vmul.f32 %v6679_v48, %v9098_v13  ;;  %v4030_v4 = vadd.f32 %v9099_v23, %v3830_v20  ;;  %v2997_v19 = vsub.f32 1.5, %v2996_v1  ;;  %v9106_v1 = vld [vmem:[#allocation78_spill] sm:$0xff]  ;;  %vm2951_vm5 = vmor %vm2949_vm1, %vm2950_vm0  ;;  %v7602_v16 = vpop.eup %4676 }
0x1252   :  { %v2632_v20 = vmul.f32 %v9106_v1, %v5784_v40  ;;  %v3814_v24 = vmul.f32 %v9108_v59, %v9107_v42  ;;  %v2952_v46 = vsel %vm2951_vm5, %v7365_v22, %v2948_v6  ;;  %v7608_v13 = vpop.eup %4678  ;;  %v7610_v23 = vadd.f32 1e-05, %v2618_v11  ;;  %v9110_v59 = vld [vmem:[#allocation68_spill] sm:$0xff] }
0x1253   :  { %760 = vrot.lane.b32.xlu2 %v758_v21, %s4896_s3  ;;  %v9109_v1 = vperm.slane %v9027_v52, 1  ;;  %v3833_v56 = vmul.f32 %v6746_v47, %v2952_v46  ;;  %v2621_v43 = vmul.f32 %v9110_v59, %v5784_v40  ;;  %v2867_v21 = vsub.f32 1.5, %v2866_v17  ;;  %v9114_v46 = vld [vmem:[#allocation47_spill] sm:$0xff] }
0x1254   :  { %vm2870_vm1 = vweird.f32 %v7457_v10  ;;  %vm2980_vm15 = vweird.f32 %v7445_v62  ;;  %v3026_v22 = vmul.f32 0.5, %v3025_v9  ;;  %v2924_v11 = vmul.f32 %v7602_v16, %v7493_v15  ;;  %v9112_v9 = vld [vmem:[#allocation71_spill] sm:$0xff] }
0x1255   :  { %4197 = vperm.xlu0 %4582, %v4030_v4   ;;  %v4020_v42 = vadd.f32 %v9109_v1, %v3820_v50  ;;  %v7616_v4 = vmul.f32 %v7418_v2, %v2997_v19  ;;  %4680 = vrsqrt.f32 %v7584_v38  ;;  %v7625_v34 = vadd.f32 1e-05, %v2632_v20 }
0x1256   :  { %v9111_v47 = vperm.slane %v8991_v39, 3  ;;  %v2895_v6 = vmul.f32 %v7548_v29, %v2894_v35  ;;  %v3034_v50 = vmul.f32 %v7608_v13, %v7502_v54  ;;  %v2978_v19 = vmul.f32 %v7445_v62, %v2977_v27 }
0x1257   :  { %v3006_v17 = vmul.f32 0.5, %v3005_v57  ;;  %4682 = vrsqrt.f32 %v7610_v23  ;;  %v2624_v20 = vmul.f32 %v9112_v9, %v5784_v40  ;;  %v9115_v1 = vperm.slane %v9032_v31, 6  ;;  %v9120_v57 = vld [vmem:[#allocation80_spill] sm:$0xff] }
0x1258   :  { %v4014_v18 = vadd.f32 %v9111_v47, %v3814_v24  ;;  %v9113_v24 = vsel %vm7289_vm10, %v7095_v12, %v7256_v45  ;;  %v7646_v27 = vadd.f32 1e-05, %v2621_v43  ;;  %vm3009_vm8 = vweird.f32 %v7433_v61  ;;  %v9122_v9 = vld [vmem:[#allocation92_spill] sm:$0xff] }
0x1259   :  { %4167 = vperm.xlu1 %4584, %v4020_v42   ;;  %v3823_v35 = vmul.f32 %v9114_v46, %v9113_v24  ;;  %v4033_v42 = vadd.f32 %v9115_v1, %v3833_v56  ;;  %vm9116_vm5 = vweird.f32 %v7418_v2  ;;  %v3027_v12 = vsub.f32 1.5, %v3026_v22 }
0x125a   :  { %vm7653_vm0 = vmor %vm2999_vm3, %vm9116_vm5  ;;  %vm3030_vm10 = vweird.f32 %v7499_v32  ;;  %v2925_v45 = vmul.f32 %v7602_v16, %v2924_v11  ;;  %4684 = vrsqrt.f32 %v7625_v34  ;;  %v9119_v43 = vsel %vm7412_vm14, %v7204_v36, %v7378_v55 }
0x125b   :  { %4149 = vperm.xlu2 %4583, %v4014_v18   ;;  %v3816_v56 = vmul.f32 %v9120_v57, %v9119_v43  ;;  %vm2981_vm3 = vmor %vm2979_vm6, %vm2980_vm15  ;;  %v2896_v59 = vmul.f32 0.5, %v2895_v6  ;;  %v3035_v22 = vmul.f32 %v7608_v13, %v3034_v50  ;;  %v3007_v11 = vsub.f32 1.5, %v3006_v17  ;;  %v7676_v36 = vpop.eup %4680  ;;  %v9123_v6 = vld [vmem:[#allocation74_spill] sm:$0xff] }
0x125c   :  { %v2982_v28 = vsel %vm2981_vm3, %v7445_v62, %v2978_v19  ;;  %v7678_v55 = vadd.f32 1e-05, %v2624_v20  ;;  %v9121_v47 = vperm.slane %v9027_v52, 4  ;;  %v7683_v18 = vmul.f32 %v7457_v10, %v2867_v21  ;;  %v9125_v21 = vld [vmem:[#allocation37_spill] sm:$0xff] }
0x125d   :  { %4206 = vperm.xlu0 %4582, %v4033_v42   ;;  %v3836_v24 = vmul.f32 %v9122_v9, %v2982_v28  ;;  %4686 = vrsqrt.f32 %v7646_v27  ;;  %v2627_v50 = vmul.f32 %v9123_v6, %v5784_v40  ;;  %vm2900_vm14 = vweird.f32 %v7548_v29  ;;  %v7693_v19 = vpop.eup %4682  ;;  %v9128_v28 = vld [vmem:[#allocation40_spill] sm:$0xff] }
0x125e   :  { %v4023_v30 = vadd.f32 %v9121_v47, %v3823_v35  ;;  %v7691_v62 = vmul.f32 %v7499_v32, %v3027_v12  ;;  %v2926_v17 = vmul.f32 0.5, %v2925_v45  ;;  %v9124_v20 = vperm.slane %v8991_v39, 5  ;;  %v9126_v39 = vld [vmem:[#allocation70_spill] sm:$0xff]  ;;  %v9129_v47 = vld [vmem:[#allocation55_spill] sm:$0xff]  ;;  %v9131_v9 = vld [vmem:[#allocation44_spill] sm:$0xff] }
0x125f   :  { %v2635_v35 = vmul.f32 %v9125_v21, %v5784_v40  ;;  %vm3010_vm6 = vweird.f32 %v7520_v60  ;;  %v3064_v1 = vmul.f32 %v7676_v36, %v7584_v38  ;;  %v2897_v42 = vsub.f32 1.5, %v2896_v59 }
0x1260   :  { %v4016_v46 = vadd.f32 %v9124_v20, %v3816_v56  ;;  %v3008_v12 = vmul.f32 %v7520_v60, %v3007_v11  ;;  %v3036_v43 = vmul.f32 0.5, %v3035_v22  ;;  %v7704_v57 = vpop.eup %4684  ;;  %4688 = vrsqrt.f32 %v7678_v55  ;;  %v9135_v22 = vld [vmem:[#allocation30_spill] sm:$0xff] }
0x1261   :  { %4176 = vperm.xlu1 %4584, %v4023_v30   ;;  %v2628_v45 = vmul.f32 %v9126_v39, %v5784_v40  ;;  %v9130_v30 = vsel %vm7332_vm2, %v9128_v28, %v9129_v47  ;;  %vm9132_vm5 = vweird.f32 %v7367_v33  ;;  %vm2929_vm15 = vweird.f32 %v7493_v15 }
0x1262   :  { %v3826_v6 = vmul.f32 %v9131_v9, %v9130_v30  ;;  %vm7719_vm3 = vmor %vm9132_vm5, %vm2870_vm1  ;;  %v9136_v11 = vperm.slane %v9135_v22, 1  ;;  %v2954_v21 = vmul.f32 %v7693_v19, %v7610_v23  ;;  %v7728_v39 = vadd.f32 1e-05, %v2627_v50  ;;  %v9140_v50 = vld [vmem:[#allocation51_spill] sm:$0xff] }
0x1263   :  { %4155 = vperm.xlu2 %4583, %v4016_v46   ;;  %vm3039_vm2 = vweird.f32 %v7502_v54  ;;  %vm7739_vm1 = vmor %vm3029_vm9, %vm3030_vm10  ;;  %v2927_v28 = vsub.f32 1.5, %v2926_v17  ;;  %v7749_v47 = vadd.f32 1e-05, %v2635_v35  ;;  %v7759_v14 = vpop.eup %4686  ;;  %v3037_v35 = vsub.f32 1.5, %v3036_v43 }
0x1264   :  { %v4036_v20 = vadd.f32 %v9136_v11, %v3836_v24  ;;  %v9139_v24 = vsel %vm7514_vm12, %v7293_v44, %v7486_v26  ;;  %vm3011_vm5 = vmor %vm3009_vm8, %vm3010_vm6  ;;  %v3065_v44 = vmul.f32 %v7676_v36, %v3064_v1  ;;  %v3094_v26 = vmul.f32 %v7704_v57, %v7625_v34 }
0x1265   :  { %v3819_v46 = vmul.f32 %v9140_v50, %v9139_v24  ;;  %v3012_v17 = vsel %vm3011_vm5, %v7520_v60, %v3008_v12  ;;  %v7765_v30 = vadd.f32 1e-05, %v2628_v45  ;;  %v9141_v61 = vperm.slane %v9027_v52, 7  ;;  %v9142_v24 = vld [vmem:[#allocation95_spill] sm:$0xff] }
0x1266   :  { %4215 = vperm.xlu0 %4582, %v4036_v20   ;;  %v7770_v11 = vmul.f32 %v7548_v29, %v2897_v42  ;;  %v3839_v20 = vmul.f32 %v9142_v24, %v3012_v17  ;;  %v2955_v50 = vmul.f32 %v7693_v19, %v2954_v21  ;;  %4690 = vrsqrt.f32 %v7728_v39  ;;  %v7777_v60 = vpop.eup %4688  ;;  %v9144_v42 = vld [vmem:[#allocation45_spill] sm:$0xff] }
0x1267   :  { %v4026_v9 = vadd.f32 %v9141_v61, %v3826_v6  ;;  %vm2930_vm12 = vweird.f32 %v7602_v16  ;;  %vm3040_vm9 = vweird.f32 %v7608_v13  ;;  %v2984_v1 = vmul.f32 %v7759_v14, %v7646_v27  ;;  %v9145_v24 = vld [vmem:[#allocation73_spill] sm:$0xff] }
0x1268   :  { %v9143_v12 = vperm.slane %v9027_v52, 0  ;;  %4692 = vrsqrt.f32 %v7749_v47  ;;  %v2638_v45 = vmul.f32 %v9144_v42, %v5784_v40  ;;  %v3095_v6 = vmul.f32 %v7704_v57, %v3094_v26  ;;  %v9149_v42 = vld [vmem:[#allocation46_spill] sm:$0xff] }
0x1269   :  { %4185 = vperm.xlu1 %4584, %v4026_v9   ;;  %v7788_v21 = vmul.f32 %v7602_v16, %v2927_v28  ;;  %v3038_v17 = vmul.f32 %v7608_v13, %v3037_v35  ;;  %v3066_v61 = vmul.f32 0.5, %v3065_v44  ;;  %4694 = vrsqrt.f32 %v7765_v30 }
0x126a   :  { %v4019_v43 = vadd.f32 %v9143_v12, %v3819_v46  ;;  %v2631_v58 = vmul.f32 %v9145_v24, %v5784_v40  ;;  %v9146_v46 = vld [vmem:[#allocation52_spill] sm:$0xff]  ;;  %v9147_v12 = vld [vmem:[#allocation29_spill] sm:$0xff]  ;;  %vm9150_vm8 = vweird.f32 %v7459_v37  ;;  %v9153_v44 = vperm.slane %v9135_v22, 4 }
0x126b   :  { %v9148_v3 = vsel %vm7393_vm7, %v9146_v46, %v9147_v12  ;;  %vm7804_vm10 = vmor %vm9150_vm8, %vm2900_vm14  ;;  %v2956_v35 = vmul.f32 0.5, %v2955_v50  ;;  %v3014_v8 = vmul.f32 %v7777_v60, %v7678_v55  ;;  %vm3069_vm14 = vweird.f32 %v7584_v38 }
0x126c   :  { %v3829_v9 = vmul.f32 %v9149_v42, %v9148_v3  ;;  %v4039_v26 = vadd.f32 %v9153_v44, %v3839_v20  ;;  %4164 = vperm.xlu2 %4583, %v4019_v43   ;;  %vm7820_vm7 = vmor %vm2929_vm15, %vm2930_vm12  ;;  %v2985_v20 = vmul.f32 %v7759_v14, %v2984_v1  ;;  %v9156_v50 = vsel %vm7575_vm4, %v7360_v63, %v7540_v53  ;;  %v9157_v43 = vld [vmem:[#allocation48_spill] sm:$0xff]  ;;  %v7839_v15 = vpop.eup %4690  ;;  %v9158_v1 = vld [vmem:[#allocation77_spill] sm:$0xff] }
0x126d   :  { %v3822_v24 = vmul.f32 %v9157_v43, %v9156_v50  ;;  %vm2960_vm6 = vweird.f32 %v7693_v19  ;;  %v7833_v46 = vadd.f32 1e-05, %v2638_v45  ;;  %vm3041_vm15 = vmor %vm3039_vm2, %vm3040_vm9  ;;  %v2630_v48 = vmul.f32 %v9158_v1, %v5784_v40  ;;  %v9161_v63 = vld [vmem:[#allocation43_spill] sm:$0xff] }
0x126e   :  { %4224 = vperm.xlu0 %4582, %v4039_v26   ;;  %vm2959_vm4 = vweird.f32 %v7610_v23  ;;  %v3042_v53 = vsel %vm3041_vm15, %v7608_v13, %v3038_v17  ;;  %v3067_v45 = vsub.f32 1.5, %v3066_v61  ;;  %v7849_v12 = vpop.eup %4692  ;;  %v7851_v54 = vadd.f32 1e-05, %v2631_v58  ;;  %v9160_v26 = vld [vmem:[#allocation98_spill] sm:$0xff] }
0x126f   :  { %v9159_v42 = vperm.slane %v9032_v31, 2  ;;  %v3842_v50 = vmul.f32 %v9160_v26, %v3042_v53  ;;  %v3096_v43 = vmul.f32 0.5, %v3095_v6  ;;  %v3015_v1 = vmul.f32 %v7777_v60, %v3014_v8  ;;  %v7860_v13 = vpop.eup %4694 }
0x1270   :  { %v2957_v3 = vsub.f32 1.5, %v2956_v35  ;;  %v2641_v33 = vmul.f32 %v9161_v63, %v5784_v40  ;;  %vm3070_vm2 = vweird.f32 %v7676_v36  ;;  %v2986_v17 = vmul.f32 0.5, %v2985_v20 }
0x1271   :  { %v4029_v44 = vadd.f32 %v9159_v42, %v3829_v9  ;;  %v3044_v58 = vmul.f32 %v7839_v15, %v7728_v39  ;;  %v9162_v61 = vperm.slane %v9027_v52, 3  ;;  %4696 = vrsqrt.f32 %v7833_v46  ;;  %vm3071_vm12 = vmor %vm3069_vm14, %vm3070_vm2 }
0x1272   :  { %v7867_v6 = vadd.f32 1e-05, %v2630_v48  ;;  %v3124_v35 = vmul.f32 %v7849_v12, %v7749_v47  ;;  %v3068_v8 = vmul.f32 %v7676_v36, %v3067_v45  ;;  %vm3099_vm5 = vweird.f32 %v7625_v34 }
0x1273   :  { %v4022_v9 = vadd.f32 %v9162_v61, %v3822_v24  ;;  %4194 = vperm.xlu1 %4584, %v4029_v44   ;;  %4698 = vrsqrt.f32 %v7851_v54  ;;  %v9163_v20 = vsel %vm7481_vm11, %v7243_v7, %v7436_v25  ;;  %v9164_v24 = vld [vmem:[#allocation26_spill] sm:$0xff]  ;;  %v9165_v53 = vperm.slane %v9135_v22, 7 }
0x1274   :  { %v3832_v63 = vmul.f32 %v9164_v24, %v9163_v20  ;;  %v3097_v42 = vsub.f32 1.5, %v3096_v43  ;;  %v3016_v44 = vmul.f32 0.5, %v3015_v1  ;;  %v3054_v45 = vmul.f32 %v7860_v13, %v7765_v30  ;;  %v7889_v49 = vpop.xlane.xlu0 %3785 }
0x1275   :  { %v4042_v48 = vadd.f32 %v9165_v53, %v3842_v50  ;;  %4173 = vperm.xlu2 %4583, %v4022_v9   ;;  %v7885_v26 = vmul.f32 %v7693_v19, %v2957_v3  ;;  %v7887_v61 = vadd.f32 1e-05, %v2641_v33  ;;  %v3045_v7 = vmul.f32 %v7839_v15, %v3044_v58  ;;  %v9167_v50 = vld [vmem:[#allocation49_spill] sm:$0xff]  ;;  %v9168_v33 = vld [vmem:[#allocation76_spill] sm:$0xff]  ;;  %v9173_v53 = vld [vmem:[#allocation79_spill] sm:$0xff] }
0x1276   :  { %v9166_v25 = vsel %vm7719_vm3, %v7457_v10, %v7683_v18  ;;  %v2987_v1 = vsub.f32 1.5, %v2986_v17  ;;  %vm2990_vm11 = vweird.f32 %v7759_v14  ;;  %4700 = vrsqrt.f32 %v7867_v6  ;;  %vm7917_vm3 = vmor %vm2959_vm4, %vm2960_vm6  ;;  %v9172_v9 = vld [vmem:[#allocation101_spill] sm:$0xff] }
0x1277   :  { %v3825_v43 = vmul.f32 %v9167_v50, %v9166_v25  ;;  %4233 = vperm.xlu0 %4582, %v4042_v48   ;;  %v2634_v3 = vmul.f32 %v9168_v33, %v5784_v40  ;;  %vm2989_vm9 = vweird.f32 %v7646_v27  ;;  %v3125_v10 = vmul.f32 %v7849_v12, %v3124_v35  ;;  %v7909_v59 = vpop.eup %4696 }
0x1278   :  { %v3072_v18 = vsel %vm3071_vm12, %v7676_v36, %v3068_v8  ;;  %v9169_v17 = vperm.slane %v9032_v31, 5  ;;  %vm3019_vm8 = vweird.f32 %v7678_v55  ;;  %v3098_v35 = vmul.f32 %v7704_v57, %v3097_v42 }
0x1279   :  { %v3845_v20 = vmul.f32 %v9172_v9, %v3072_v18  ;;  %vm3100_vm14 = vweird.f32 %v7704_v57  ;;  %v3055_v36 = vmul.f32 %v7860_v13, %v3054_v45  ;;  %v2962_v8 = vsel %vm7917_vm3, %v7693_v19, %v7885_v26  ;;  %v7931_v24 = vpop.eup %4698  ;;  %v9206_v26 = vld [vmem:[#allocation27_spill] sm:$0xff] }
0x127a   :  { %v4032_v58 = vadd.f32 %v9169_v17, %v3832_v63  ;;  %v3017_v23 = vsub.f32 1.5, %v3016_v44  ;;  %4702 = vrsqrt.f32 %v7887_v61  ;;  %v3046_v63 = vmul.f32 0.5, %v3045_v7  ;;  %vm7947_vm15 = vmor %vm3099_vm5, %vm3100_vm14 }
0x127b   :  { %v2633_v48 = vmul.f32 %v9173_v53, %v5784_v40  ;;  %v9174_v42 = vperm.slane %v9027_v52, 6  ;;  %v7938_v50 = vmul.f32 %v7759_v14, %v2987_v1  ;;  %v7940_v45 = vadd.f32 1e-05, %v2634_v3  ;;  %v2567_v52 = vpop.xlane.xlu2 %2566  ;;  %v2570_v53 = vpop.xlane.xlu1 %2569 }
0x127c   :  { %4203 = vperm.xlu1 %4584, %v4032_v58   ;;  %vm3020_vm6 = vweird.f32 %v7777_v60  ;;  %v3154_v44 = vmul.f32 %v7909_v59, %v7833_v46  ;;  %v3126_v33 = vmul.f32 0.5, %v3125_v10  ;;  %v3102_v3 = vsel %vm7947_vm15, %v7704_v57, %v3098_v35  ;;  %v9180_v58 = vld [vmem:[#allocation91_spill] sm:$0xff]  ;;  %v7963_v10 = vpop.eup %4700  ;;  %v7971_v35 = vpop.xlane.xlu0 %2554 }
0x127d   :  { %v4025_v25 = vadd.f32 %v9174_v42, %v3825_v43  ;;  %v9177_v43 = vld [vmem:[#allocation28_spill] sm:$0xff]  ;;  %v9179_v17 = vsel %vm7564_vm13, %v7352_v0, %v7534_v51  ;;  %v2649_v9 = vmul.f32 %v2567_v52, %v5784_v40  ;;  %v7968_v42 = vmul.f32 %v7777_v60, %v3017_v23  ;;  %vm7995_vm13 = vmor %vm2989_vm9, %vm2990_vm11 }
0x127e   :  { %v9178_v18 = vperm.slane %v9177_v43, 2  ;;  %v3835_v34 = vmul.f32 %v9180_v58, %v9179_v17  ;;  %v3056_v57 = vmul.f32 0.5, %v3055_v36  ;;  %v2650_v5 = vmul.f32 %v2570_v53, %v5784_v40 }
0x127f   :  { %4182 = vperm.xlu2 %4583, %v4025_v25   ;;  %v7973_v0 = vadd.f32 1e-05, %v2633_v48  ;;  %v9181_v51 = vsel %vm7804_vm10, %v7548_v29, %v7770_v11  ;;  %v9182_v25 = vld [vmem:[#allocation50_spill] sm:$0xff]  ;;  %v3047_v52 = vsub.f32 1.5, %v3046_v63  ;;  %4704 = vrsqrt.f32 %v7940_v45  ;;  %v9185_v11 = vld [vmem:[#allocation104_spill] sm:$0xff]  ;;  %vm8012_vm10 = vmor %vm3019_vm8, %vm3020_vm6 }
0x1280   :  { %v4045_v1 = vadd.f32 %v9178_v18, %v3845_v20  ;;  %v3084_v20 = vmul.f32 %v7931_v24, %v7851_v54  ;;  %v3828_v7 = vmul.f32 %v9182_v25, %v9181_v51  ;;  %v7981_v18 = vadd.f32 1e-05, %v2649_v9  ;;  %v7983_v23 = vpop.eup %4702 }
0x1281   :  { %v3155_v36 = vmul.f32 %v7909_v59, %v3154_v44  ;;  %v3127_v17 = vsub.f32 1.5, %v3126_v33  ;;  %v7987_v48 = vadd.f32 1e-05, %v2650_v5  ;;  %v3074_v28 = vmul.f32 %v7963_v10, %v7867_v6  ;;  %v9190_v5 = vld [vmem:[#allocation23_spill] sm:$0xff] }
0x1282   :  { %4242 = vperm.xlu0 %4582, %v4045_v1   ;;  %v3848_v63 = vmul.f32 %v9185_v11, %v3102_v3  ;;  %v9186_v1 = vperm.slane %v9135_v22, 0  ;;  %4706 = vrsqrt.f32 %v7981_v18  ;;  %v3085_v44 = vmul.f32 %v7931_v24, %v3084_v20 }
0x1283   :  { %v2992_v33 = vsel %vm7995_vm13, %v7759_v14, %v7938_v50  ;;  %v3057_v3 = vsub.f32 1.5, %v3056_v57  ;;  %4708 = vrsqrt.f32 %v7987_v48  ;;  %v8024_v20 = vmul.f32 %v7839_v15, %v3047_v52 }
0x1284   :  { %v4035_v58 = vadd.f32 %v9186_v1, %v3835_v34  ;;  %v9189_v34 = vperm.slane %v9032_v31, 1  ;;  %v3184_v55 = vmul.f32 %v7983_v23, %v7887_v61  ;;  %v2637_v57 = vmul.f32 %v9190_v5, %v5784_v40  ;;  %v8046_v5 = vpop.xlane.xlu1 %3782  ;;  %v2564_v41 = vpop.xlane.xlu0 %2563 }
0x1285   :  { %v3128_v51 = vmul.f32 %v7849_v12, %v3127_v17  ;;  %vm3130_vm4 = vweird.f32 %v7849_v12  ;;  %v3156_v25 = vmul.f32 0.5, %v3155_v36  ;;  %v8035_v11 = vmul.f32 %v7963_v10, %v3074_v28  ;;  %v8048_v36 = vpop.eup %4704 }
0x1286   :  { %v4028_v9 = vadd.f32 %v9189_v34, %v3828_v7  ;;  %4212 = vperm.xlu1 %4584, %v4035_v58   ;;  %v8032_v7 = vpop.xlane.xlu2 %2548  ;;  %4710 = vrsqrt.f32 %v7973_v0  ;;  %v9191_v52 = vperm.slane %v9177_v43, 5  ;;  %v9192_v58 = vsel %vm7653_vm0, %v7418_v2, %v7616_v4  ;;  %v9193_v34 = vld [vmem:[#allocation94_spill] sm:$0xff]  ;;  %v9195_v4 = vld [vmem:[#allocation84_spill] sm:$0xff] }
0x1287   :  { %v3838_v17 = vmul.f32 %v9193_v34, %v9192_v58  ;;  %vm3129_vm2 = vweird.f32 %v7749_v47  ;;  %v8052_v28 = vmul.f32 %v7860_v13, %v3057_v3  ;;  %vm3060_vm5 = vweird.f32 %v7860_v13 }
0x1288   :  { %v4048_v1 = vadd.f32 %v9191_v52, %v3848_v63  ;;  %4191 = vperm.xlu2 %4583, %v4028_v9   ;;  %v8055_v63 = vmul.f32 0.5, %v3085_v44  ;;  %v8057_v52 = vpop.eup %4706  ;;  %v9194_v2 = vsel %vm7820_vm7, %v7602_v16, %v7788_v21  ;;  %v3185_v58 = vmul.f32 %v7983_v23, %v3184_v55  ;;  %vm3131_vm0 = vmor %vm3129_vm2, %vm3130_vm4  ;;  %v9196_v21 = vld [vmem:[#allocation107_spill] sm:$0xff] }
0x1289   :  { %v3831_v9 = vmul.f32 %v9195_v4, %v9194_v2  ;;  %vm3059_vm11 = vweird.f32 %v7765_v30  ;;  %v2648_v47 = vmul.f32 %v2564_v41, %v5784_v40  ;;  %v8070_v44 = vpop.eup %4708  ;;  %v8072_v3 = vadd.f32 1e-05, %v2637_v57 }
0x128a   :  { %4251 = vperm.xlu0 %4582, %v4048_v1   ;;  %v3132_v37 = vsel %vm3131_vm0, %v7849_v12, %v3128_v51  ;;  %v3157_v34 = vsub.f32 1.5, %v3156_v25  ;;  %v3264_v16 = vmul.f32 %v8057_v52, %v7981_v18  ;;  %v9197_v2 = vperm.slane %v9135_v22, 3  ;;  %vm8082_vm7 = vmor %vm3059_vm11, %vm3060_vm5 }
0x128b   :  { %v3851_v55 = vmul.f32 %v9196_v21, %v3132_v37  ;;  %v3274_v57 = vmul.f32 %v8070_v44, %v7987_v48  ;;  %v8088_v1 = vadd.f32 1e-05, %v2648_v47  ;;  %v3114_v12 = vmul.f32 %v8048_v36, %v7940_v45 }
0x128c   :  { %v4038_v4 = vadd.f32 %v9197_v2, %v3838_v17  ;;  %v3062_v51 = vsel %vm8082_vm7, %v7860_v13, %v8052_v28  ;;  %v3087_v25 = vsub.f32 1.5, %v8055_v63  ;;  %v3265_v17 = vmul.f32 %v8057_v52, %v3264_v16  ;;  %v8098_v41 = vpop.eup %4710  ;;  %v9201_v63 = vld [vmem:[#allocation85_spill] sm:$0xff]  ;;  %v2552_v53 = vpop.xlane.xlu1 %2551 }
0x128d   :  { %v9200_v37 = vperm.slane %v9032_v31, 4  ;;  %v3186_v2 = vmul.f32 0.5, %v3185_v58  ;;  %v3275_v47 = vmul.f32 %v8070_v44, %v3274_v57  ;;  %4712 = vrsqrt.f32 %v8088_v1  ;;  %v9202_v58 = vld [vmem:[#allocation34_spill] sm:$0xff] }
0x128e   :  { %4221 = vperm.xlu1 %4584, %v4038_v4   ;;  %4714 = vrsqrt.f32 %v8072_v3  ;;  %v3158_v30 = vmul.f32 %v7909_v59, %v3157_v34  ;;  %vm3160_vm12 = vweird.f32 %v7909_v59  ;;  %v3266_v13 = vmul.f32 0.5, %v3265_v17  ;;  %v8107_v28 = vpop.xlane.xlu2 %2557  ;;  %v9205_v4 = vld [vmem:[#allocation97_spill] sm:$0xff] }
0x128f   :  { %v4031_v21 = vadd.f32 %v9200_v37, %v3831_v9  ;;  %v3834_v9 = vmul.f32 %v9201_v63, %v2962_v8  ;;  %v9203_v16 = vperm.slane %v9202_v58, 0  ;;  %v9204_v34 = vsel %vm7739_vm1, %v7499_v32, %v7691_v62 }
0x1290   :  { %v3841_v37 = vmul.f32 %v9205_v4, %v9204_v34  ;;  %v3276_v17 = vmul.f32 0.5, %v3275_v47  ;;  %vm3159_vm9 = vweird.f32 %v7833_v46  ;;  %v3267_v38 = vsub.f32 1.5, %v3266_v13 }
0x1291   :  { %v4051_v57 = vadd.f32 %v9203_v16, %v3851_v55  ;;  %4200 = vperm.xlu2 %4583, %v4031_v21   ;;  %vm3270_vm3 = vweird.f32 %v8057_v52  ;;  %v2644_v19 = vmul.f32 %v2552_v53, %v5784_v40  ;;  %v2640_v8 = vmul.f32 %v9206_v26, %v5784_v40  ;;  %vm3161_vm8 = vmor %vm3159_vm9, %vm3160_vm12  ;;  %v9207_v21 = vld [vmem:[#allocation109_spill] sm:$0xff] }
0x1292   :  { %v3187_v56 = vsub.f32 1.5, %v3186_v2  ;;  %vm3090_vm14 = vweird.f32 %v7931_v24  ;;  %v3277_v32 = vsub.f32 1.5, %v3276_v17  ;;  %vm3280_vm1 = vweird.f32 %v8070_v44 }
0x1293   :  { %4260 = vperm.xlu0 %4582, %v4051_v57   ;;  %v3162_v62 = vsel %vm3161_vm8, %v7909_v59, %v3158_v30  ;;  %v3268_v46 = vmul.f32 %v8057_v52, %v3267_v38  ;;  %vm3269_vm6 = vweird.f32 %v7981_v18  ;;  %v8133_v55 = vadd.f32 1e-05, %v2644_v19  ;;  %v8135_v53 = vpop.eup %4712 }
0x1294   :  { %v3854_v47 = vmul.f32 %v9207_v21, %v3162_v62  ;;  %v9208_v2 = vperm.slane %v9135_v22, 6  ;;  %vm3089_vm15 = vweird.f32 %v7851_v54  ;;  %v3278_v63 = vmul.f32 %v8070_v44, %v3277_v32  ;;  %vm3271_vm2 = vmor %vm3269_vm6, %vm3270_vm3  ;;  %v8145_v59 = vpop.eup %4714 }
0x1295   :  { %vm3279_vm4 = vweird.f32 %v7987_v48  ;;  %v3115_v18 = vmul.f32 %v8048_v36, %v3114_v12  ;;  %v3272_v30 = vsel %vm3271_vm2, %v8057_v52, %v3268_v46  ;;  %v3254_v16 = vmul.f32 %v8135_v53, %v8088_v1  ;;  %vm8213_vm3 = vmor %vm3089_vm15, %vm3090_vm14 }
0x1296   :  { %v4041_v13 = vadd.f32 %v9208_v2, %v3841_v37  ;;  %vm3281_vm5 = vmor %vm3279_vm4, %vm3280_vm1  ;;  %4716 = vrsqrt.f32 %v8133_v55  ;;  %v9209_v57 = vperm.slane %v9032_v31, 7  ;;  %v8156_v34 = vadd.f32 1e-05, %v2640_v8  ;;  %v8165_v17 = vpop.xlane.xlu2 %3770  ;;  %v2561_v8 = vpop.xlane.xlu1 %2560 }
0x1297   :  { %v3282_v4 = vsel %vm3281_vm5, %v8070_v44, %v3278_v63  ;;  %v8160_v37 = vmul.f32 %v8046_v5, %v3272_v30  ;;  %v3188_v12 = vmul.f32 %v7983_v23, %v3187_v56  ;;  %vm3190_vm0 = vweird.f32 %v7983_v23  ;;  %v9211_v5 = vld [vmem:[#allocation100_spill] sm:$0xff]  ;;  %v9212_v56 = vld [vmem:[#allocation87_spill] sm:$0xff] }
0x1298   :  { %v4034_v48 = vadd.f32 %v9209_v57, %v3834_v9  ;;  %4230 = vperm.xlu1 %4584, %v4041_v13   ;;  %v3255_v52 = vmul.f32 %v8135_v53, %v3254_v16  ;;  %v8168_v38 = vmul.f32 %v7889_v49, %v3282_v4  ;;  %v3144_v31 = vmul.f32 %v8145_v59, %v8072_v3 }
0x1299   :  { %v9210_v44 = vperm.slane %v9202_v58, 3  ;;  %v3844_v19 = vmul.f32 %v9211_v5, %v3062_v51  ;;  %v3088_v26 = vmul.f32 %v7931_v24, %v3087_v25  ;;  %vm3050_vm11 = vweird.f32 %v7839_v15  ;;  %v9213_v51 = vld [vmem:[#allocation88_spill] sm:$0xff] }
0x129a   :  { %4209 = vperm.xlu2 %4583, %v4034_v48   ;;  %v2636_v32 = vmul.f32 %v9212_v56, %v5784_v40  ;;  %vm3189_vm7 = vweird.f32 %v7887_v61  ;;  %v3256_v49 = vmul.f32 0.5, %v3255_v52  ;;  %v2647_v62 = vmul.f32 %v2561_v8, %v5784_v40  ;;  %v8192_v61 = vpop.xlane.xlu0 %3767  ;;  %v9219_v52 = vld [vmem:[#allocation89_spill] sm:$0xff]  ;;  %v9221_v56 = vld [vmem:[#allocation103_spill] sm:$0xff] }
0x129b   :  { %v4054_v9 = vadd.f32 %v9210_v44, %v3854_v47  ;;  %4718 = vrsqrt.f32 %v8156_v34  ;;  %v3837_v25 = vmul.f32 %v9213_v51, %v2992_v33  ;;  %vm3191_vm12 = vmor %vm3189_vm7, %vm3190_vm0  ;;  %v3116_v46 = vmul.f32 0.5, %v3115_v18  ;;  %v9214_v33 = vld [vmem:[#allocation111_spill] sm:$0xff] }
0x129c   :  { %v2643_v21 = vmul.f32 %v8032_v7, %v5784_v40  ;;  %v8194_v47 = vpop.eup %4716  ;;  %vm3049_vm9 = vweird.f32 %v7728_v39  ;;  %v3192_v29 = vsel %vm3191_vm12, %v7983_v23, %v3188_v12  ;;  %v8198_v2 = vadd.f32 1e-05, %v2647_v62 }
0x129d   :  { %4269 = vperm.xlu0 %4582, %v4054_v9   ;;  %v3257_v14 = vsub.f32 1.5, %v3256_v49  ;;  %vm3260_vm13 = vweird.f32 %v8135_v53  ;;  %v3145_v50 = vmul.f32 %v8145_v59, %v3144_v31  ;;  %v3857_v13 = vmul.f32 %v9214_v33, %v3192_v29  ;;  %vm8268_vm6 = vmor %vm3049_vm9, %vm3050_vm11 }
0x129e   :  { %v9215_v7 = vperm.slane %v9177_v43, 1  ;;  %v3214_v18 = vmul.f32 %v8194_v47, %v8133_v55  ;;  %v8207_v30 = vadd.f32 1e-05, %v2636_v32  ;;  %4720 = vrsqrt.f32 %v8198_v2 }
0x129f   :  { %v3258_v16 = vmul.f32 %v8135_v53, %v3257_v14  ;;  %vm3259_vm8 = vweird.f32 %v8088_v1  ;;  %v9218_v57 = vperm.slane %v9135_v22, 2  ;;  %v8223_v4 = vmul.f32 0.5, %v8035_v11  ;;  %v3780_v11 = vpop.xlane.xlu2 %3779 }
0x12a0   :  { %v4044_v63 = vadd.f32 %v9215_v7, %v3844_v19  ;;  %v8225_v12 = vadd.f32 1e-05, %v2643_v21  ;;  %v3215_v54 = vmul.f32 %v8194_v47, %v3214_v18  ;;  %vm3261_vm14 = vmor %vm3259_vm8, %vm3260_vm13  ;;  %v2639_v31 = vmul.f32 %v9219_v52, %v5784_v40 }
0x12a1   :  { %v4037_v48 = vadd.f32 %v9218_v57, %v3837_v25  ;;  %v3092_v1 = vsel %vm8213_vm3, %v7931_v24, %v3088_v26  ;;  %v3117_v44 = vsub.f32 1.5, %v3116_v46  ;;  %v3262_v9 = vsel %vm3261_vm14, %v8135_v53, %v3258_v16  ;;  %v8236_v5 = vpop.eup %4718  ;;  %v9223_v53 = vld [vmem:[#allocation90_spill] sm:$0xff] }
0x12a2   :  { %4239 = vperm.xlu1 %4584, %v4044_v63   ;;  %v9220_v19 = vperm.slane %v9202_v58, 6  ;;  %v3847_v32 = vmul.f32 %v9221_v56, %v3092_v1  ;;  %v3216_v49 = vmul.f32 0.5, %v3215_v54  ;;  %v8241_v62 = vmul.f32 %v3780_v11, %v3262_v9  ;;  %v3777_v7 = vpop.xlane.xlu0 %3776  ;;  %v9232_v56 = vld [vmem:[#allocation86_spill] sm:$0xff] }
0x12a3   :  { %4218 = vperm.xlu2 %4583, %v4037_v48   ;;  %v3104_v51 = vmul.f32 %v8098_v41, %v7973_v0  ;;  %v9222_v24 = vsel %vm8012_vm10, %v7777_v60, %v7968_v42  ;;  %4722 = vrsqrt.f32 %v8207_v30  ;;  %v3146_v25 = vmul.f32 0.5, %v3145_v50 }
0x12a4   :  { %v4057_v8 = vadd.f32 %v9220_v19, %v3857_v13  ;;  %v3840_v26 = vmul.f32 %v9223_v53, %v9222_v24  ;;  %4724 = vrsqrt.f32 %v8225_v12  ;;  %v2646_v46 = vmul.f32 %v8107_v28, %v5784_v40  ;;  %v8256_v29 = vpop.eup %4720 }
0x12a5   :  { %v3217_v21 = vsub.f32 1.5, %v3216_v49  ;;  %vm3220_vm1 = vweird.f32 %v8194_v47  ;;  %v3174_v27 = vmul.f32 %v8236_v5, %v8156_v34  ;;  %v8260_v60 = vadd.f32 1e-05, %v2639_v31 }
0x12a6   :  { %4278 = vperm.xlu0 %4582, %v4057_v8   ;;  %v3118_v42 = vmul.f32 %v8048_v36, %v3117_v44  ;;  %vm3120_vm10 = vweird.f32 %v8048_v36  ;;  %v9226_v14 = vperm.slane %v9177_v43, 4  ;;  %vm3219_vm15 = vweird.f32 %v8133_v55  ;;  %v9229_v44 = vld [vmem:[#allocation93_spill] sm:$0xff] }
0x12a7   :  { %v3218_v33 = vmul.f32 %v8194_v47, %v3217_v21  ;;  %v3244_v13 = vmul.f32 %v8256_v29, %v8198_v2  ;;  %v3052_v39 = vsel %vm8268_vm6, %v7839_v15, %v8024_v20  ;;  %vm3080_vm4 = vweird.f32 %v7963_v10  ;;  %vm3221_vm5 = vmor %vm3219_vm15, %vm3220_vm1 }
0x12a8   :  { %v4047_v50 = vadd.f32 %v9226_v14, %v3847_v32  ;;  %vm3119_vm2 = vweird.f32 %v7940_v45  ;;  %v3147_v63 = vsub.f32 1.5, %v3146_v25  ;;  %v9227_v18 = vperm.slane %v9135_v22, 5 }
0x12a9   :  { %vm3121_vm0 = vmor %vm3119_vm2, %vm3120_vm10  ;;  %v8288_v23 = vadd.f32 1e-05, %v2646_v46  ;;  %v3222_v16 = vsel %vm3221_vm5, %v8194_v47, %v3218_v33  ;;  %v3245_v57 = vmul.f32 %v8256_v29, %v3244_v13  ;;  %v8292_v15 = vpop.eup %4722  ;;  %v3175_v20 = vmul.f32 %v8236_v5, %v3174_v27  ;;  %v9228_v47 = vld [vmem:[#allocation106_spill] sm:$0xff] }
0x12aa   :  { %v4040_v55 = vadd.f32 %v9227_v18, %v3840_v26  ;;  %4248 = vperm.xlu1 %4584, %v4047_v50   ;;  %v3077_v45 = vsub.f32 1.5, %v8223_v4  ;;  %v3122_v48 = vsel %vm3121_vm0, %v8048_v36, %v3118_v42  ;;  %v3860_v54 = vmul.f32 %v8192_v61, %v3222_v16  ;;  %v8298_v22 = vpop.eup %4724  ;;  %v9230_v4 = vld [vmem:[#allocation32_spill] sm:$0xff]  ;;  %v8326_v21 = vpop.permute.xlu0 %4161 }
0x12ab   :  { %v3105_v52 = vmul.f32 %v8098_v41, %v3104_v51  ;;  %4726 = vrsqrt.f32 %v8260_v60  ;;  %v3850_v31 = vmul.f32 %v9228_v47, %v3122_v48  ;;  %v3246_v1 = vmul.f32 0.5, %v3245_v57  ;;  %v9237_v57 = vld [vmem:[#allocation108_spill] sm:$0xff] }
0x12ac   :  { %4227 = vperm.xlu2 %4583, %v4040_v55   ;;  %v3843_v9 = vmul.f32 %v9229_v44, %v3052_v39  ;;  %v3148_v11 = vmul.f32 %v8145_v59, %v3147_v63  ;;  %vm3150_vm11 = vweird.f32 %v8145_v59  ;;  %v9231_v36 = vperm.slane %v9230_v4, 1 }
0x12ad   :  { %v3134_v61 = vmul.f32 %v8292_v15, %v8207_v30  ;;  %4728 = vrsqrt.f32 %v8288_v23  ;;  %v3247_v8 = vsub.f32 1.5, %v3246_v1  ;;  %vm3250_vm7 = vweird.f32 %v8256_v29 }
0x12ae   :  { %v4060_v19 = vadd.f32 %v9231_v36, %v3860_v54  ;;  %v2642_v32 = vmul.f32 %v9232_v56, %v5784_v40  ;;  %vm3149_vm12 = vweird.f32 %v8072_v3  ;;  %v3176_v49 = vmul.f32 0.5, %v3175_v20  ;;  %v9238_v54 = vld [vmem:[#allocation96_spill] sm:$0xff] }
0x12af   :  { %v3204_v51 = vmul.f32 %v8298_v22, %v8225_v12  ;;  %v3078_v24 = vmul.f32 %v7963_v10, %v3077_v45  ;;  %v9233_v53 = vperm.slane %v9177_v43, 7  ;;  %vm8320_vm9 = vmor %vm3149_vm12, %vm3150_vm11  ;;  %v3248_v46 = vmul.f32 %v8256_v29, %v3247_v8 }
0x12b0   :  { %4287 = vperm.xlu0 %4582, %v4060_v19   ;;  %vm3249_vm13 = vweird.f32 %v8198_v2  ;;  %vm3079_vm3 = vweird.f32 %v7867_v6  ;;  %v3106_v3 = vmul.f32 0.5, %v3105_v52  ;;  %v3935_v27 = vperm.slane %v9230_v4, 4  ;;  %v8341_v6 = vpop.xlane.xlu1 %3764 }
0x12b1   :  { %v4050_v26 = vadd.f32 %v9233_v53, %v3850_v31  ;;  %vm3251_vm8 = vmor %vm3249_vm13, %vm3250_vm7  ;;  %v8332_v42 = vpop.eup %4726  ;;  %v9236_v28 = vperm.slane %v9177_v43, 0  ;;  %v3135_v50 = vmul.f32 %v8292_v15, %v3134_v61  ;;  %v3152_v2 = vsel %vm8320_vm9, %v8145_v59, %v3148_v11  ;;  %v761_v31 = vpop.permute.xlu2 %760 }
0x12b2   :  { %v3252_v33 = vsel %vm3251_vm8, %v8256_v29, %v3248_v46  ;;  %vm3081_vm14 = vmor %vm3079_vm3, %vm3080_vm4  ;;  %v8345_v13 = vadd.f32 1e-05, %v2642_v32  ;;  %v3177_v39 = vsub.f32 1.5, %v3176_v49  ;;  %v3205_v63 = vmul.f32 %v8298_v22, %v3204_v51  ;;  %v8367_v11 = vpop.permute.xlu0 %4170 }
0x12b3   :  { %v4043_v14 = vadd.f32 %v9236_v28, %v3843_v9  ;;  %4257 = vperm.xlu1 %4584, %v4050_v26   ;;  %v3863_v18 = vmul.f32 %v3777_v7, %v3252_v33  ;;  %v8348_v55 = vpop.eup %4728  ;;  %v3082_v16 = vsel %vm3081_vm14, %v7963_v10, %v3078_v24  ;;  %v3853_v59 = vmul.f32 %v9237_v57, %v3152_v2  ;;  %v9241_v24 = vld [vmem:[#allocation110_spill] sm:$0xff] }
0x12b4   :  { %v3107_v29 = vsub.f32 1.5, %v3106_v3  ;;  %v3164_v20 = vmul.f32 %v8332_v42, %v8260_v60  ;;  %v2645_v45 = vmul.f32 %v7971_v35, %v5784_v40  ;;  %v3846_v52 = vmul.f32 %v9238_v54, %v3082_v16  ;;  %v9249_v54 = vld [vmem:[#allocation112_spill] sm:$0xff] }
0x12b5   :  { %4236 = vperm.xlu2 %4583, %v4043_v14   ;;  %v4063_v48 = vadd.f32 %v3935_v27, %v3863_v18  ;;  %v3136_v47 = vmul.f32 0.5, %v3135_v50  ;;  %v3925_v7 = vperm.slane %v9202_v58, 2  ;;  %vm3180_vm1 = vweird.f32 %v8236_v5 }
0x12b6   :  { %4730 = vrsqrt.f32 %v8345_v13  ;;  %v3178_v10 = vmul.f32 %v8236_v5, %v3177_v39  ;;  %v3206_v1 = vmul.f32 0.5, %v3205_v63  ;;  %v3234_v44 = vmul.f32 %v8348_v55, %v8288_v23 }
0x12b7   :  { %vm9239_vm10 = vcmask 261120   ;;  %v3918_v35 = vperm.slane %v9177_v43, 3  ;;  %vm3110_vm6 = vweird.f32 %v8098_v41  ;;  %v4053_v9 = vadd.f32 %v3925_v7, %v3853_v59  ;;  %v9247_v59 = vld [vmem:[#allocation19_spill] sm:$0xff] }
0x12b8   :  { %764 = vst.msk [vmem:[#allocation3 + $0x38] sm:$0xff] %vm9239_vm10, %v761_v31  ;;  %4296 = vperm.xlu0 %4582, %v4063_v48   ;;  %vm9240_vm15 = vmmov %vm9239_vm10  ;;  %v3108_v36 = vmul.f32 %v8098_v41, %v3107_v29  ;;  %v3165_v19 = vmul.f32 %v8332_v42, %v3164_v20  ;;  %vm3179_vm4 = vweird.f32 %v8156_v34  ;;  %v8372_v61 = vadd.f32 1e-05, %v2645_v45  ;;  %v8382_v53 = vpop.xlane.xlu1 %3773 }
0x12b9   :  { %765 = vst.msk [vmem:[#allocation11] sm:$0xff] %vm9240_vm15, %v761_v31  ;;  %v4046_v8 = vadd.f32 %v3918_v35, %v3846_v52  ;;  %v3137_v56 = vsub.f32 1.5, %v3136_v47  ;;  %vm3181_vm2 = vmor %vm3179_vm4, %vm3180_vm1  ;;  %vm3109_vm5 = vweird.f32 %v7973_v0  ;;  %v3235_v49 = vmul.f32 %v8348_v55, %v3234_v44  ;;  %v9242_v0 = vld [vmem:[#allocation99_spill] sm:$0xff]  ;;  %v4150_v28 = vpop.permute.xlu2 %4149 }
0x12ba   :  { %v3182_v32 = vsel %vm3181_vm2, %v8236_v5, %v3178_v10  ;;  %v3207_v51 = vsub.f32 1.5, %v3206_v1  ;;  %vm3111_vm0 = vmor %vm3109_vm5, %vm3110_vm6  ;;  %v3166_v46 = vmul.f32 0.5, %v3165_v19  ;;  %4732 = vrsqrt.f32 %v8372_v61  ;;  %v8410_v20 = vpop.permute.xlu0 %4179  ;;  %v9250_v10 = vld [vmem:[#allocation115_spill] sm:$0xff]  ;;  %4487 = dma.vmem_to_hbm [thread:$0]  %s4483_s0, 128, %s4485_s28, [#allocation7]  }
0x12bb   :  { %4266 = vperm.xlu1 %4584, %v4053_v9   ;;  %v3856_v34 = vmul.f32 %v9241_v24, %v3182_v32  ;;  %v3112_v25 = vsel %vm3111_vm0, %v8098_v41, %v3108_v36  ;;  %v3138_v3 = vmul.f32 %v8292_v15, %v3137_v56  ;;  %vm3140_vm11 = vweird.f32 %v8292_v15  ;;  %vm9243_vm12 = vmmov %vm9239_vm10 }
0x12bc   :  { %v8384_v26 = vpop.eup %4730  ;;  %v3849_v5 = vmul.f32 %v9242_v0, %v3112_v25  ;;  %v3928_v27 = vperm.slane %v9202_v58, 5  ;;  %v3236_v50 = vmul.f32 0.5, %v3235_v49  ;;  %v3208_v2 = vmul.f32 %v8298_v22, %v3207_v51  ;;  %vm9244_vm9 = vmmov %vm9239_vm10 }
0x12bd   :  { %4245 = vperm.xlu2 %4583, %v4046_v8   ;;  %vm3210_vm7 = vweird.f32 %v8298_v22  ;;  %v3921_v41 = vperm.slane %v9177_v43, 6  ;;  %v3194_v33 = vmul.f32 %v8384_v26, %v8345_v13  ;;  %vm3139_vm13 = vweird.f32 %v8207_v30  ;;  %v9248_v43 = vld [vmem:[#allocation114_spill] sm:$0xff] }
0x12be   :  { %v4056_v39 = vadd.f32 %v3928_v27, %v3856_v34  ;;  %vm8400_vm3 = vmor %vm3139_vm13, %vm3140_vm11  ;;  %v3167_v18 = vsub.f32 1.5, %v3166_v46  ;;  %vm3209_vm8 = vweird.f32 %v8225_v12  ;;  %v4332_v29 = vperm.slane %v9248_v43, %v9247_v59 }
0x12bf   :  { %v778_v14 = vld [vmem:[#allocation3 + $0x38] sm:$0xff]  ;;  %v4049_v16 = vadd.f32 %v3921_v41, %v3849_v5  ;;  %v3142_v57 = vsel %vm8400_vm3, %v8292_v15, %v3138_v3  ;;  %vm3211_vm14 = vmor %vm3209_vm8, %vm3210_vm7  ;;  %vm4395_vm1 = vcmask 1041409   ;;  %v3237_v48 = vsub.f32 1.5, %v3236_v50 }
0x12c0   :  { %4552 = vmatmul.msk.f32.gmra.mxu0 %vm9243_vm12, %v778_v14  ;;  %4560 = vmatmul.msk.f32.gmra.mxu1 %vm9244_vm9, %v778_v14  ;;  %v8412_v30 = vpop.eup %4732  ;;  %v3212_v45 = vsel %vm3211_vm14, %v8298_v22, %v3208_v2  ;;  %v3195_v12 = vmul.f32 %v8384_v26, %v3194_v33  ;;  %v4331_v52 = vperm.slane %v9249_v54, %v9247_v59  ;;  %v3931_v15 = vperm.slane %v9230_v4, 0  ;;  %v4153_v7 = vpop.permute.xlu1 %4152  ;;  %v9251_v22 = vld [vmem:[#allocation102_spill] sm:$0xff]  ;;  %v9254_v33 = vld [vmem:[#allocation105_spill] sm:$0xff] }
0x12c1   :  { %v3859_v47 = vmul.f32 %v8341_v6, %v3212_v45  ;;  %v3168_v31 = vmul.f32 %v8332_v42, %v3167_v18  ;;  %vm3170_vm10 = vweird.f32 %v8332_v42  ;;  %v4333_v1 = vperm.slane %v9250_v10, %v9247_v59  ;;  %v4156_v6 = vpop.permute.xlu2 %4155  ;;  %v9255_v54 = vld [vmem:[#allocation113_spill] sm:$0xff] }
0x12c2   :  { %v3852_v44 = vmul.f32 %v9251_v22, %v3142_v57  ;;  %v4396_v35 = vsel %vm4395_vm1, %v4332_v29, %v4331_v52  ;;  %v3224_v9 = vmul.f32 %v8412_v30, %v8372_v61  ;;  %vm4397_vm6 = vcmask 1042434   ;;  %v8451_v27 = vpop.permute.xlu0 %4188 }
0x12c3   :  { %4275 = vperm.xlu1 %4584, %v4056_v39   ;;  %v4334_v36 = vperm.slane %v4150_v28, %v9247_v59  ;;  %v3238_v19 = vmul.f32 %v8348_v55, %v3237_v48  ;;  %vm3240_vm15 = vweird.f32 %v8348_v55  ;;  %vm4399_vm4 = vcmask 1043459  }
0x12c4   :  { %v4335_v8 = vperm.slane %v4153_v7, %v9247_v59  ;;  %vm3169_vm2 = vweird.f32 %v8260_v60  ;;  %v4059_v56 = vadd.f32 %v3931_v15, %v3859_v47  ;;  %vm4401_vm5 = vcmask 1044484  }
0x12c5   :  { %4254 = vperm.xlu2 %4583, %v4049_v16   ;;  %v3924_v32 = vperm.slane %v9202_v58, 1  ;;  %vm8436_vm0 = vmor %vm3169_vm2, %vm3170_vm10  ;;  %v3196_v51 = vmul.f32 0.5, %v3195_v12  ;;  %vm3239_vm11 = vweird.f32 %v8288_v23  ;;  %v4398_v24 = vsel %vm4397_vm6, %v4333_v1, %v4396_v35 }
0x12c6   :  { %v3172_v34 = vsel %vm8436_vm0, %v8332_v42, %v3168_v31  ;;  %vm3241_vm7 = vmor %vm3239_vm11, %vm3240_vm15  ;;  %v4400_v60 = vsel %vm4399_vm4, %v4334_v36, %v4398_v24  ;;  %v4336_v25 = vperm.slane %v4156_v6, %v9247_v59  ;;  %v3225_v0 = vmul.f32 %v8412_v30, %v3224_v9 }
0x12c7   :  { %v4052_v46 = vadd.f32 %v3924_v32, %v3852_v44  ;;  %v3242_v5 = vsel %vm3241_vm7, %v8348_v55, %v3238_v19  ;;  %v4402_v3 = vsel %vm4401_vm5, %v4335_v8, %v4400_v60  ;;  %vm4403_vm12 = vcmask 1045509  }
0x12c8   :  { %v3862_v23 = vmul.f32 %v8382_v53, %v3242_v5  ;;  %vm4405_vm9 = vcmask 1046534   ;;  %v4159_v42 = vpop.permute.xlu1 %4158  ;;  %v3197_v28 = vsub.f32 1.5, %v3196_v51  ;;  %v3934_v14 = vperm.slane %v9230_v4, 3 }
0x12c9   :  { %vm4407_vm13 = vcmask 1047559   ;;  %v4337_v50 = vperm.slane %v4159_v42, %v9247_v59  ;;  %v4338_v2 = vperm.slane %v8326_v21, %v9247_v59  ;;  %v4404_v55 = vsel %vm4403_vm12, %v4336_v25, %v4402_v3  ;;  %v4165_v41 = vpop.permute.xlu2 %4164 }
0x12ca   :  { %vm4466_vm3 = vcmask 64512   ;;  %v3855_v53 = vmul.f32 %v9254_v33, %v3172_v34  ;;  %v3226_v39 = vmul.f32 0.5, %v3225_v0  ;;  %v4062_v18 = vadd.f32 %v3934_v14, %v3862_v23  ;;  %v4198_v15 = vpop.permute.xlu0 %4197 }
0x12cb   :  { %4284 = vperm.xlu1 %4584, %v4059_v56   ;;  %v4406_v63 = vsel %vm4405_vm9, %v4337_v50, %v4404_v55  ;;  %v3927_v57 = vperm.slane %v9202_v58, 4  ;;  %v3198_v43 = vmul.f32 %v8384_v26, %v3197_v28  ;;  %vm3200_vm8 = vweird.f32 %v8384_v26 }
0x12cc   :  { %v4408_v16 = vsel %vm4407_vm13, %v4338_v2, %v4406_v63  ;;  %vm3199_vm14 = vweird.f32 %v8345_v13  ;;  %v3227_v29 = vsub.f32 1.5, %v3226_v39  ;;  %vm3230_vm15 = vweird.f32 %v8412_v30 }
0x12cd   :  { %4263 = vperm.xlu2 %4583, %v4052_v46   ;;  %4467 = vst.msk [vmem:[%s8823_s12] sm:$0xff] %vm4466_vm3, %v4408_v16  ;;  %v4055_v21 = vadd.f32 %v3927_v57, %v3855_v53  ;;  %vm3201_vm10 = vmor %vm3199_vm14, %vm3200_vm8  ;;  %v4339_v31 = vperm.slane %v4165_v41, %v9247_v59  ;;  %v3930_v13 = vperm.slane %v9202_v58, 7  ;;  %vm3229_vm2 = vweird.f32 %v8372_v61 }
0x12ce   :  { %v3202_v48 = vsel %vm3201_vm10, %v8384_v26, %v3198_v43  ;;  %v3228_v7 = vmul.f32 %v8412_v30, %v3227_v29  ;;  %vm3231_vm0 = vmor %vm3229_vm2, %vm3230_vm15  ;;  %v4341_v26 = vperm.slane %v8367_v11, %v9247_v59  ;;  %v3933_v19 = vperm.slane %v9230_v4, 2 }
0x12cf   :  { %v3858_v52 = vmul.f32 %v9255_v54, %v3202_v48  ;;  %v4347_v0 = vperm.slane %v8451_v27, %v9247_v59  ;;  %v4350_v28 = vperm.slane %v4198_v15, %v9247_v59  ;;  %vm9258_vm11 = vcmask 1047556  }
0x12d0   :  { %v4168_v45 = vpop.permute.xlu1 %4167  ;;  %v3232_v22 = vsel %vm3231_vm0, %v8412_v30, %v3228_v7  ;;  %v4344_v30 = vperm.slane %v8410_v20, %v9247_v59  ;;  %vm9260_vm7 = vmmov %vm9258_vm11 }
0x12d1   :  { %v4340_v12 = vperm.slane %v4168_v45, %v9247_v59  ;;  %v4174_v47 = vpop.permute.xlu2 %4173  ;;  %v4058_v1 = vadd.f32 %v3930_v13, %v3858_v52  ;;  %v3861_v58 = vmul.f32 %v8165_v17, %v3232_v22  ;;  %vm9261_vm8 = vmmov %vm9260_vm7 }
0x12d2   :  { %v4342_v44 = vperm.slane %v4174_v47, %v9247_v59  ;;  %v4207_v8 = vpop.permute.xlu0 %4206  ;;  %vm9262_vm14 = vmmov %vm9260_vm7 }
0x12d3   :  { %4293 = vperm.xlu1 %4584, %v4062_v18   ;;  %v4409_v10 = vsel %vm4395_vm1, %v4340_v12, %v4339_v31  ;;  %v4061_v56 = vadd.f32 %v3933_v19, %v3861_v58  ;;  %v4353_v33 = vperm.slane %v4207_v8, %v9247_v59  ;;  %vm9263_vm10 = vmmov %vm9260_vm7 }
0x12d4   :  { %v4410_v35 = vsel %vm4397_vm6, %v4341_v26, %v4409_v10  ;;  %vm9264_vm15 = vmmov %vm9260_vm7 }
0x12d5   :  { %4272 = vperm.xlu2 %4583, %v4055_v21   ;;  %v4411_v6 = vsel %vm4399_vm4, %v4342_v44, %v4410_v35  ;;  %vm9265_vm2 = vmmov %vm9260_vm7 }
0x12d6   :  { %vm9266_vm0 = vmmov %vm9265_vm2 }
0x12d8   :  { %v4177_v9 = vpop.permute.xlu1 %4176 }
0x12d9   :  { %v4343_v36 = vperm.slane %v4177_v9, %v9247_v59  ;;  %v4183_v61 = vpop.permute.xlu2 %4182 }
0x12da   :  { %v4345_v32 = vperm.slane %v4183_v61, %v9247_v59  ;;  %v4216_v20 = vpop.permute.xlu0 %4215 }
0x12db   :  { %v4412_v11 = vsel %vm4401_vm5, %v4343_v36, %v4411_v6  ;;  %v4356_v45 = vperm.slane %v4216_v20, %v9247_v59 }
0x12dc   :  { %v4413_v49 = vsel %vm4403_vm12, %v4344_v30, %v4412_v11 }
0x12dd   :  { %4281 = vperm.xlu2 %4583, %v4058_v1   ;;  %v4414_v24 = vsel %vm4405_vm9, %v4345_v32, %v4413_v49 }
0x12e0   :  { %v4186_v51 = vpop.permute.xlu1 %4185 }
0x12e1   :  { %v4346_v17 = vperm.slane %v4186_v51, %v9247_v59 }
0x12e2   :  { %v4192_v34 = vpop.permute.xlu2 %4191  ;;  %v4225_v2 = vpop.permute.xlu0 %4224 }
0x12e3   :  { %v4415_v60 = vsel %vm4407_vm13, %v4346_v17, %v4414_v24  ;;  %v4348_v25 = vperm.slane %v4192_v34, %v9247_v59  ;;  %v4359_v13 = vperm.slane %v4225_v2, %v9247_v59 }
0x12e4   :  { %4468 = vst.msk [vmem:[%s8823_s12 + $0x8] sm:$0xff] %vm4466_vm3, %v4415_v60 }
0x12e5   :  { %4290 = vperm.xlu2 %4583, %v4061_v56   ;;  %v4416_v23 = vsel %vm4395_vm1, %v4348_v25, %v4347_v0 }
0x12e8   :  { %v4195_v46 = vpop.permute.xlu1 %4194 }
0x12e9   :  { %v4349_v5 = vperm.slane %v4195_v46, %v9247_v59 }
0x12ea   :  { %v4234_v43 = vpop.permute.xlu0 %4233 }
0x12eb   :  { %v4201_v3 = vpop.permute.xlu2 %4200  ;;  %v4417_v42 = vsel %vm4397_vm6, %v4349_v5, %v4416_v23  ;;  %v4362_v44 = vperm.slane %v4234_v43, %v9247_v59 }
0x12ec   :  { %v4351_v14 = vperm.slane %v4201_v3, %v9247_v59  ;;  %v4418_v50 = vsel %vm4399_vm4, %v4350_v28, %v4417_v42 }
0x12ee   :  { %v4419_v27 = vsel %vm4401_vm5, %v4351_v14, %v4418_v50 }
0x12f0   :  { %v4204_v55 = vpop.permute.xlu1 %4203 }
0x12f1   :  { %v4352_v41 = vperm.slane %v4204_v55, %v9247_v59 }
0x12f3   :  { %v4420_v39 = vsel %vm4403_vm12, %v4352_v41, %v4419_v27 }
0x12f4   :  { %v4210_v53 = vpop.permute.xlu2 %4209  ;;  %v4421_v18 = vsel %vm4405_vm9, %v4353_v33, %v4420_v39  ;;  %v4243_v7 = vpop.permute.xlu0 %4242 }
0x12f5   :  { %v4354_v63 = vperm.slane %v4210_v53, %v9247_v59  ;;  %v4365_v56 = vperm.slane %v4243_v7, %v9247_v59 }
0x12f7   :  { %v4422_v16 = vsel %vm4407_vm13, %v4354_v63, %v4421_v18 }
0x12f8   :  { %4469 = vst.msk [vmem:[%s8823_s12 + $0x10] sm:$0xff] %vm4466_vm3, %v4422_v16  ;;  %v4213_v57 = vpop.permute.xlu1 %4212 }
0x12f9   :  { %v4355_v29 = vperm.slane %v4213_v57, %v9247_v59 }
0x12fb   :  { %v4423_v12 = vsel %vm4395_vm1, %v4356_v45, %v4355_v29 }
0x12fc   :  { %v4252_v61 = vpop.permute.xlu0 %4251 }
0x12fd   :  { %v4219_v21 = vpop.permute.xlu2 %4218  ;;  %v4368_v25 = vperm.slane %v4252_v61, %v9247_v59 }
0x12fe   :  { %v4357_v48 = vperm.slane %v4219_v21, %v9247_v59 }
0x1300   :  { %v4222_v54 = vpop.permute.xlu1 %4221  ;;  %v4424_v47 = vsel %vm4397_vm6, %v4357_v48, %v4423_v12 }
0x1301   :  { %v4358_v52 = vperm.slane %v4222_v54, %v9247_v59 }
0x1303   :  { %v4425_v31 = vsel %vm4399_vm4, %v4358_v52, %v4424_v47 }
0x1304   :  { %v4426_v1 = vsel %vm4401_vm5, %v4359_v13, %v4425_v31 }
0x1305   :  { %v4261_v49 = vpop.permute.xlu0 %4260 }
0x1306   :  { %v4228_v15 = vpop.permute.xlu2 %4227  ;;  %v4371_v55 = vperm.slane %v4261_v49, %v9247_v59  ;;  %v9259_v49 = vld [vmem:[#allocation35_spill] sm:$0xff] }
0x1307   :  { %v4360_v10 = vperm.slane %v4228_v15, %v9247_v59 }
0x1309   :  { %v4427_v35 = vsel %vm4403_vm12, %v4360_v10, %v4426_v1  ;;  %v9256_v10 = vld [vmem:[#allocation24_spill] sm:$0xff] }
0x130a   :  { %v4231_v26 = vpop.permute.xlu1 %4230 }
0x130b   :  { %v4361_v22 = vperm.slane %v4231_v26, %v9247_v59 }
0x130d   :  { %v4428_v36 = vsel %vm4405_vm9, %v4361_v22, %v4427_v35 }
0x130e   :  { %v4429_v58 = vsel %vm4407_vm13, %v4362_v44, %v4428_v36  ;;  %v9257_v44 = vld [vmem:[#allocation25_spill] sm:$0xff] }
0x130f   :  { %v4237_v9 = vpop.permute.xlu2 %4236  ;;  %4470 = vst.msk [vmem:[%s8823_s12 + $0x18] sm:$0xff] %vm4466_vm3, %v4429_v58  ;;  %v4270_v23 = vpop.permute.xlu0 %4269 }
0x1310   :  { %v4363_v11 = vperm.slane %v4237_v9, %v9247_v59  ;;  %v4374_v63 = vperm.slane %v4270_v23, %v9247_v59 }
0x1314   :  { %v4240_v6 = vpop.permute.xlu1 %4239 }
0x1315   :  { %v4364_v19 = vperm.slane %v4240_v6, %v9247_v59 }
0x1317   :  { %v4246_v8 = vpop.permute.xlu2 %4245  ;;  %v4430_v30 = vsel %vm4395_vm1, %v4364_v19, %v4363_v11 }
0x1318   :  { %v4366_v32 = vperm.slane %v4246_v8, %v9247_v59  ;;  %v4431_v51 = vsel %vm4397_vm6, %v4365_v56, %v4430_v30  ;;  %v4279_v53 = vpop.permute.xlu0 %4278 }
0x1319   :  { %v4377_v21 = vperm.slane %v4279_v53, %v9247_v59 }
0x131a   :  { %v4432_v60 = vsel %vm4399_vm4, %v4366_v32, %v4431_v51 }
0x131c   :  { %v4249_v17 = vpop.permute.xlu1 %4248 }
0x131d   :  { %v4367_v24 = vperm.slane %v4249_v17, %v9247_v59 }
0x131f   :  { %v4255_v34 = vpop.permute.xlu2 %4254  ;;  %v4433_v20 = vsel %vm4401_vm5, %v4367_v24, %v4432_v60 }
0x1320   :  { %v4369_v46 = vperm.slane %v4255_v34, %v9247_v59  ;;  %v4434_v0 = vsel %vm4403_vm12, %v4368_v25, %v4433_v20 }
0x1322   :  { %v4435_v42 = vsel %vm4405_vm9, %v4369_v46, %v4434_v0  ;;  %v4288_v15 = vpop.permute.xlu0 %4287 }
0x1323   :  { %v4380_v31 = vperm.slane %v4288_v15, %v9247_v59 }
0x1325   :  { %v4258_v5 = vpop.permute.xlu1 %4257 }
0x1326   :  { %v4370_v3 = vperm.slane %v4258_v5, %v9247_v59 }
0x1327   :  { %v4264_v28 = vpop.permute.xlu2 %4263 }
0x1328   :  { %v4436_v14 = vsel %vm4407_vm13, %v4370_v3, %v4435_v42  ;;  %v4372_v50 = vperm.slane %v4264_v28, %v9247_v59 }
0x1329   :  { %4471 = vst.msk [vmem:[%s8823_s12 + $0x20] sm:$0xff] %vm4466_vm3, %v4436_v14 }
0x132a   :  { %v4437_v27 = vsel %vm4395_vm1, %v4372_v50, %v4371_v55  ;;  %v8591_v36 = vpop.permute.xlu0 %4296 }
0x132d   :  { %v4267_v2 = vpop.permute.xlu1 %4266 }
0x132e   :  { %v4373_v41 = vperm.slane %v4267_v2, %v9247_v59 }
0x132f   :  { %v4273_v33 = vpop.permute.xlu2 %4272 }
0x1330   :  { %v4438_v39 = vsel %vm4397_vm6, %v4373_v41, %v4437_v27  ;;  %v4375_v18 = vperm.slane %v4273_v33, %v9247_v59 }
0x1331   :  { %v4439_v16 = vsel %vm4399_vm4, %v4374_v63, %v4438_v39  ;;  %v9268_v63 = vld [vmem:[#allocation36_spill] sm:$0xff] }
0x1332   :  { %v4440_v29 = vsel %vm4401_vm5, %v4375_v18, %v4439_v16 }
0x1335   :  { %v4276_v57 = vpop.permute.xlu1 %4275 }
0x1336   :  { %v4376_v43 = vperm.slane %v4276_v57, %v9247_v59 }
0x1337   :  { %v4282_v45 = vpop.permute.xlu2 %4281 }
0x1338   :  { %v4441_v48 = vsel %vm4403_vm12, %v4376_v43, %v4440_v29  ;;  %v4378_v12 = vperm.slane %v4282_v45, %v9247_v59 }
0x1339   :  { %v4442_v54 = vsel %vm4405_vm9, %v4377_v21, %v4441_v48 }
0x133a   :  { %v4443_v52 = vsel %vm4407_vm13, %v4378_v12, %v4442_v54 }
0x133b   :  { %4472 = vst.msk [vmem:[%s8823_s12 + $0x28] sm:$0xff] %vm4466_vm3, %v4443_v52 }
0x133d   :  { %v4285_v47 = vpop.permute.xlu1 %4284  ;;  %v911_v7 = vpop.f32.mrf.mxu0 }
0x133e   :  { %v4379_v13 = vperm.slane %v4285_v47, %v9247_v59  ;;  %v912_v1 = vadd.f32 %v911_v7, %v9256_v10  ;;  %v952_v22 = vpop.f32.mrf.mxu1 }
0x133f   :  { %v953_v35 = vadd.f32 %v952_v22, %v9257_v44  ;;  %v8589_v9 = vpop.permute.xlu2 %4290 }
0x1340   :  { %v8580_v26 = vsel %vm4395_vm1, %v4380_v31, %v4379_v13  ;;  %1025 = vrot.lane.b32.xlu1 %v912_v1, %s4896_s3  ;;  %1001 = vrot.lane.b32.xlu0 %v912_v1, %s4895_s2  ;;  %v1902_v6 = vrot.slane %v912_v1, 4 }
0x1341   :  { %977 = vrot.lane.b32.xlu2 %v912_v1, %s4897_s4  ;;  %v1926_v3 = vrot.slane %v953_v35, 4 }
0x1345   :  { %v8593_v58 = vpop.permute.xlu1 %4293 }
0x1348   :  { %1105 = vrot.lane.b32.xlu1 %v953_v35, %s4896_s3  ;;  %1081 = vrot.lane.b32.xlu0 %v953_v35, %s4895_s2 }
0x1349   :  { %1057 = vrot.lane.b32.xlu2 %v953_v35, %s4897_s4 }
0x139b   :  { %v978_v61 = vpop.permute.xlu2 %977 }
0x139c   :  { %v1914_v11 = vrot.slane %v978_v61, 4 }
0x13a3   :  { %v1058_v34 = vpop.permute.xlu2 %1057 }
0x13a4   :  { %v1938_v0 = vrot.slane %v1058_v34, 4 }
0x13b2   :  { %v1026_v19 = vpop.permute.xlu1 %1025  ;;  %v1002_v8 = vpop.permute.xlu0 %1001 }
0x13b3   :  { %v1912_v30 = vrot.slane %v1026_v19, 4  ;;  %v1900_v56 = vrot.slane %v1002_v8, 4  ;;  %v1903_v32 = vsel %vm9258_vm11, %v1002_v8, %v1902_v6  ;;  %v1915_v24 = vsel %vm9261_vm8, %v1026_v19, %v1914_v11  ;;  %vm9267_vm11 = vmmov %vm9266_vm0 }
0x13b4   :  { %v1911_v51 = vperm.slane %v1903_v32, %v9259_v49  ;;  %v1923_v46 = vperm.slane %v1915_v24, %v9259_v49  ;;  %vm9270_vm8 = vmmov %vm9266_vm0 }
0x13b5   :  { %v1913_v17 = vsel %vm9260_vm7, %v1912_v30, %v978_v61  ;;  %v1901_v20 = vsel %vm9262_vm14, %v1900_v56, %v912_v1  ;;  %vm9269_vm7 = vmmov %vm9266_vm0 }
0x13b6   :  { %v1919_v60 = vperm.slane %v1913_v17, %v9259_v49  ;;  %v1962_v25 = vrot.slane %v1911_v51, 4  ;;  %v1907_v5 = vperm.slane %v1901_v20, %v9259_v49  ;;  %v1960_v45 = vrot.slane %v1923_v46, 4  ;;  %vm9271_vm14 = vmmov %vm9266_vm0 }
0x13b8   :  { %v1948_v23 = vrot.slane %v1919_v60, 4  ;;  %v1963_v42 = vsel %vm9263_vm10, %v1923_v46, %v1962_v25  ;;  %v1950_v27 = vrot.slane %v1907_v5, 4  ;;  %vm9272_vm10 = vmmov %vm9266_vm0  ;;  %v1961_v61 = vsel %vm9266_vm0, %v1960_v45, %v1911_v51 }
0x13b9   :  { %v1971_v18 = vperm.slane %v1963_v42, %v9268_v63  ;;  %v1967_v32 = vperm.slane %v1961_v61, %v9268_v63 }
0x13ba   :  { %v1106_v28 = vpop.permute.xlu1 %1105  ;;  %v1082_v14 = vpop.permute.xlu0 %1081  ;;  %v1949_v29 = vsel %vm9269_vm7, %v1948_v23, %v1907_v5  ;;  %v1951_v47 = vsel %vm9271_vm14, %v1919_v60, %v1950_v27  ;;  %vm9276_vm7 = vmmov %vm9266_vm0 }
0x13bb   :  { %v1936_v50 = vrot.slane %v1106_v28, 4  ;;  %v1939_v2 = vsel %vm9264_vm15, %v1106_v28, %v1938_v0  ;;  %v1924_v55 = vrot.slane %v1082_v14, 4  ;;  %v1927_v41 = vsel %vm9265_vm2, %v1082_v14, %v1926_v3  ;;  %vm9273_vm15 = vmmov %vm9266_vm0 }
0x13bc   :  { %v1935_v33 = vperm.slane %v1927_v41, %v9259_v49  ;;  %v1947_v57 = vperm.slane %v1939_v2, %v9259_v49  ;;  %v2010_v15 = vrot.slane %v1971_v18, 4  ;;  %v1955_v13 = vperm.slane %v1949_v29, %v9268_v63  ;;  %vm9274_vm2 = vmmov %vm9266_vm0 }
0x13bd   :  { %v1937_v53 = vsel %vm9266_vm0, %v1936_v50, %v1058_v34  ;;  %v1925_v39 = vsel %vm9267_vm11, %v1924_v55, %v953_v35  ;;  %vm9275_vm11 = vcmask 261120   ;;  %v1959_v8 = vperm.slane %v1951_v47, %v9268_v63 }
0x13be   :  { %v1943_v16 = vperm.slane %v1937_v53, %v9259_v49  ;;  %v1931_v43 = vperm.slane %v1925_v39, %v9259_v49  ;;  %v1986_v21 = vrot.slane %v1935_v33, 4  ;;  %v1984_v7 = vrot.slane %v1947_v57, 4  ;;  %vm9278_vm14 = vmmov %vm9275_vm11  ;;  %v4757_v53 = vld [vmem:[#allocation4 + $0x38] sm:$0xff]  ;;  %v4758_v39 = vld [vmem:[%s8821_s10] ss:$0 sm:$0xff] }
0x13bf   :  { %v1998_v17 = vrot.slane %v1955_v13, 4  ;;  %v2006_v25 = vrot.slane %v1967_v32, 4  ;;  %v2002_v28 = vrot.slane %v1959_v8, 4  ;;  %v3936_v55 = vperm.slane %v9230_v4, 5 }
0x13c0   :  { %v1972_v48 = vrot.slane %v1943_v16, 4  ;;  %v1974_v12 = vrot.slane %v1931_v43, 4  ;;  %v1987_v54 = vsel %vm9270_vm8, %v1947_v57, %v1986_v21  ;;  %vm9277_vm8 = vmmov %vm9266_vm0 }
0x13c1   :  { %v1995_v52 = vperm.slane %v1987_v54, %v9268_v63  ;;  %v1985_v30 = vsel %vm9277_vm8, %v1984_v7, %v1935_v33  ;;  %vm9283_vm8 = vmmov %vm9275_vm11  ;;  %v4064_v41 = vadd.f32 %v3936_v55, %v8241_v62  ;;  %v3937_v33 = vperm.slane %v9230_v4, 6 }
0x13c2   :  { %v1975_v31 = vsel %vm9272_vm10, %v1943_v16, %v1974_v12  ;;  %v1973_v10 = vsel %vm9273_vm15, %v1972_v48, %v1931_v43  ;;  %vm9279_vm10 = vmmov %vm9266_vm0  ;;  %v1991_v60 = vperm.slane %v1985_v30, %v9268_v63 }
0x13c3   :  { %v2011_v1 = vsel %vm9274_vm2, %v1995_v52, %v2010_v15  ;;  %v2008_v22 = vrot.slane %v1995_v52, 4  ;;  %v1983_v44 = vperm.slane %v1975_v31, %v9268_v63  ;;  %v1979_v35 = vperm.slane %v1973_v10, %v9268_v63  ;;  %vm9280_vm15 = vmmov %vm9275_vm11 }
0x13c4   :  { %v2201_v6 = vsel %vm9275_vm11, %v2011_v1, 0.0  ;;  %vm9281_vm2 = vmmov %vm9266_vm0  ;;  %v2004_v5 = vrot.slane %v1991_v60, 4  ;;  %v4065_v27 = vadd.f32 %v3937_v33, %v8160_v37  ;;  %v8659_v63 = vmul.f32 %v4758_v39, %v4757_v53 }
0x13c5   :  { %2202 = vadd.xlane.f32.xlu0 %v2201_v6  ;;  %v2009_v19 = vsel %vm9276_vm7, %v2008_v22, %v1971_v18  ;;  %v2000_v11 = vrot.slane %v1983_v44, 4  ;;  %v1996_v24 = vrot.slane %v1979_v35, 4  ;;  %v8633_v34 = vsel %vm9281_vm2, %v1979_v35, %v1998_v17  ;;  %vm9282_vm7 = vmmov %vm9266_vm0 }
0x13c6   :  { %v2198_v56 = vsel %vm9278_vm14, %v2009_v19, 0.0  ;;  %v2183_v46 = vsel %vm9275_vm11, %v8633_v34, 0.0  ;;  %v2007_v0 = vsel %vm9282_vm7, %v1991_v60, %v2006_v25  ;;  %vm9284_vm14 = vmmov %vm9283_vm8  ;;  %v3426_v18 = vrot.slane %v8659_v63, 7 }
0x13c7   :  { %2199 = vadd.xlane.f32.xlu1 %v2198_v56  ;;  %v2001_v49 = vsel %vm9279_vm10, %v2000_v11, %v1959_v8  ;;  %v1997_v20 = vsel %vm9266_vm0, %v1996_v24, %v1955_v13  ;;  %v2195_v23 = vsel %vm9284_vm14, %v2007_v0, 0.0  ;;  %vm9285_vm10 = vmmov %vm9266_vm0  ;;  %v3421_v62 = vrot.slane %v8659_v63, 2 }
0x13c8   :  { %v2186_v51 = vsel %vm9280_vm15, %v2001_v49, 0.0  ;;  %v2180_v3 = vsel %vm9283_vm8, %v1997_v20, 0.0  ;;  %v8643_v42 = vsel %vm9285_vm10, %v2004_v5, %v1967_v32  ;;  %vm9286_vm15 = vmmov %vm9266_vm0  ;;  %v3490_v37 = vperm.slane %v3426_v18, 0 }
0x13c9   :  { %2187 = vadd.xlane.f32.xlu2 %v2186_v51  ;;  %v8646_v14 = vsel %vm9286_vm15, %v1983_v44, %v2002_v28  ;;  %vm9287_vm2 = vmmov %vm9283_vm8  ;;  %v3425_v48 = vrot.slane %v8659_v63, 6  ;;  %v3485_v47 = vperm.slane %v3421_v62, 0 }
0x13ca   :  { %v2192_v50 = vsel %vm9287_vm2, %v8643_v42, 0.0  ;;  %vm9288_vm0 = vmmov %vm9287_vm2 }
0x13cb   :  { %v2189_v2 = vsel %vm9288_vm0, %v8646_v14, 0.0  ;;  %vm9289_vm11 = vmmov %vm9288_vm0  ;;  %v3489_v22 = vperm.slane %v3425_v48, 0 }
0x13cc   :  { %vm9290_vm7 = vmmov %vm9288_vm0 }
0x13cd   :  { %2184 = vadd.xlane.f32.xlu0 %v2183_v46  ;;  %vm9291_vm8 = vmmov %vm9288_vm0 }
0x13ce   :  { %vm9292_vm14 = vmmov %vm9288_vm0 }
0x13cf   :  { %2181 = vadd.xlane.f32.xlu1 %v2180_v3  ;;  %vm9293_vm10 = vmmov %vm9288_vm0 }
0x13d0   :  { %vm9294_vm15 = vmmov %vm9288_vm0 }
0x13d1   :  { %2196 = vadd.xlane.f32.xlu2 %v2195_v23  ;;  %vm9295_vm2 = vmmov %vm9288_vm0 }
0x13d5   :  { %2193 = vadd.xlane.f32.xlu0 %v2192_v50 }
0x13d7   :  { %2190 = vadd.xlane.f32.xlu1 %v2189_v2 }
0x13e9   :  { %4299 = vperm.xlu2 %4583, %v4064_v41  }
0x13f0   :  { %4302 = vperm.xlu1 %4584, %v4065_v27  }
0x1438   :  { %v2203_v16 = vpop.xlane.xlu0 %2202 }
0x1439   :  { %v2274_v57 = vmul.f32 %v5784_v40, %v2203_v16 }
0x143a   :  { %v2200_v43 = vpop.xlane.xlu1 %2199 }
0x143b   :  { %v2338_v21 = vsub.f32 %v2011_v1, %v2274_v57  ;;  %v2273_v29 = vmul.f32 %v5784_v40, %v2200_v43  ;;  %v3423_v43 = vrot.slane %v8659_v63, 4 }
0x143c   :  { %v2188_v45 = vpop.xlane.xlu2 %2187 }
0x143d   :  { %v2337_v12 = vsub.f32 %v2009_v19, %v2273_v29  ;;  %v2269_v54 = vmul.f32 %v5784_v40, %v2188_v45  ;;  %v2402_v52 = vmul.f32 %v2338_v21, %v2338_v21  ;;  %v3618_v15 = vmul.f32 %v3490_v37, %v2338_v21 }
0x143e   :  { %v3424_v19 = vrot.slane %v8659_v63, 5  ;;  %v3483_v21 = vperm.slane %v8659_v63, 0  ;;  %v3422_v45 = vrot.slane %v8659_v63, 3 }
0x143f   :  { %v2333_v7 = vsub.f32 %v2001_v49, %v2269_v54  ;;  %v2592_v31 = vsel %vm9289_vm11, %v2402_v52, 0.0  ;;  %v3808_v13 = vsel %vm9290_vm7, %v3618_v15, 0.0  ;;  %v2401_v10 = vmul.f32 %v2337_v12, %v2337_v12  ;;  %vm9296_vm11 = vmmov %vm9288_vm0 }
0x1440   :  { %2593 = vadd.xlane.f32.xlu2 %v2592_v31  ;;  %v2185_v1 = vpop.xlane.xlu0 %2184  ;;  %3809 = vadd.xlane.f32.xlu1 %v3808_v13  ;;  %v3617_v6 = vmul.f32 %v3489_v22, %v2337_v12  ;;  %v3488_v24 = vperm.slane %v3424_v19, 0  ;;  %vm9297_vm7 = vmmov %vm9288_vm0  ;;  %v3486_v54 = vperm.slane %v3422_v45, 0  ;;  %v3938_v52 = vperm.slane %v9230_v4, 7 }
0x1441   :  { %v2589_v44 = vsel %vm9291_vm8, %v2401_v10, 0.0  ;;  %v3613_v35 = vmul.f32 %v3485_v47, %v2333_v7  ;;  %v2268_v8 = vmul.f32 %v5784_v40, %v2185_v1  ;;  %v2397_v30 = vmul.f32 %v2333_v7, %v2333_v7  ;;  %vm9298_vm8 = vmmov %vm9288_vm0 }
0x1442   :  { %2590 = vadd.xlane.f32.xlu0 %v2589_v44  ;;  %v2182_v61 = vpop.xlane.xlu1 %2181  ;;  %v3805_v17 = vsel %vm9292_vm14, %v3617_v6, 0.0  ;;  %vm9299_vm14 = vmmov %vm9288_vm0  ;;  %v4066_v47 = vadd.f32 %v3938_v52, %v8168_v38 }
0x1443   :  { %v2267_v11 = vmul.f32 %v5784_v40, %v2182_v61  ;;  %v2332_v51 = vsub.f32 %v8633_v34, %v2268_v8  ;;  %v2577_v25 = vsel %vm9293_vm10, %v2397_v30, 0.0  ;;  %vm9300_vm10 = vmmov %vm9288_vm0 }
0x1444   :  { %v2197_v56 = vpop.xlane.xlu2 %2196 }
0x1445   :  { %v2331_v32 = vsub.f32 %v1997_v20, %v2267_v11  ;;  %v2272_v49 = vmul.f32 %v5784_v40, %v2197_v56  ;;  %v2396_v2 = vmul.f32 %v2332_v51, %v2332_v51 }
0x1447   :  { %v2336_v60 = vsub.f32 %v2007_v0, %v2272_v49  ;;  %v2395_v46 = vmul.f32 %v2331_v32, %v2331_v32  ;;  %v3420_v0 = vrot.slane %v8659_v63, 1  ;;  %v2574_v33 = vsel %vm9295_vm2, %v2396_v2, 0.0  ;;  %vm9302_vm2 = vmmov %vm9288_vm0 }
0x1448   :  { %3806 = vadd.xlane.f32.xlu2 %v3805_v17  ;;  %v2194_v5 = vpop.xlane.xlu0 %2193  ;;  %2578 = vadd.xlane.f32.xlu1 %v2577_v25  ;;  %v3611_v37 = vmul.f32 %v3483_v21, %v2331_v32  ;;  %v3793_v31 = vsel %vm9302_vm2, %v3613_v35, 0.0 }
0x1449   :  { %v2571_v3 = vsel %vm9294_vm15, %v2395_v46, 0.0  ;;  %v3616_v23 = vmul.f32 %v3488_v24, %v2336_v60  ;;  %v2271_v20 = vmul.f32 %v5784_v40, %v2194_v5  ;;  %v2400_v55 = vmul.f32 %v2336_v60, %v2336_v60  ;;  %vm9301_vm15 = vmmov %vm9288_vm0 }
0x144a   :  { %2572 = vadd.xlane.f32.xlu0 %v2571_v3  ;;  %v2191_v28 = vpop.xlane.xlu1 %2190  ;;  %v3484_v18 = vperm.slane %v3420_v0, 0  ;;  %v3787_v12 = vsel %vm9300_vm10, %v3611_v37, 0.0 }
0x144b   :  { %v2270_v50 = vmul.f32 %v5784_v40, %v2191_v28  ;;  %v2335_v41 = vsub.f32 %v8643_v42, %v2271_v20  ;;  %v2586_v27 = vsel %vm9288_vm0, %v2400_v55, 0.0  ;;  %v3487_v42 = vperm.slane %v3423_v43, 0 }
0x144c   :  { %v3612_v57 = vmul.f32 %v3484_v18, %v2332_v51  ;;  %v3802_v63 = vsel %vm9288_vm0, %v3616_v23, 0.0  ;;  %v8698_v13 = vpop.permute.xlu2 %4299 }
0x144d   :  { %v2334_v34 = vsub.f32 %v8646_v14, %v2270_v50  ;;  %v2399_v16 = vmul.f32 %v2335_v41, %v2335_v41  ;;  %v3615_v29 = vmul.f32 %v3487_v42, %v2335_v41  ;;  %v4382_v41 = vperm.slane %v8593_v58, %v9247_v59 }
0x144e   :  { %v3790_v62 = vsel %vm9298_vm8, %v3612_v57, 0.0  ;;  %v4384_v37 = vperm.slane %v8698_v13, %v9247_v59 }
0x144f   :  { %v2398_v53 = vmul.f32 %v2334_v34, %v2334_v34  ;;  %v2583_v14 = vsel %vm9297_vm7, %v2399_v16, 0.0  ;;  %v3799_v48 = vsel %vm9299_vm14, %v3615_v29, 0.0  ;;  %v3614_v15 = vmul.f32 %v3486_v54, %v2334_v34 }
0x1450   :  { %2575 = vadd.xlane.f32.xlu2 %v2574_v33  ;;  %2587 = vadd.xlane.f32.xlu1 %v2586_v27  ;;  %v4381_v34 = vperm.slane %v8589_v9, %v9247_v59  ;;  %v4383_v54 = vperm.slane %v8591_v36, %v9247_v59 }
0x1451   :  { %v2580_v39 = vsel %vm9296_vm11, %v2398_v53, 0.0  ;;  %v3796_v7 = vsel %vm9301_vm15, %v3614_v15, 0.0 }
0x1452   :  { %2581 = vadd.xlane.f32.xlu0 %v2580_v39  ;;  %v4445_v9 = vsel %vm4397_vm6, %v4381_v34, %v8580_v26 }
0x1453   :  { %v4446_v58 = vsel %vm4399_vm4, %v4382_v41, %v4445_v9 }
0x1454   :  { %v4447_v13 = vsel %vm4401_vm5, %v4383_v54, %v4446_v58 }
0x1455   :  { %v4448_v36 = vsel %vm4403_vm12, %v4384_v37, %v4447_v13 }
0x1458   :  { %2584 = vadd.xlane.f32.xlu2 %v2583_v14  ;;  %3791 = vadd.xlane.f32.xlu1 %v3790_v62  ;;  %v9303_v62 = vld [vmem:[#allocation33_spill] sm:$0xff] }
0x1459   :  { %v3939_v42 = vperm.slane %v9303_v62, 0 }
0x1460   :  { %3800 = vadd.xlane.f32.xlu1 %v3799_v48  ;;  %3788 = vadd.xlane.f32.xlu2 %v3787_v12 }
0x1462   :  { %v8700_v10 = vpop.permute.xlu1 %4302 }
0x1466   :  { %4305 = vperm.xlu0 %4582, %v4066_v47   ;;  %v4385_v47 = vperm.slane %v8700_v10, %v9247_v59 }
0x1468   :  { %3797 = vadd.xlane.f32.xlu2 %v3796_v7 }
0x1490   :  { %3794 = vadd.xlane.f32.xlu0 %v3793_v31  ;;  %v3940_v31 = vperm.slane %v9303_v62, 1 }
0x1498   :  { %3803 = vadd.xlane.f32.xlu0 %v3802_v63 }
0x14b3   :  { %v2594_v1 = vpop.xlane.xlu2 %2593  ;;  %v8702_v4 = vpop.xlane.xlu1 %3809 }
0x14b4   :  { %v2658_v35 = vmul.f32 %v2594_v1, %v5784_v40 }
0x14b5   :  { %v2591_v22 = vpop.xlane.xlu0 %2590 }
0x14b6   :  { %v2657_v38 = vmul.f32 %v2591_v22, %v5784_v40  ;;  %v8711_v11 = vadd.f32 1e-05, %v2658_v35 }
0x14b8   :  { %v8709_v19 = vadd.f32 1e-05, %v2657_v38 }
0x14bb   :  { %v8705_v44 = vpop.xlane.xlu2 %3806  ;;  %v8714_v30 = vpop.xlane.xlu1 %2578 }
0x14bc   :  { %v2653_v41 = vmul.f32 %v8714_v30, %v5784_v40 }
0x14bd   :  { %v2573_v61 = vpop.xlane.xlu0 %2572 }
0x14be   :  { %v2651_v6 = vmul.f32 %v2573_v61, %v5784_v40 }
0x14c0   :  { %v2715_v8 = vadd.f32 1e-05, %v2651_v6 }
0x14c2   :  { %4734 = vrsqrt.f32 %v2715_v8  ;;  %vm3289_vm7 = vweird.f32 %v2715_v8 }
0x14c3   :  { %4736 = vrsqrt.f32 %v8709_v19  ;;  %v2576_v56 = vpop.xlane.xlu2 %2575  ;;  %v8729_v2 = vpop.xlane.xlu1 %2587 }
0x14c4   :  { %v2652_v32 = vmul.f32 %v2576_v56, %v5784_v40  ;;  %4738 = vrsqrt.f32 %v8711_v11  ;;  %v2656_v58 = vmul.f32 %v8729_v2, %v5784_v40 }
0x14c5   :  { %v2582_v49 = vpop.xlane.xlu0 %2581 }
0x14c6   :  { %v2716_v17 = vadd.f32 1e-05, %v2652_v32  ;;  %v2654_v24 = vmul.f32 %v2582_v49, %v5784_v40  ;;  %v4449_v49 = vsel %vm4405_vm9, %v4385_v47, %v4448_v36  ;;  %v3941_v47 = vperm.slane %v9303_v62, 2 }
0x14c8   :  { %v4735_v51 = vpop.eup %4734  ;;  %4740 = vrsqrt.f32 %v2716_v17  ;;  %v8719_v60 = vadd.f32 1e-05, %v2654_v24  ;;  %vm3299_vm10 = vweird.f32 %v2716_v17 }
0x14c9   :  { %v8721_v25 = vpop.eup %4736  ;;  %v3284_v46 = vmul.f32 %v4735_v51, %v2715_v8  ;;  %vm3290_vm11 = vweird.f32 %v4735_v51 }
0x14ca   :  { %4742 = vrsqrt.f32 %v8719_v60  ;;  %v3344_v23 = vmul.f32 %v8721_v25, %v8709_v19  ;;  %v8727_v20 = vpop.eup %4738  ;;  %vm3291_vm8 = vmor %vm3289_vm7, %vm3290_vm11  ;;  %vm3319_vm0 = vweird.f32 %v8719_v60  ;;  %vm3350_vm7 = vweird.f32 %v8721_v25 }
0x14cb   :  { %v3285_v5 = vmul.f32 %v4735_v51, %v3284_v46  ;;  %v2585_v3 = vpop.xlane.xlu2 %2584  ;;  %v3354_v18 = vmul.f32 %v8727_v20, %v8711_v11  ;;  %v3792_v38 = vpop.xlane.xlu1 %3791 }
0x14cc   :  { %v2655_v28 = vmul.f32 %v2585_v3, %v5784_v40  ;;  %v3345_v53 = vmul.f32 %v8721_v25, %v3344_v23 }
0x14cd   :  { %v3286_v50 = vmul.f32 0.5, %v3285_v5  ;;  %v3355_v26 = vmul.f32 %v8727_v20, %v3354_v18  ;;  %v3942_v5 = vperm.slane %v9303_v62, 3 }
0x14ce   :  { %v4741_v55 = vpop.eup %4740  ;;  %v8733_v0 = vadd.f32 1e-05, %v2655_v28  ;;  %v3346_v45 = vmul.f32 0.5, %v3345_v53 }
0x14cf   :  { %v3294_v33 = vmul.f32 %v4741_v55, %v2716_v17  ;;  %v3287_v27 = vsub.f32 1.5, %v3286_v50  ;;  %vm3300_vm14 = vweird.f32 %v4741_v55  ;;  %v3356_v10 = vmul.f32 0.5, %v3355_v26 }
0x14d0   :  { %4744 = vrsqrt.f32 %v8733_v0  ;;  %v4743_v39 = vpop.eup %4742  ;;  %v3347_v61 = vsub.f32 1.5, %v3346_v45  ;;  %vm3301_vm15 = vmor %vm3299_vm10, %vm3300_vm14  ;;  %vm3349_vm14 = vweird.f32 %v8709_v19  ;;  %v2717_v19 = vadd.f32 1e-05, %v2653_v41 }
0x14d1   :  { %v3295_v16 = vmul.f32 %v4741_v55, %v3294_v33  ;;  %v3288_v57 = vmul.f32 %v4735_v51, %v3287_v27  ;;  %v3314_v43 = vmul.f32 %v4743_v39, %v8719_v60  ;;  %vm3320_vm2 = vweird.f32 %v4743_v39  ;;  %vm3351_vm10 = vmor %vm3349_vm14, %vm3350_vm7 }
0x14d2   :  { %vm3321_vm11 = vmor %vm3319_vm0, %vm3320_vm2  ;;  %v3348_v23 = vmul.f32 %v8721_v25, %v3347_v61  ;;  %vm3360_vm0 = vweird.f32 %v8727_v20  ;;  %4746 = vrsqrt.f32 %v2717_v19  ;;  %vm3309_vm14 = vweird.f32 %v2717_v19 }
0x14d3   :  { %v3296_v14 = vmul.f32 0.5, %v3295_v16  ;;  %v3789_v21 = vpop.xlane.xlu2 %3788  ;;  %v3292_v29 = vsel %vm3291_vm8, %v4735_v51, %v3288_v57  ;;  %v3315_v48 = vmul.f32 %v4743_v39, %v3314_v43  ;;  %v3801_v16 = vpop.xlane.xlu1 %3800  ;;  %v3943_v57 = vperm.slane %v9303_v62, 4 }
0x14d4   :  { %v3867_v12 = vmul.f32 %v3789_v21, %v3292_v29  ;;  %v3352_v53 = vsel %vm3351_vm10, %v8721_v25, %v3348_v23  ;;  %v3945_v43 = vperm.slane %v9303_v62, 6  ;;  %v3946_v21 = vperm.slane %v9303_v62, 7 }
0x14d5   :  { %v3297_v52 = vsub.f32 1.5, %v3296_v14  ;;  %v3316_v7 = vmul.f32 0.5, %v3315_v48  ;;  %v3873_v9 = vmul.f32 %v8705_v44, %v3352_v53 }
0x14d6   :  { %v4745_v15 = vpop.eup %4744  ;;  %v4067_v63 = vadd.f32 %v3939_v42, %v3867_v12 }
0x14d7   :  { %v3324_v1 = vmul.f32 %v4745_v15, %v8733_v0  ;;  %v3298_v22 = vmul.f32 %v4741_v55, %v3297_v52  ;;  %v3317_v35 = vsub.f32 1.5, %v3316_v7  ;;  %vm3330_vm8 = vweird.f32 %v4745_v15 }
0x14d8   :  { %4308 = vperm.xlu2 %4583, %v4067_v63   ;;  %v4306_v6 = vpop.permute.xlu0 %4305  ;;  %v4073_v14 = vadd.f32 %v3945_v43, %v3873_v9  ;;  %v4747_v29 = vpop.eup %4746 }
0x14d9   :  { %v3325_v8 = vmul.f32 %v4745_v15, %v3324_v1  ;;  %v3302_v56 = vsel %vm3301_vm15, %v4741_v55, %v3298_v22  ;;  %v4386_v32 = vperm.slane %v4306_v6, %v9247_v59  ;;  %v3318_v51 = vmul.f32 %v4743_v39, %v3317_v35 }
0x14da   :  { %v3868_v24 = vmul.f32 %v3792_v38, %v3302_v56  ;;  %v3357_v55 = vsub.f32 1.5, %v3356_v10  ;;  %vm3329_vm15 = vweird.f32 %v8733_v0  ;;  %v3304_v37 = vmul.f32 %v4747_v29, %v2717_v19 }
0x14db   :  { %v3326_v17 = vmul.f32 0.5, %v3325_v8  ;;  %v4450_v46 = vsel %vm4407_vm13, %v4386_v32, %v4449_v49  ;;  %v3798_v3 = vpop.xlane.xlu2 %3797  ;;  %v3322_v50 = vsel %vm3321_vm11, %v4743_v39, %v3318_v51  ;;  %vm3331_vm2 = vmor %vm3329_vm15, %vm3330_vm8  ;;  %vm3359_vm11 = vweird.f32 %v8711_v11 }
0x14dc   :  { %v4068_v28 = vadd.f32 %v3940_v31, %v3868_v24  ;;  %4473 = vst.msk [vmem:[%s8823_s12 + $0x30] sm:$0xff] %vm4466_vm3, %v4450_v46  ;;  %v3870_v34 = vmul.f32 %v3798_v3, %v3322_v50  ;;  %v3358_v39 = vmul.f32 %v8727_v20, %v3357_v55  ;;  %vm3361_vm7 = vmor %vm3359_vm11, %vm3360_vm0  ;;  %v2720_v11 = vadd.f32 1e-05, %v2656_v58 }
0x14dd   :  { %v3327_v60 = vsub.f32 1.5, %v3326_v17  ;;  %vm3310_vm8 = vweird.f32 %v4747_v29  ;;  %v3944_v22 = vperm.slane %v9303_v62, 5 }
0x14de   :  { %4311 = vperm.xlu1 %4584, %v4068_v28   ;;  %v4070_v27 = vadd.f32 %v3942_v5, %v3870_v34  ;;  %v3362_v25 = vsel %vm3361_vm7, %v8727_v20, %v3358_v39  ;;  %4748 = vrsqrt.f32 %v2720_v11  ;;  %v3305_v20 = vmul.f32 %v4747_v29, %v3304_v37  ;;  %vm3311_vm10 = vmor %vm3309_vm14, %vm3310_vm8 }
0x14df   :  { %v3328_v33 = vmul.f32 %v4745_v15, %v3327_v60  ;;  %v3874_v42 = vmul.f32 %v8702_v4, %v3362_v25 }
0x14e0   :  { %4317 = vperm.xlu2 %4583, %v4070_v27   ;;  %v3306_v48 = vmul.f32 0.5, %v3305_v20 }
0x14e1   :  { %v3332_v18 = vsel %vm3331_vm2, %v4745_v15, %v3328_v33  ;;  %v4074_v44 = vadd.f32 %v3946_v21, %v3874_v42  ;;  %vm3339_vm2 = vweird.f32 %v2720_v11 }
0x14e2   :  { %v3871_v30 = vmul.f32 %v3801_v16, %v3332_v18  ;;  %v3307_v26 = vsub.f32 1.5, %v3306_v48 }
0x14e4   :  { %v4071_v0 = vadd.f32 %v3943_v57, %v3871_v30  ;;  %v4749_v45 = vpop.eup %4748  ;;  %v3308_v2 = vmul.f32 %v4747_v29, %v3307_v26 }
0x14e5   :  { %v3334_v12 = vmul.f32 %v4749_v45, %v2720_v11  ;;  %vm3340_vm15 = vweird.f32 %v4749_v45 }
0x14e6   :  { %4320 = vperm.xlu1 %4584, %v4071_v0   ;;  %v3312_v52 = vsel %vm3311_vm10, %v4747_v29, %v3308_v2  ;;  %vm3341_vm0 = vmor %vm3339_vm2, %vm3340_vm15 }
0x14e7   :  { %v3335_v54 = vmul.f32 %v4749_v45, %v3334_v12 }
0x14e8   :  { %4326 = vperm.xlu2 %4583, %v4073_v14  }
0x14e9   :  { %v3336_v40 = vmul.f32 0.5, %v3335_v54 }
0x14eb   :  { %v3337_v15 = vsub.f32 1.5, %v3336_v40 }
0x14ed   :  { %v3338_v63 = vmul.f32 %v4749_v45, %v3337_v15 }
0x14ee   :  { %4329 = vperm.xlu1 %4584, %v4074_v44  }
0x14ef   :  { %v3342_v1 = vsel %vm3341_vm0, %v4749_v45, %v3338_v63 }
0x1503   :  { %v3795_v4 = vpop.xlane.xlu0 %3794 }
0x1504   :  { %v3869_v7 = vmul.f32 %v3795_v4, %v3312_v52 }
0x1506   :  { %v4069_v31 = vadd.f32 %v3941_v47, %v3869_v7 }
0x1508   :  { %4314 = vperm.xlu0 %4582, %v4069_v31  }
0x150b   :  { %v3804_v13 = vpop.xlane.xlu0 %3803 }
0x150c   :  { %v3872_v38 = vmul.f32 %v3804_v13, %v3342_v1 }
0x150e   :  { %v4072_v36 = vadd.f32 %v3944_v22, %v3872_v38 }
0x1510   :  { %4323 = vperm.xlu0 %4582, %v4072_v36  }
0x1532   :  { %v4309_v61 = vpop.permute.xlu2 %4308 }
0x1533   :  { %v4387_v62 = vperm.slane %v4309_v61, %v9247_v59 }
0x153a   :  { %v4318_v35 = vpop.permute.xlu2 %4317 }
0x153b   :  { %v4390_v51 = vperm.slane %v4318_v35, %v9247_v59 }
0x1542   :  { %v4327_v17 = vpop.permute.xlu2 %4326 }
0x1543   :  { %v4393_v50 = vperm.slane %v4327_v17, %v9247_v59 }
0x1550   :  { %v4312_v6 = vpop.permute.xlu1 %4311 }
0x1551   :  { %v4388_v8 = vperm.slane %v4312_v6, %v9247_v59 }
0x1553   :  { %v4451_v49 = vsel %vm4395_vm1, %v4388_v8, %v4387_v62 }
0x1558   :  { %v4321_v10 = vpop.permute.xlu1 %4320 }
0x1559   :  { %v4391_v5 = vperm.slane %v4321_v10, %v9247_v59 }
0x1560   :  { %v4330_v3 = vpop.permute.xlu1 %4329 }
0x1561   :  { %v4394_v60 = vperm.slane %v4330_v3, %v9247_v59 }
0x157a   :  { %v4315_v56 = vpop.permute.xlu0 %4314 }
0x157b   :  { %v4389_v32 = vperm.slane %v4315_v56, %v9247_v59 }
0x157d   :  { %v4452_v24 = vsel %vm4397_vm6, %v4389_v32, %v4451_v49 }
0x157e   :  { %v4453_v46 = vsel %vm4399_vm4, %v4390_v51, %v4452_v24 }
0x157f   :  { %v4454_v55 = vsel %vm4401_vm5, %v4391_v5, %v4453_v46 }
0x1582   :  { %v4324_v23 = vpop.permute.xlu0 %4323 }
0x1583   :  { %v4392_v28 = vperm.slane %v4324_v23, %v9247_v59 }
0x1585   :  { %v4455_v34 = vsel %vm4403_vm12, %v4392_v28, %v4454_v55 }
0x1586   :  { %v4456_v41 = vsel %vm4405_vm9, %v4393_v50, %v4455_v34 }
0x1587   :  { %v4457_v33 = vsel %vm4407_vm13, %v4394_v60, %v4456_v41 }
0x1588   :  { %4474 = vst.msk [vmem:[%s8823_s12 + $0x38] sm:$0xff] %vm4466_vm3, %v4457_v33 }
0x1589   :  { %4883 = dma.done.wait [#allocation7], 128  }
0x158a   :  { %4884 = vsyncadd [#allocation7], 4294967168 }
0x158b   :  { %4885 = dma.done.wait [#allocation13], 128  }
0x158c   :  { %4886 = vsyncadd [#allocation13], 4294967168 }
0x158d   :  { %4509 = vsyncpa [#allocation6], 1 }
0x158e   :  { %4510 = vsyncpa [#allocation9], 1 }
0x158f   :  { %4511 = vsyncpa [#allocation7], 1 }
0x1590   :  { %4512 = vsyncpa [#allocation13], 1 }

</bundles_post_ra>
